<compile_context>
chip_gen: v5e
topology: v5e:2x2
jax: 0.10.0
libtpu: 0.0.40
codegen_flags: <defaults>
</compile_context>

<pallas_src>
import functools

import jax
import jax.numpy as jnp
from jax import lax
from jax.experimental import pallas as pl
from jax.experimental.pallas import tpu as pltpu

LANE = 128


def _round_up(x, m):
    return (x + m - 1) // m * m


def _vmem_capacity_bytes():
    try:
        return int(pltpu.get_tpu_info().vmem_capacity_bytes)
    except Exception:
        return 0


_VMEM_CAP = _vmem_capacity_bytes()
if _VMEM_CAP > 0:
    VMEM_LIMIT = min(int(_VMEM_CAP * 0.75), 100 * 1024 * 1024)   # 48 MiB v7x, 96 MiB v5e/v6e
    C_TILE_MAX = 128 if _VMEM_CAP <= 64 * 1024 * 1024 else 256
else:  # conservative fallback that fits every TPU generation
    VMEM_LIMIT = 48 * 1024 * 1024
    C_TILE_MAX = 128


# -----------------------------------------------------------------------------
# Pallas kernels
# -----------------------------------------------------------------------------
def _conv_block_kernel(x_ref, m_ref, w_ref, b_ref, o_ref, *, ho, wo, wo_pad,
                       use_norm, pool, eps=1e-5, slope=0.2):
    """Implicit-GEMM 4x4/stride-2 conv + bias (+InstanceNorm2d) + LeakyReLU(0.2).

    x_ref: (1, 2, (ho+1)*wo_pad, kin_pad) bf16  -- row-parity groups, 4 col taps in K
    m_ref: (ho*wo_pad, 1)                 f32   -- 1 on real output columns, 0 on pad
    w_ref: (4, kin_pad, ct)               bf16  -- one fat-K slice per kernel row ih
    b_ref: (1, ct)                        f32
    o_ref: (1, ho*wo_pad, ct) bf16  or, if pool, (1, 1, ct) f32 (global average)
    """
    ct = o_ref.shape[-1]
    p_pad = ho * wo_pad

    # Single f32 accumulator; 4 fat-K MXU pushes.  ih in {2,3} use a row-shifted
    # (aligned: wo_pad % 8 == 0) slice of the same parity group.
    acc = jnp.zeros((p_pad, ct), jnp.float32)
    for ih in range(4):
        parity = ih & 1
        start = (ih // 2) * wo_pad
        xs = x_ref[0, parity, start:start + p_pad, :]
        acc = acc + jnp.dot(xs, w_ref[ih], preferred_element_type=jnp.float32)
    y = acc + b_ref[...]

    inv_n = 1.0 / float(ho * wo)

    if use_norm:
        # InstanceNorm2d(affine=False): per-channel stats over real spatial positions,
        # single pass (sum / sum-of-squares), biased variance, clamped at 0.
        ym = y * m_ref[...]
        mean = jnp.sum(ym, axis=0, keepdims=True) * inv_n
        ex2 = jnp.sum(ym * y, axis=0, keepdims=True) * inv_n
        var = jnp.maximum(ex2 - mean * mean, 0.0)
        y = (y - mean) * lax.rsqrt(var + eps)

    y = jnp.where(y >= 0.0, y, slope * y)            # LeakyReLU(0.2)

    if pool:
        # Fused global average pool over real spatial positions (AvgPool2d full window).
        o_ref[0] = (jnp.sum(y * m_ref[...], axis=0, keepdims=True) * inv_n
                    ).astype(o_ref.dtype)
    else:
        o_ref[0] = y.astype(o_ref.dtype)


def _head_kernel(p_ref, w_ref, b_ref, o_ref):
    """1x1 conv on the pooled (B, C) features."""
    o_ref[...] = (jnp.dot(p_ref[...], w_ref[...], preferred_element_type=jnp.float32)
                  + b_ref[...]).astype(o_ref.dtype)


# -----------------------------------------------------------------------------
# Wrappers (packing + pallas_call)
# -----------------------------------------------------------------------------
def _pack_conv_input(h):
    """h: (B,H,W,C) NHWC -> (B, 2, (Ho+1)*Wo_pad, Kin_pad); 4 column taps along K."""
    b, hh, ww, c = h.shape
    ho, wo = hh // 2, ww // 2
    wo_pad = _round_up(wo, 8)
    kin = 4 * c
    kin_pad = _round_up(kin, LANE)
    hp = jnp.pad(h, ((0, 0), (1, 1), (1, 1), (0, 0)))
    groups = []
    for ph in range(2):
        taps = [hp[:, ph::2, iw:iw + 2 * wo:2, :] for iw in range(4)]  # 4x (B,ho+1,wo,c)
        groups.append(jnp.concatenate(taps, axis=-1))                  # (B,ho+1,wo,4c)
    x = jnp.stack(groups, axis=1)                                      # (B,2,ho+1,wo,4c)
    x = jnp.pad(x, ((0, 0), (0, 0), (0, 0), (0, wo_pad - wo), (0, kin_pad - kin)))
    return x.reshape(b, 2, (ho + 1) * wo_pad, kin_pad), ho, wo, wo_pad, kin_pad


def _pack_conv_weight(w, bias, cin_act, cout_pad):
    """w: (Cout,Cin,4,4) OIHW -> ((4, round_up(4*cin_act,128), cout_pad) bf16, (1,cout_pad) f32)."""
    cout, cin, _, _ = w.shape
    wt = jnp.transpose(w, (2, 3, 1, 0))                                # (ih, iw, cin, cout)
    wt = jnp.pad(wt, ((0, 0), (0, 0), (0, cin_act - cin), (0, cout_pad - cout)))
    kin = 4 * cin_act
    kin_pad = _round_up(kin, LANE)
    wt = wt.reshape(4, kin, cout_pad)                                  # K order matches x packing
    wt = jnp.pad(wt, ((0, 0), (0, kin_pad - kin), (0, 0)))
    bp = jnp.pad(bias, (0, cout_pad - cout)).reshape(1, cout_pad)
    return wt.astype(jnp.bfloat16), bp.astype(jnp.float32)


def conv_block(h, w, bias, use_norm, pool=False):
    """h: (B,H,W,Cin_act) bf16 NHWC -> (B,H/2,W/2,Cout_pad) bf16, or (B,Cout_pad) f32 if pool."""
    b = h.shape[0]
    cin_act = h.shape[-1]
    cout = w.shape[0]
    cout_pad = _round_up(cout, LANE)

    x, ho, wo, wo_pad, kin_pad = _pack_conv_input(h)
    wp, bp = _pack_conv_weight(w, bias, cin_act, cout_pad)
    pg_pad = (ho + 1) * wo_pad
    p_pad = ho * wo_pad

    # Pad-column mask (1 on real output columns) -- avoids in-kernel integer modulo.
    mvec = jnp.tile((jnp.arange(wo_pad) < wo).astype(jnp.float32), ho).reshape(p_pad, 1)

    ct = min(cout_pad, C_TILE_MAX)
    n_ct = cout_pad // ct

    # Grid order: keep the larger of {per-batch packed activations, per-tile weights}
    # resident across the inner grid axis (Pallas skips re-DMA on unchanged indices).
    x_bytes = 2 * pg_pad * kin_pad * 2
    w_bytes = 4 * kin_pad * ct * 2
    x_inner_resident = (n_ct == 1) or (n_ct * w_bytes * (b - 1) < b * x_bytes * (n_ct - 1))
    if x_inner_resident:
        grid = (b, n_ct)
        bsel = lambda bi, ci: bi
        csel = lambda bi, ci: ci
    else:
        grid = (n_ct, b)
        bsel = lambda ci, bi: bi
        csel = lambda ci, bi: ci
    x_map = lambda *g: (bsel(*g), 0, 0, 0)
    m_map = lambda *g: (0, 0)
    w_map = lambda *g: (0, 0, csel(*g))
    b_map = lambda *g: (0, csel(*g))
    o_map = lambda *g: (bsel(*g), 0, csel(*g))

    if pool:
        out_shape = jax.ShapeDtypeStruct((b, 1, cout_pad), jnp.float32)
        out_block = (1, 1, ct)
        out_bytes = b * cout_pad * 4
    else:
        out_shape = jax.ShapeDtypeStruct((b, p_pad, cout_pad), jnp.bfloat16)
        out_block = (1, p_pad, ct)
        out_bytes = b * p_pad * cout_pad * 2

    cost = pl.CostEstimate(
        flops=2 * b * ho * wo * 16 * w.shape[1] * cout,
        transcendentals=(b * cout) if use_norm else 0,
        bytes_accessed=x.size * 2 + mvec.size * 4 + wp.size * 2 + bp.size * 4 + out_bytes)

    kern = functools.partial(_conv_block_kernel, ho=ho, wo=wo, wo_pad=wo_pad,
                             use_norm=use_norm, pool=pool)
    out = pl.pallas_call(
        kern,
        out_shape=out_shape,
        grid=grid,
        in_specs=[
            pl.BlockSpec((1, 2, pg_pad, kin_pad), x_map),
            pl.BlockSpec((p_pad, 1), m_map),
            pl.BlockSpec((4, kin_pad, ct), w_map),
            pl.BlockSpec((1, ct), b_map),
        ],
        out_specs=pl.BlockSpec(out_block, o_map),
        compiler_params=pltpu.CompilerParams(
            dimension_semantics=("parallel", "parallel"),
            vmem_limit_bytes=VMEM_LIMIT),
        cost_estimate=cost,
    )(x, mvec, wp, bp)

    if pool:
        return out.reshape(b, cout_pad)
    out = out.reshape(b, ho, wo_pad, cout_pad)
    if wo_pad != wo:
        out = out[:, :, :wo, :]
    return out


def head(pooled, w, bias):
    """pooled: (B, Cpad) f32; w: (O, C, 1, 1); bias: (O,) -> (B, O) f32."""
    b, cpad = pooled.shape
    o, c = w.shape[0], w.shape[1]
    wm = jnp.pad(w.reshape(o, c).T, ((0, cpad - c), (0, 0))).astype(jnp.float32)
    return pl.pallas_call(
        _head_kernel,
        out_shape=jax.ShapeDtypeStruct((b, o), jnp.float32),
        grid=(1,),
        in_specs=[
            pl.BlockSpec((b, cpad), lambda i: (0, 0)),
            pl.BlockSpec((cpad, o), lambda i: (0, 0)),
            pl.BlockSpec((1, o), lambda i: (0, 0)),
        ],
        out_specs=pl.BlockSpec((b, o), lambda i: (0, 0)),
        compiler_params=pltpu.CompilerParams(
            dimension_semantics=("arbitrary",), vmem_limit_bytes=VMEM_LIMIT),
    )(pooled, wm, bias.reshape(1, o))


# -----------------------------------------------------------------------------
# Glue: spectral map decomposition and forward pass
# -----------------------------------------------------------------------------
def spectral_map_decomposition(x, mask_embedding, mask):
    """SpectralMapDecomposition.forward. x: (B, 2, H, W) real/imag channels."""
    # TODO(synk): no Pallas FFT primitive — FFT/IFFT kept in plain JAX (jnp.fft),
    # assuming unnormalized fft2 / (1/HW) ifft2 and no fftshift (the fft->ifft scale
    # product is convention-independent; only a shift would change column ordering).
    B, _, H, W = x.shape
    img_c = (x[:, 0] + 1j * x[:, 1]).astype(jnp.complex64)        # (B, H, W)
    kspace = jnp.fft.fft2(img_c)
    eye = jnp.eye(W, dtype=kspace.dtype)
    masked = kspace[:, None, :, :] * eye[None, :, None, :]        # (B, W, H, W)
    sep = jnp.fft.ifft2(masked)
    sep_ri = jnp.stack([sep.real, sep.imag], axis=2).astype(jnp.float32)  # (B, W, 2, H, W)
    # Exactly reproduce PyTorch's .view(B, 2, W, H, W) (flat-order reinterpretation).
    sep_ri = sep_ri.reshape(B, 2, W, H, W)
    if mask is not None:
        # mask: (B,1,1,W) -> permute(0,3,1,2) -> (B,W,1,1) -> unsqueeze(1); added.
        sep_ri = sep_ri + jnp.transpose(mask, (0, 3, 1, 2))[:, None]
    sep_ri = sep_ri.reshape(B, 2 * W, H, W)
    if mask_embedding is not None:
        return jnp.concatenate([sep_ri, mask_embedding], axis=1)
    return sep_ri


def evaluator_forward(params, input_tensor, mask_embedding=None, mask=None):
    """EvaluatorNetwork.forward -> (B, num_output_channels)."""
    sm = spectral_map_decomposition(input_tensor, mask_embedding, mask)  # (B, 2W+E, H, W)
    # TODO(synk): activations run in bf16 end-to-end; PyTorch reference is f32 convs.
    h = jnp.transpose(sm, (0, 2, 3, 1)).astype(jnp.bfloat16)             # NHWC once
    n_layers = len(params["convs"])
    for i, (w, bias) in enumerate(params["convs"]):
        last = i == n_layers - 1
        h = conv_block(h, w, bias, use_norm=(i > 0), pool=last)
    wf, bf_ = params["final"]
    return head(h, wf, bf_)                                              # (B, O)


# -----------------------------------------------------------------------------
# Deterministic parameter construction (mirrors EvaluatorNetwork.__init__)
# -----------------------------------------------------------------------------
def make_params(width, mask_embed_dim, number_of_filters, number_of_conv_layers, key):
    cin = 2 * width + mask_embed_dim
    keys = jax.random.split(key, number_of_conv_layers + 1)
    convs = []
    convs.append((0.02 * jax.random.normal(keys[0], (number_of_filters, cin, 4, 4),
                                           jnp.float32),
                  jnp.zeros((number_of_filters,), jnp.float32)))
    in_ch = number_of_filters
    for n in range(1, number_of_conv_layers):
        if n < number_of_conv_layers - 1:
            out_ch = in_ch * 2 if n <= 4 else in_ch // 2
        else:
            out_ch = in_ch
        convs.append((0.02 * jax.random.normal(keys[n], (out_ch, in_ch, 4, 4),
                                               jnp.float32),
                      jnp.zeros((out_ch,), jnp.float32)))
        in_ch = out_ch
    num_output_channels = width
    final = (0.02 * jax.random.normal(keys[-1], (num_output_channels, in_ch, 1, 1),
                                      jnp.float32),
             jnp.zeros((num_output_channels,), jnp.float32))
    return {"convs": convs, "final": final}


if __name__ == "__main__":
    # Small, consistent shapes: width = height = 16, batch = 2,
    # number_of_filters = 8, number_of_conv_layers = 3, mask_embed_dim = 6.
    B, H, W = 2, 16, 16
    E = 6
    NF = 8
    NLAYERS = 3

    root = jax.random.PRNGKey(0)
    k_x, k_emb, k_mask, k_params = jax.random.split(root, 4)
    input_tensor = jax.random.normal(k_x, (B, 2, H, W), jnp.float32)       # NCHW real/imag
    mask_embedding = jax.random.normal(k_emb, (B, E, H, W), jnp.float32)   # NCHW
    mask = (jax.random.uniform(k_mask, (B, 1, 1, W)) > 0.5).astype(jnp.float32)

    params = make_params(W, E, NF, NLAYERS, k_params)

    fwd = jax.jit(evaluator_forward)
    out = fwd(params, input_tensor, mask_embedding, mask)
    out = jax.block_until_ready(out)

    assert out.shape == (B, W), out.shape
    assert out.dtype == jnp.float32
    assert bool(jnp.all(jnp.isfinite(out)))
    print("KERNEL_OK")
</pallas_src>

<mosaic_0001>
module attributes {stable_mosaic.version = 11 : i64} {
  func.func @_conv_block_kernel(%arg0: i32, %arg1: i32, %arg2: memref<1x2x72x256xbf16, #tpu.memory_space<vmem>>, %arg3: memref<64x1xf32, #tpu.memory_space<vmem>>, %arg4: memref<4x256x128xbf16, #tpu.memory_space<vmem>>, %arg5: memref<1x128xf32, #tpu.memory_space<vmem>>, %arg6: memref<1x64x128xbf16, #tpu.memory_space<vmem>>) attributes {dimension_semantics = [#tpu.dimension_semantics<parallel>, #tpu.dimension_semantics<parallel>], iteration_bounds = array<i64: 2, 1>, scalar_prefetch = 0 : i64, scratch_operands = 0 : i64, tpu.core_type = #tpu.core_type<tc>, window_params = [{transform_indices = @transform_0, window_bounds = array<i64: 1, 2, 72, 256>}, {pipeline_mode = #tpu.pipeline_mode<synchronous>, transform_indices = @transform_1, window_bounds = array<i64: 64, 1>}, {transform_indices = @transform_2, window_bounds = array<i64: 4, 256, 128>}, {transform_indices = @transform_3, window_bounds = array<i64: 1, 128>}, {transform_indices = @transform_4, window_bounds = array<i64: 1, 64, 128>}]} {
    %cst = arith.constant 0.000000e+00 : f32
    %0 = vector.broadcast %cst : f32 to vector<64x128xf32>
    %c0 = arith.constant 0 : index
    %c0_0 = arith.constant 0 : index
    %c0_1 = arith.constant 0 : index
    %c0_2 = arith.constant 0 : index
    %1 = vector.load %arg2[%c0, %c0_0, %c0_1, %c0_2] : memref<1x2x72x256xbf16, #tpu.memory_space<vmem>>, vector<1x1x64x256xbf16>
    %2 = vector.shape_cast %1 : vector<1x1x64x256xbf16> to vector<64x256xbf16>
    %c0_3 = arith.constant 0 : index
    %c0_4 = arith.constant 0 : index
    %c0_5 = arith.constant 0 : index
    %3 = vector.load %arg4[%c0_3, %c0_4, %c0_5] : memref<4x256x128xbf16, #tpu.memory_space<vmem>>, vector<1x256x128xbf16>
    %4 = vector.shape_cast %3 : vector<1x256x128xbf16> to vector<256x128xbf16>
    %cst_6 = arith.constant dense<0.000000e+00> : vector<64x128xf32>
    %5 = tpu.matmul %2, %4, %cst_6 {dimension_numbers = #tpu.dot_dimension_numbers<[1], [0], [0], [1], [0, 0, 1, 1], [], []>} : vector<64x256xbf16>, vector<256x128xbf16>, vector<64x128xf32> -> vector<64x128xf32>
    %6 = arith.addf %0, %5 : vector<64x128xf32>
    %c0_7 = arith.constant 0 : index
    %c1 = arith.constant 1 : index
    %c0_8 = arith.constant 0 : index
    %c0_9 = arith.constant 0 : index
    %7 = vector.load %arg2[%c0_7, %c1, %c0_8, %c0_9] : memref<1x2x72x256xbf16, #tpu.memory_space<vmem>>, vector<1x1x64x256xbf16>
    %8 = vector.shape_cast %7 : vector<1x1x64x256xbf16> to vector<64x256xbf16>
    %c1_10 = arith.constant 1 : index
    %c0_11 = arith.constant 0 : index
    %c0_12 = arith.constant 0 : index
    %9 = vector.load %arg4[%c1_10, %c0_11, %c0_12] : memref<4x256x128xbf16, #tpu.memory_space<vmem>>, vector<1x256x128xbf16>
    %10 = vector.shape_cast %9 : vector<1x256x128xbf16> to vector<256x128xbf16>
    %cst_13 = arith.constant dense<0.000000e+00> : vector<64x128xf32>
    %11 = tpu.matmul %8, %10, %cst_13 {dimension_numbers = #tpu.dot_dimension_numbers<[1], [0], [0], [1], [0, 0, 1, 1], [], []>} : vector<64x256xbf16>, vector<256x128xbf16>, vector<64x128xf32> -> vector<64x128xf32>
    %12 = arith.addf %6, %11 : vector<64x128xf32>
    %c0_14 = arith.constant 0 : index
    %c0_15 = arith.constant 0 : index
    %c8 = arith.constant 8 : index
    %c0_16 = arith.constant 0 : index
    %13 = vector.load %arg2[%c0_14, %c0_15, %c8, %c0_16] : memref<1x2x72x256xbf16, #tpu.memory_space<vmem>>, vector<1x1x64x256xbf16>
    %14 = vector.shape_cast %13 : vector<1x1x64x256xbf16> to vector<64x256xbf16>
    %c2 = arith.constant 2 : index
    %c0_17 = arith.constant 0 : index
    %c0_18 = arith.constant 0 : index
    %15 = vector.load %arg4[%c2, %c0_17, %c0_18] : memref<4x256x128xbf16, #tpu.memory_space<vmem>>, vector<1x256x128xbf16>
    %16 = vector.shape_cast %15 : vector<1x256x128xbf16> to vector<256x128xbf16>
    %cst_19 = arith.constant dense<0.000000e+00> : vector<64x128xf32>
    %17 = tpu.matmul %14, %16, %cst_19 {dimension_numbers = #tpu.dot_dimension_numbers<[1], [0], [0], [1], [0, 0, 1, 1], [], []>} : vector<64x256xbf16>, vector<256x128xbf16>, vector<64x128xf32> -> vector<64x128xf32>
    %18 = arith.addf %12, %17 : vector<64x128xf32>
    %c0_20 = arith.constant 0 : index
    %c1_21 = arith.constant 1 : index
    %c8_22 = arith.constant 8 : index
    %c0_23 = arith.constant 0 : index
    %19 = vector.load %arg2[%c0_20, %c1_21, %c8_22, %c0_23] : memref<1x2x72x256xbf16, #tpu.memory_space<vmem>>, vector<1x1x64x256xbf16>
    %20 = vector.shape_cast %19 : vector<1x1x64x256xbf16> to vector<64x256xbf16>
    %c3 = arith.constant 3 : index
    %c0_24 = arith.constant 0 : index
    %c0_25 = arith.constant 0 : index
    %21 = vector.load %arg4[%c3, %c0_24, %c0_25] : memref<4x256x128xbf16, #tpu.memory_space<vmem>>, vector<1x256x128xbf16>
    %22 = vector.shape_cast %21 : vector<1x256x128xbf16> to vector<256x128xbf16>
    %cst_26 = arith.constant dense<0.000000e+00> : vector<64x128xf32>
    %23 = tpu.matmul %20, %22, %cst_26 {dimension_numbers = #tpu.dot_dimension_numbers<[1], [0], [0], [1], [0, 0, 1, 1], [], []>} : vector<64x256xbf16>, vector<256x128xbf16>, vector<64x128xf32> -> vector<64x128xf32>
    %24 = arith.addf %18, %23 : vector<64x128xf32>
    %c0_27 = arith.constant 0 : index
    %c0_28 = arith.constant 0 : index
    %25 = vector.load %arg5[%c0_27, %c0_28] : memref<1x128xf32, #tpu.memory_space<vmem>>, vector<1x128xf32>
    %26 = vector.broadcast %25 : vector<1x128xf32> to vector<64x128xf32>
    %27 = arith.addf %24, %26 : vector<64x128xf32>
    %cst_29 = arith.constant 0.000000e+00 : f32
    %28 = vector.broadcast %cst_29 : f32 to vector<64x128xf32>
    %29 = arith.cmpf oge, %27, %28 : vector<64x128xf32>
    %cst_30 = arith.constant 2.000000e-01 : f32
    %30 = vector.broadcast %cst_30 : f32 to vector<64x128xf32>
    %31 = arith.mulf %30, %27 : vector<64x128xf32>
    %32 = arith.select %29, %27, %31 : vector<64x128xi1>, vector<64x128xf32>
    %33 = arith.truncf %32 : vector<64x128xf32> to vector<64x128xbf16>
    %c0_31 = arith.constant 0 : index
    %c0_32 = arith.constant 0 : index
    %c0_33 = arith.constant 0 : index
    %34 = vector.load %arg6[%c0_31, %c0_32, %c0_33] : memref<1x64x128xbf16, #tpu.memory_space<vmem>>, vector<1x64x128xbf16>
    %35 = vector.shape_cast %34 : vector<1x64x128xbf16> to vector<64x128xbf16>
    %36 = vector.shape_cast %33 : vector<64x128xbf16> to vector<1x64x128xbf16>
    tpu.vector_store %arg6[%c0_31, %c0_32, %c0_33], %36 {strides = array<i32>} : memref<1x64x128xbf16, #tpu.memory_space<vmem>>, vector<1x64x128xbf16>,
    return
  }
  func.func @transform_0(%arg0: i32, %arg1: i32) -> (i32, i32, i32, i32) {
    %c0_i32 = arith.constant 0 : i32
    %c0_i32_0 = arith.constant 0 : i32
    %c0_i32_1 = arith.constant 0 : i32
    %c0_i32_2 = arith.constant 0 : i32
    return %arg0, %c0_i32, %c0_i32_0, %c0_i32_1 : i32, i32, i32, i32
  }
  func.func @transform_1(%arg0: i32, %arg1: i32) -> (i32, i32) {
    %c0_i32 = arith.constant 0 : i32
    %c0_i32_0 = arith.constant 0 : i32
    %c0_i32_1 = arith.constant 0 : i32
    return %c0_i32, %c0_i32_0 : i32, i32
  }
  func.func @transform_2(%arg0: i32, %arg1: i32) -> (i32, i32, i32) {
    %c0_i32 = arith.constant 0 : i32
    %c0_i32_0 = arith.constant 0 : i32
    %c0_i32_1 = arith.constant 0 : i32
    return %c0_i32, %c0_i32_0, %arg1 : i32, i32, i32
  }
  func.func @transform_3(%arg0: i32, %arg1: i32) -> (i32, i32) {
    %c0_i32 = arith.constant 0 : i32
    %c0_i32_0 = arith.constant 0 : i32
    return %c0_i32, %arg1 : i32, i32
  }
  func.func @transform_4(%arg0: i32, %arg1: i32) -> (i32, i32, i32) {
    %c0_i32 = arith.constant 0 : i32
    %c0_i32_0 = arith.constant 0 : i32
    return %arg0, %c0_i32, %arg1 : i32, i32, i32
  }
}

module attributes {stable_mosaic.version = 11 : i64} {
  func.func @_conv_block_kernel(%arg0: i32, %arg1: i32, %arg2: memref<1x2x40x512xbf16, #tpu.memory_space<vmem>>, %arg3: memref<32x1xf32, #tpu.memory_space<vmem>>, %arg4: memref<4x512x128xbf16, #tpu.memory_space<vmem>>, %arg5: memref<1x128xf32, #tpu.memory_space<vmem>>, %arg6: memref<1x32x128xbf16, #tpu.memory_space<vmem>>) attributes {dimension_semantics = [#tpu.dimension_semantics<parallel>, #tpu.dimension_semantics<parallel>], iteration_bounds = array<i64: 2, 1>, scalar_prefetch = 0 : i64, scratch_operands = 0 : i64, tpu.core_type = #tpu.core_type<tc>, window_params = [{transform_indices = @transform_0, window_bounds = array<i64: 1, 2, 40, 512>}, {pipeline_mode = #tpu.pipeline_mode<synchronous>, transform_indices = @transform_1, window_bounds = array<i64: 32, 1>}, {transform_indices = @transform_2, window_bounds = array<i64: 4, 512, 128>}, {transform_indices = @transform_3, window_bounds = array<i64: 1, 128>}, {transform_indices = @transform_4, window_bounds = array<i64: 1, 32, 128>}]} {
    %cst = arith.constant 0.000000e+00 : f32
    %0 = vector.broadcast %cst : f32 to vector<32x128xf32>
    %c0 = arith.constant 0 : index
    %c0_0 = arith.constant 0 : index
    %c0_1 = arith.constant 0 : index
    %c0_2 = arith.constant 0 : index
    %1 = vector.load %arg2[%c0, %c0_0, %c0_1, %c0_2] : memref<1x2x40x512xbf16, #tpu.memory_space<vmem>>, vector<1x1x32x512xbf16>
    %2 = vector.shape_cast %1 : vector<1x1x32x512xbf16> to vector<32x512xbf16>
    %c0_3 = arith.constant 0 : index
    %c0_4 = arith.constant 0 : index
    %c0_5 = arith.constant 0 : index
    %3 = vector.load %arg4[%c0_3, %c0_4, %c0_5] : memref<4x512x128xbf16, #tpu.memory_space<vmem>>, vector<1x512x128xbf16>
    %4 = vector.shape_cast %3 : vector<1x512x128xbf16> to vector<512x128xbf16>
    %cst_6 = arith.constant dense<0.000000e+00> : vector<32x128xf32>
    %5 = tpu.matmul %2, %4, %cst_6 {dimension_numbers = #tpu.dot_dimension_numbers<[1], [0], [0], [1], [0, 0, 1, 1], [], []>} : vector<32x512xbf16>, vector<512x128xbf16>, vector<32x128xf32> -> vector<32x128xf32>
    %6 = arith.addf %0, %5 : vector<32x128xf32>
    %c0_7 = arith.constant 0 : index
    %c1 = arith.constant 1 : index
    %c0_8 = arith.constant 0 : index
    %c0_9 = arith.constant 0 : index
    %7 = vector.load %arg2[%c0_7, %c1, %c0_8, %c0_9] : memref<1x2x40x512xbf16, #tpu.memory_space<vmem>>, vector<1x1x32x512xbf16>
    %8 = vector.shape_cast %7 : vector<1x1x32x512xbf16> to vector<32x512xbf16>
    %c1_10 = arith.constant 1 : index
    %c0_11 = arith.constant 0 : index
    %c0_12 = arith.constant 0 : index
    %9 = vector.load %arg4[%c1_10, %c0_11, %c0_12] : memref<4x512x128xbf16, #tpu.memory_space<vmem>>, vector<1x512x128xbf16>
    %10 = vector.shape_cast %9 : vector<1x512x128xbf16> to vector<512x128xbf16>
    %cst_13 = arith.constant dense<0.000000e+00> : vector<32x128xf32>
    %11 = tpu.matmul %8, %10, %cst_13 {dimension_numbers = #tpu.dot_dimension_numbers<[1], [0], [0], [1], [0, 0, 1, 1], [], []>} : vector<32x512xbf16>, vector<512x128xbf16>, vector<32x128xf32> -> vector<32x128xf32>
    %12 = arith.addf %6, %11 : vector<32x128xf32>
    %c0_14 = arith.constant 0 : index
    %c0_15 = arith.constant 0 : index
    %c8 = arith.constant 8 : index
    %c0_16 = arith.constant 0 : index
    %13 = vector.load %arg2[%c0_14, %c0_15, %c8, %c0_16] : memref<1x2x40x512xbf16, #tpu.memory_space<vmem>>, vector<1x1x32x512xbf16>
    %14 = vector.shape_cast %13 : vector<1x1x32x512xbf16> to vector<32x512xbf16>
    %c2 = arith.constant 2 : index
    %c0_17 = arith.constant 0 : index
    %c0_18 = arith.constant 0 : index
    %15 = vector.load %arg4[%c2, %c0_17, %c0_18] : memref<4x512x128xbf16, #tpu.memory_space<vmem>>, vector<1x512x128xbf16>
    %16 = vector.shape_cast %15 : vector<1x512x128xbf16> to vector<512x128xbf16>
    %cst_19 = arith.constant dense<0.000000e+00> : vector<32x128xf32>
    %17 = tpu.matmul %14, %16, %cst_19 {dimension_numbers = #tpu.dot_dimension_numbers<[1], [0], [0], [1], [0, 0, 1, 1], [], []>} : vector<32x512xbf16>, vector<512x128xbf16>, vector<32x128xf32> -> vector<32x128xf32>
    %18 = arith.addf %12, %17 : vector<32x128xf32>
    %c0_20 = arith.constant 0 : index
    %c1_21 = arith.constant 1 : index
    %c8_22 = arith.constant 8 : index
    %c0_23 = arith.constant 0 : index
    %19 = vector.load %arg2[%c0_20, %c1_21, %c8_22, %c0_23] : memref<1x2x40x512xbf16, #tpu.memory_space<vmem>>, vector<1x1x32x512xbf16>
    %20 = vector.shape_cast %19 : vector<1x1x32x512xbf16> to vector<32x512xbf16>
    %c3 = arith.constant 3 : index
    %c0_24 = arith.constant 0 : index
    %c0_25 = arith.constant 0 : index
    %21 = vector.load %arg4[%c3, %c0_24, %c0_25] : memref<4x512x128xbf16, #tpu.memory_space<vmem>>, vector<1x512x128xbf16>
    %22 = vector.shape_cast %21 : vector<1x512x128xbf16> to vector<512x128xbf16>
    %cst_26 = arith.constant dense<0.000000e+00> : vector<32x128xf32>
    %23 = tpu.matmul %20, %22, %cst_26 {dimension_numbers = #tpu.dot_dimension_numbers<[1], [0], [0], [1], [0, 0, 1, 1], [], []>} : vector<32x512xbf16>, vector<512x128xbf16>, vector<32x128xf32> -> vector<32x128xf32>
    %24 = arith.addf %18, %23 : vector<32x128xf32>
    %c0_27 = arith.constant 0 : index
    %c0_28 = arith.constant 0 : index
    %25 = vector.load %arg5[%c0_27, %c0_28] : memref<1x128xf32, #tpu.memory_space<vmem>>, vector<1x128xf32>
    %26 = vector.broadcast %25 : vector<1x128xf32> to vector<32x128xf32>
    %27 = arith.addf %24, %26 : vector<32x128xf32>
    %c0_29 = arith.constant 0 : index
    %c0_30 = arith.constant 0 : index
    %28 = vector.load %arg3[%c0_29, %c0_30] : memref<32x1xf32, #tpu.memory_space<vmem>>, vector<32x1xf32>
    %29 = vector.broadcast %28 : vector<32x1xf32> to vector<32x128xf32>
    %30 = arith.mulf %27, %29 : vector<32x128xf32>
    %cst_31 = arith.constant dense<0.000000e+00> : vector<128xf32>
    %31 = vector.multi_reduction <add>, %30, %cst_31 [0] : vector<32x128xf32> to vector<128xf32>
    %32 = vector.shape_cast %31 : vector<128xf32> to vector<1x128xf32>
    %cst_32 = arith.constant 6.250000e-02 : f32
    %33 = vector.broadcast %cst_32 : f32 to vector<1x128xf32>
    %34 = arith.mulf %32, %33 : vector<1x128xf32>
    %35 = arith.mulf %30, %27 : vector<32x128xf32>
    %cst_33 = arith.constant dense<0.000000e+00> : vector<128xf32>
    %36 = vector.multi_reduction <add>, %35, %cst_33 [0] : vector<32x128xf32> to vector<128xf32>
    %37 = vector.shape_cast %36 : vector<128xf32> to vector<1x128xf32>
    %cst_34 = arith.constant 6.250000e-02 : f32
    %38 = vector.broadcast %cst_34 : f32 to vector<1x128xf32>
    %39 = arith.mulf %37, %38 : vector<1x128xf32>
    %40 = arith.mulf %34, %34 : vector<1x128xf32>
    %41 = arith.subf %39, %40 : vector<1x128xf32>
    %cst_35 = arith.constant 0.000000e+00 : f32
    %42 = vector.broadcast %cst_35 : f32 to vector<1x128xf32>
    %43 = arith.maximumf %41, %42 : vector<1x128xf32>
    %44 = vector.broadcast %34 : vector<1x128xf32> to vector<32x128xf32>
    %45 = arith.subf %27, %44 : vector<32x128xf32>
    %cst_36 = arith.constant 9.99999974E-6 : f32
    %46 = vector.broadcast %cst_36 : f32 to vector<1x128xf32>
    %47 = arith.addf %43, %46 : vector<1x128xf32>
    %48 = math.rsqrt %47 : vector<1x128xf32>
    %49 = vector.broadcast %48 : vector<1x128xf32> to vector<32x128xf32>
    %50 = arith.mulf %45, %49 : vector<32x128xf32>
    %cst_37 = arith.constant 0.000000e+00 : f32
    %51 = vector.broadcast %cst_37 : f32 to vector<32x128xf32>
    %52 = arith.cmpf oge, %50, %51 : vector<32x128xf32>
    %cst_38 = arith.constant 2.000000e-01 : f32
    %53 = vector.broadcast %cst_38 : f32 to vector<32x128xf32>
    %54 = arith.mulf %53, %50 : vector<32x128xf32>
    %55 = arith.select %52, %50, %54 : vector<32x128xi1>, vector<32x128xf32>
    %56 = arith.truncf %55 : vector<32x128xf32> to vector<32x128xbf16>
    %c0_39 = arith.constant 0 : index
    %c0_40 = arith.constant 0 : index
    %c0_41 = arith.constant 0 : index
    %57 = vector.load %arg6[%c0_39, %c0_40, %c0_41] : memref<1x32x128xbf16, #tpu.memory_space<vmem>>, vector<1x32x128xbf16>
    %58 = vector.shape_cast %57 : vector<1x32x128xbf16> to vector<32x128xbf16>
    %59 = vector.shape_cast %56 : vector<32x128xbf16> to vector<1x32x128xbf16>
    tpu.vector_store %arg6[%c0_39, %c0_40, %c0_41], %59 {strides = array<i32>} : memref<1x32x128xbf16, #tpu.memory_space<vmem>>, vector<1x32x128xbf16>,
    return
  }
  func.func @transform_0(%arg0: i32, %arg1: i32) -> (i32, i32, i32, i32) {
    %c0_i32 = arith.constant 0 : i32
    %c0_i32_0 = arith.constant 0 : i32
    %c0_i32_1 = arith.constant 0 : i32
    %c0_i32_2 = arith.constant 0 : i32
    return %arg0, %c0_i32, %c0_i32_0, %c0_i32_1 : i32, i32, i32, i32
  }
  func.func @transform_1(%arg0: i32, %arg1: i32) -> (i32, i32) {
    %c0_i32 = arith.constant 0 : i32
    %c0_i32_0 = arith.constant 0 : i32
    %c0_i32_1 = arith.constant 0 : i32
    return %c0_i32, %c0_i32_0 : i32, i32
  }
  func.func @transform_2(%arg0: i32, %arg1: i32) -> (i32, i32, i32) {
    %c0_i32 = arith.constant 0 : i32
    %c0_i32_0 = arith.constant 0 : i32
    %c0_i32_1 = arith.constant 0 : i32
    return %c0_i32, %c0_i32_0, %arg1 : i32, i32, i32
  }
  func.func @transform_3(%arg0: i32, %arg1: i32) -> (i32, i32) {
    %c0_i32 = arith.constant 0 : i32
    %c0_i32_0 = arith.constant 0 : i32
    return %c0_i32, %arg1 : i32, i32
  }
  func.func @transform_4(%arg0: i32, %arg1: i32) -> (i32, i32, i32) {
    %c0_i32 = arith.constant 0 : i32
    %c0_i32_0 = arith.constant 0 : i32
    return %arg0, %c0_i32, %arg1 : i32, i32, i32
  }
}

module attributes {stable_mosaic.version = 11 : i64} {
  func.func @_head_kernel(%arg0: i32, %arg1: memref<2x128xf32, #tpu.memory_space<vmem>>, %arg2: memref<128x16xf32, #tpu.memory_space<vmem>>, %arg3: memref<1x16xf32, #tpu.memory_space<vmem>>, %arg4: memref<2x16xf32, #tpu.memory_space<vmem>>) attributes {dimension_semantics = [#tpu.dimension_semantics<arbitrary>], iteration_bounds = array<i64: 1>, scalar_prefetch = 0 : i64, scratch_operands = 0 : i64, tpu.core_type = #tpu.core_type<tc>, window_params = [{pipeline_mode = #tpu.pipeline_mode<synchronous>, transform_indices = @transform_0, window_bounds = array<i64: 2, 128>}, {pipeline_mode = #tpu.pipeline_mode<synchronous>, transform_indices = @transform_1, window_bounds = array<i64: 128, 16>}, {pipeline_mode = #tpu.pipeline_mode<synchronous>, transform_indices = @transform_2, window_bounds = array<i64: 1, 16>}, {pipeline_mode = #tpu.pipeline_mode<synchronous>, transform_indices = @transform_3, window_bounds = array<i64: 2, 16>}]} {
    %c0 = arith.constant 0 : index
    %c0_0 = arith.constant 0 : index
    %0 = vector.load %arg1[%c0, %c0_0] : memref<2x128xf32, #tpu.memory_space<vmem>>, vector<2x128xf32>
    %c0_1 = arith.constant 0 : index
    %c0_2 = arith.constant 0 : index
    %1 = vector.load %arg2[%c0_1, %c0_2] : memref<128x16xf32, #tpu.memory_space<vmem>>, vector<128x16xf32>
    %cst = arith.constant dense<0.000000e+00> : vector<2x16xf32>
    %2 = tpu.matmul %0, %1, %cst {dimension_numbers = #tpu.dot_dimension_numbers<[1], [0], [0], [1], [0, 0, 1, 1], [], []>} : vector<2x128xf32>, vector<128x16xf32>, vector<2x16xf32> -> vector<2x16xf32>
    %c0_3 = arith.constant 0 : index
    %c0_4 = arith.constant 0 : index
    %3 = vector.load %arg3[%c0_3, %c0_4] : memref<1x16xf32, #tpu.memory_space<vmem>>, vector<1x16xf32>
    %4 = vector.broadcast %3 : vector<1x16xf32> to vector<2x16xf32>
    %5 = arith.addf %2, %4 : vector<2x16xf32>
    %c0_5 = arith.constant 0 : index
    %c0_6 = arith.constant 0 : index
    %6 = vector.load %arg4[%c0_5, %c0_6] : memref<2x16xf32, #tpu.memory_space<vmem>>, vector<2x16xf32>
    tpu.vector_store %arg4[%c0_5, %c0_6], %5 {strides = array<i32>} : memref<2x16xf32, #tpu.memory_space<vmem>>, vector<2x16xf32>,
    return
  }
  func.func @transform_0(%arg0: i32) -> (i32, i32) {
    %c0_i32 = arith.constant 0 : i32
    %c0_i32_0 = arith.constant 0 : i32
    %c0_i32_1 = arith.constant 0 : i32
    return %c0_i32, %c0_i32_0 : i32, i32
  }
  func.func @transform_1(%arg0: i32) -> (i32, i32) {
    %c0_i32 = arith.constant 0 : i32
    %c0_i32_0 = arith.constant 0 : i32
    %c0_i32_1 = arith.constant 0 : i32
    return %c0_i32, %c0_i32_0 : i32, i32
  }
  func.func @transform_2(%arg0: i32) -> (i32, i32) {
    %c0_i32 = arith.constant 0 : i32
    %c0_i32_0 = arith.constant 0 : i32
    %c0_i32_1 = arith.constant 0 : i32
    return %c0_i32, %c0_i32_0 : i32, i32
  }
  func.func @transform_3(%arg0: i32) -> (i32, i32) {
    %c0_i32 = arith.constant 0 : i32
    %c0_i32_0 = arith.constant 0 : i32
    %c0_i32_1 = arith.constant 0 : i32
    return %c0_i32, %c0_i32_0 : i32, i32
  }
}

module attributes {stable_mosaic.version = 11 : i64} {
  func.func @_conv_block_kernel(%arg0: i32, %arg1: i32, %arg2: memref<1x2x24x512xbf16, #tpu.memory_space<vmem>>, %arg3: memref<16x1xf32, #tpu.memory_space<vmem>>, %arg4: memref<4x512x128xbf16, #tpu.memory_space<vmem>>, %arg5: memref<1x128xf32, #tpu.memory_space<vmem>>, %arg6: memref<1x1x128xf32, #tpu.memory_space<vmem>>) attributes {dimension_semantics = [#tpu.dimension_semantics<parallel>, #tpu.dimension_semantics<parallel>], iteration_bounds = array<i64: 2, 1>, scalar_prefetch = 0 : i64, scratch_operands = 0 : i64, tpu.core_type = #tpu.core_type<tc>, window_params = [{transform_indices = @transform_0, window_bounds = array<i64: 1, 2, 24, 512>}, {pipeline_mode = #tpu.pipeline_mode<synchronous>, transform_indices = @transform_1, window_bounds = array<i64: 16, 1>}, {transform_indices = @transform_2, window_bounds = array<i64: 4, 512, 128>}, {transform_indices = @transform_3, window_bounds = array<i64: 1, 128>}, {transform_indices = @transform_4, window_bounds = array<i64: 1, 1, 128>}]} {
    %cst = arith.constant 0.000000e+00 : f32
    %0 = vector.broadcast %cst : f32 to vector<16x128xf32>
    %c0 = arith.constant 0 : index
    %c0_0 = arith.constant 0 : index
    %c0_1 = arith.constant 0 : index
    %c0_2 = arith.constant 0 : index
    %1 = vector.load %arg2[%c0, %c0_0, %c0_1, %c0_2] : memref<1x2x24x512xbf16, #tpu.memory_space<vmem>>, vector<1x1x16x512xbf16>
    %2 = vector.shape_cast %1 : vector<1x1x16x512xbf16> to vector<16x512xbf16>
    %c0_3 = arith.constant 0 : index
    %c0_4 = arith.constant 0 : index
    %c0_5 = arith.constant 0 : index
    %3 = vector.load %arg4[%c0_3, %c0_4, %c0_5] : memref<4x512x128xbf16, #tpu.memory_space<vmem>>, vector<1x512x128xbf16>
    %4 = vector.shape_cast %3 : vector<1x512x128xbf16> to vector<512x128xbf16>
    %cst_6 = arith.constant dense<0.000000e+00> : vector<16x128xf32>
    %5 = tpu.matmul %2, %4, %cst_6 {dimension_numbers = #tpu.dot_dimension_numbers<[1], [0], [0], [1], [0, 0, 1, 1], [], []>} : vector<16x512xbf16>, vector<512x128xbf16>, vector<16x128xf32> -> vector<16x128xf32>
    %6 = arith.addf %0, %5 : vector<16x128xf32>
    %c0_7 = arith.constant 0 : index
    %c1 = arith.constant 1 : index
    %c0_8 = arith.constant 0 : index
    %c0_9 = arith.constant 0 : index
    %7 = vector.load %arg2[%c0_7, %c1, %c0_8, %c0_9] : memref<1x2x24x512xbf16, #tpu.memory_space<vmem>>, vector<1x1x16x512xbf16>
    %8 = vector.shape_cast %7 : vector<1x1x16x512xbf16> to vector<16x512xbf16>
    %c1_10 = arith.constant 1 : index
    %c0_11 = arith.constant 0 : index
    %c0_12 = arith.constant 0 : index
    %9 = vector.load %arg4[%c1_10, %c0_11, %c0_12] : memref<4x512x128xbf16, #tpu.memory_space<vmem>>, vector<1x512x128xbf16>
    %10 = vector.shape_cast %9 : vector<1x512x128xbf16> to vector<512x128xbf16>
    %cst_13 = arith.constant dense<0.000000e+00> : vector<16x128xf32>
    %11 = tpu.matmul %8, %10, %cst_13 {dimension_numbers = #tpu.dot_dimension_numbers<[1], [0], [0], [1], [0, 0, 1, 1], [], []>} : vector<16x512xbf16>, vector<512x128xbf16>, vector<16x128xf32> -> vector<16x128xf32>
    %12 = arith.addf %6, %11 : vector<16x128xf32>
    %c0_14 = arith.constant 0 : index
    %c0_15 = arith.constant 0 : index
    %c8 = arith.constant 8 : index
    %c0_16 = arith.constant 0 : index
    %13 = vector.load %arg2[%c0_14, %c0_15, %c8, %c0_16] : memref<1x2x24x512xbf16, #tpu.memory_space<vmem>>, vector<1x1x16x512xbf16>
    %14 = vector.shape_cast %13 : vector<1x1x16x512xbf16> to vector<16x512xbf16>
    %c2 = arith.constant 2 : index
    %c0_17 = arith.constant 0 : index
    %c0_18 = arith.constant 0 : index
    %15 = vector.load %arg4[%c2, %c0_17, %c0_18] : memref<4x512x128xbf16, #tpu.memory_space<vmem>>, vector<1x512x128xbf16>
    %16 = vector.shape_cast %15 : vector<1x512x128xbf16> to vector<512x128xbf16>
    %cst_19 = arith.constant dense<0.000000e+00> : vector<16x128xf32>
    %17 = tpu.matmul %14, %16, %cst_19 {dimension_numbers = #tpu.dot_dimension_numbers<[1], [0], [0], [1], [0, 0, 1, 1], [], []>} : vector<16x512xbf16>, vector<512x128xbf16>, vector<16x128xf32> -> vector<16x128xf32>
    %18 = arith.addf %12, %17 : vector<16x128xf32>
    %c0_20 = arith.constant 0 : index
    %c1_21 = arith.constant 1 : index
    %c8_22 = arith.constant 8 : index
    %c0_23 = arith.constant 0 : index
    %19 = vector.load %arg2[%c0_20, %c1_21, %c8_22, %c0_23] : memref<1x2x24x512xbf16, #tpu.memory_space<vmem>>, vector<1x1x16x512xbf16>
    %20 = vector.shape_cast %19 : vector<1x1x16x512xbf16> to vector<16x512xbf16>
    %c3 = arith.constant 3 : index
    %c0_24 = arith.constant 0 : index
    %c0_25 = arith.constant 0 : index
    %21 = vector.load %arg4[%c3, %c0_24, %c0_25] : memref<4x512x128xbf16, #tpu.memory_space<vmem>>, vector<1x512x128xbf16>
    %22 = vector.shape_cast %21 : vector<1x512x128xbf16> to vector<512x128xbf16>
    %cst_26 = arith.constant dense<0.000000e+00> : vector<16x128xf32>
    %23 = tpu.matmul %20, %22, %cst_26 {dimension_numbers = #tpu.dot_dimension_numbers<[1], [0], [0], [1], [0, 0, 1, 1], [], []>} : vector<16x512xbf16>, vector<512x128xbf16>, vector<16x128xf32> -> vector<16x128xf32>
    %24 = arith.addf %18, %23 : vector<16x128xf32>
    %c0_27 = arith.constant 0 : index
    %c0_28 = arith.constant 0 : index
    %25 = vector.load %arg5[%c0_27, %c0_28] : memref<1x128xf32, #tpu.memory_space<vmem>>, vector<1x128xf32>
    %26 = vector.broadcast %25 : vector<1x128xf32> to vector<16x128xf32>
    %27 = arith.addf %24, %26 : vector<16x128xf32>
    %c0_29 = arith.constant 0 : index
    %c0_30 = arith.constant 0 : index
    %28 = vector.load %arg3[%c0_29, %c0_30] : memref<16x1xf32, #tpu.memory_space<vmem>>, vector<16x1xf32>
    %29 = vector.broadcast %28 : vector<16x1xf32> to vector<16x128xf32>
    %30 = arith.mulf %27, %29 : vector<16x128xf32>
    %cst_31 = arith.constant dense<0.000000e+00> : vector<128xf32>
    %31 = vector.multi_reduction <add>, %30, %cst_31 [0] : vector<16x128xf32> to vector<128xf32>
    %32 = vector.shape_cast %31 : vector<128xf32> to vector<1x128xf32>
    %cst_32 = arith.constant 2.500000e-01 : f32
    %33 = vector.broadcast %cst_32 : f32 to vector<1x128xf32>
    %34 = arith.mulf %32, %33 : vector<1x128xf32>
    %35 = arith.mulf %30, %27 : vector<16x128xf32>
    %cst_33 = arith.constant dense<0.000000e+00> : vector<128xf32>
    %36 = vector.multi_reduction <add>, %35, %cst_33 [0] : vector<16x128xf32> to vector<128xf32>
    %37 = vector.shape_cast %36 : vector<128xf32> to vector<1x128xf32>
    %cst_34 = arith.constant 2.500000e-01 : f32
    %38 = vector.broadcast %cst_34 : f32 to vector<1x128xf32>
    %39 = arith.mulf %37, %38 : vector<1x128xf32>
    %40 = arith.mulf %34, %34 : vector<1x128xf32>
    %41 = arith.subf %39, %40 : vector<1x128xf32>
    %cst_35 = arith.constant 0.000000e+00 : f32
    %42 = vector.broadcast %cst_35 : f32 to vector<1x128xf32>
    %43 = arith.maximumf %41, %42 : vector<1x128xf32>
    %44 = vector.broadcast %34 : vector<1x128xf32> to vector<16x128xf32>
    %45 = arith.subf %27, %44 : vector<16x128xf32>
    %cst_36 = arith.constant 9.99999974E-6 : f32
    %46 = vector.broadcast %cst_36 : f32 to vector<1x128xf32>
    %47 = arith.addf %43, %46 : vector<1x128xf32>
    %48 = math.rsqrt %47 : vector<1x128xf32>
    %49 = vector.broadcast %48 : vector<1x128xf32> to vector<16x128xf32>
    %50 = arith.mulf %45, %49 : vector<16x128xf32>
    %cst_37 = arith.constant 0.000000e+00 : f32
    %51 = vector.broadcast %cst_37 : f32 to vector<16x128xf32>
    %52 = arith.cmpf oge, %50, %51 : vector<16x128xf32>
    %cst_38 = arith.constant 2.000000e-01 : f32
    %53 = vector.broadcast %cst_38 : f32 to vector<16x128xf32>
    %54 = arith.mulf %53, %50 : vector<16x128xf32>
    %55 = arith.select %52, %50, %54 : vector<16x128xi1>, vector<16x128xf32>
    %c0_39 = arith.constant 0 : index
    %c0_40 = arith.constant 0 : index
    %56 = vector.load %arg3[%c0_39, %c0_40] : memref<16x1xf32, #tpu.memory_space<vmem>>, vector<16x1xf32>
    %57 = vector.broadcast %56 : vector<16x1xf32> to vector<16x128xf32>
    %58 = arith.mulf %55, %57 : vector<16x128xf32>
    %cst_41 = arith.constant dense<0.000000e+00> : vector<128xf32>
    %59 = vector.multi_reduction <add>, %58, %cst_41 [0] : vector<16x128xf32> to vector<128xf32>
    %60 = vector.shape_cast %59 : vector<128xf32> to vector<1x128xf32>
    %cst_42 = arith.constant 2.500000e-01 : f32
    %61 = vector.broadcast %cst_42 : f32 to vector<1x128xf32>
    %62 = arith.mulf %60, %61 : vector<1x128xf32>
    %c0_43 = arith.constant 0 : index
    %c0_44 = arith.constant 0 : index
    %c0_45 = arith.constant 0 : index
    %63 = vector.load %arg6[%c0_43, %c0_44, %c0_45] : memref<1x1x128xf32, #tpu.memory_space<vmem>>, vector<1x1x128xf32>
    %64 = vector.shape_cast %63 : vector<1x1x128xf32> to vector<1x128xf32>
    %65 = vector.shape_cast %62 : vector<1x128xf32> to vector<1x1x128xf32>
    tpu.vector_store %arg6[%c0_43, %c0_44, %c0_45], %65 {strides = array<i32>} : memref<1x1x128xf32, #tpu.memory_space<vmem>>, vector<1x1x128xf32>,
    return
  }
  func.func @transform_0(%arg0: i32, %arg1: i32) -> (i32, i32, i32, i32) {
    %c0_i32 = arith.constant 0 : i32
    %c0_i32_0 = arith.constant 0 : i32
    %c0_i32_1 = arith.constant 0 : i32
    %c0_i32_2 = arith.constant 0 : i32
    return %arg0, %c0_i32, %c0_i32_0, %c0_i32_1 : i32, i32, i32, i32
  }
  func.func @transform_1(%arg0: i32, %arg1: i32) -> (i32, i32) {
    %c0_i32 = arith.constant 0 : i32
    %c0_i32_0 = arith.constant 0 : i32
    %c0_i32_1 = arith.constant 0 : i32
    return %c0_i32, %c0_i32_0 : i32, i32
  }
  func.func @transform_2(%arg0: i32, %arg1: i32) -> (i32, i32, i32) {
    %c0_i32 = arith.constant 0 : i32
    %c0_i32_0 = arith.constant 0 : i32
    %c0_i32_1 = arith.constant 0 : i32
    return %c0_i32, %c0_i32_0, %arg1 : i32, i32, i32
  }
  func.func @transform_3(%arg0: i32, %arg1: i32) -> (i32, i32) {
    %c0_i32 = arith.constant 0 : i32
    %c0_i32_0 = arith.constant 0 : i32
    return %c0_i32, %arg1 : i32, i32
  }
  func.func @transform_4(%arg0: i32, %arg1: i32) -> (i32, i32, i32) {
    %c0_i32 = arith.constant 0 : i32
    %c0_i32_0 = arith.constant 0 : i32
    return %arg0, %c0_i32, %arg1 : i32, i32, i32
  }
}

</mosaic_0001>

<bundles_post_ra>
// kernel: tile.18
= control target key start
LH: loop header
LB: loop body
LE: loop exit
PB: predicated region body
PF: predicated region fallthrough
CT: control target
= control target key end

     0   :  { %s22_s0 = inlined_call_operand.vmem [shape: f32[8], index: 0, kind: input, shape index: {}]   ;;  %s23_s1 = inlined_call_operand.vmem [shape: f32[8,8], index: 1, kind: output, shape index: {}]  }
   0x1   :  { %v4_v0 = vld [vmem:[%s22_s0] ss:$0 sm:$0xff] }
   0x2   :  { %5 = vst [vmem:[%s23_s1] sm:$0xff] %v4_v0 }

// kernel: tile.0
= control target key start
LH: loop header
LB: loop body
LE: loop exit
PB: predicated region body
PF: predicated region fallthrough
CT: control target
= control target key end

     0   :  { %vm3_vm0 = vcmask 7168   ;;  %s84_s8 = smov 125   ;;  %s85_s13 = smov 123   ;;  %s167_s0 = inlined_call_operand.vmem [shape: f32[8,8], index: 0, kind: input, shape index: {}]   ;;  %s168_s1 = inlined_call_operand.vmem [shape: f32[64,1], index: 1, kind: output, shape index: {}]  }
   0x1   :  { %v6_v0 = vld [vmem:[%s167_s0] sm:$0xff]   ;;  %s83_s0 = smov 127   ;;  %s86_s14 = smov 126  }
   0x2   :  { %7 = vrot.lane.b32.xlu0 %v6_v0, %s83_s0  ;;  %23 = vrot.lane.b32.xlu1 %v6_v0, %s84_s8  ;;  %4 = vst.msk [vmem:[%s168_s1] ss:$8 sm:$0xf] %vm3_vm0, %v6_v0   ;;  %s87_s15 = smov 124   ;;  %s88_s16 = smov 122  }
   0x3   :  { %5 = vst.msk [vmem:[%s168_s1] ss:$8 sm:$0xf0] %vm3_vm0, %v6_v0   ;;  %39 = vrot.lane.b32.xlu2 %v6_v0, %s85_s13  ;;  %s89_s17 = smov 121  }
   0xa   :  { %15 = vrot.lane.b32.xlu0 %v6_v0, %s86_s14  ;;  %31 = vrot.lane.b32.xlu1 %v6_v0, %s87_s15 }
   0xb   :  { %47 = vrot.lane.b32.xlu2 %v6_v0, %s88_s16 }
  0x12   :  { %55 = vrot.lane.b32.xlu0 %v6_v0, %s89_s17 }
  0x5d   :  { %v40_v1 = vpop.permute.xlu2 %39  }
  0x5e   :  { %70 = vst.msk [vmem:[%s168_s1 + $0x5] ss:$8 sm:$0xf] %vm3_vm0, %v40_v1  }
  0x5f   :  { %71 = vst.msk [vmem:[%s168_s1 + $0x5] ss:$8 sm:$0xf0] %vm3_vm0, %v40_v1  }
  0x65   :  { %v48_v2 = vpop.permute.xlu2 %47  }
  0x66   :  { %72 = vst.msk [vmem:[%s168_s1 + $0x6] ss:$8 sm:$0xf] %vm3_vm0, %v48_v2  }
  0x67   :  { %73 = vst.msk [vmem:[%s168_s1 + $0x6] ss:$8 sm:$0xf0] %vm3_vm0, %v48_v2  }
  0x74   :  { %v8_v3 = vpop.permute.xlu0 %7   ;;  %v24_v4 = vpop.permute.xlu1 %23  }
  0x75   :  { %62 = vst.msk [vmem:[%s168_s1 + $0x1] ss:$8 sm:$0xf] %vm3_vm0, %v8_v3  }
  0x76   :  { %63 = vst.msk [vmem:[%s168_s1 + $0x1] ss:$8 sm:$0xf0] %vm3_vm0, %v8_v3  }
  0x77   :  { %66 = vst.msk [vmem:[%s168_s1 + $0x3] ss:$8 sm:$0xf] %vm3_vm0, %v24_v4  }
  0x78   :  { %67 = vst.msk [vmem:[%s168_s1 + $0x3] ss:$8 sm:$0xf0] %vm3_vm0, %v24_v4  }
  0x7c   :  { %v16_v5 = vpop.permute.xlu0 %15   ;;  %v32_v6 = vpop.permute.xlu1 %31  }
  0x7d   :  { %64 = vst.msk [vmem:[%s168_s1 + $0x2] ss:$8 sm:$0xf] %vm3_vm0, %v16_v5  }
  0x7e   :  { %65 = vst.msk [vmem:[%s168_s1 + $0x2] ss:$8 sm:$0xf0] %vm3_vm0, %v16_v5  }
  0x7f   :  { %68 = vst.msk [vmem:[%s168_s1 + $0x4] ss:$8 sm:$0xf] %vm3_vm0, %v32_v6  }
  0x80   :  { %69 = vst.msk [vmem:[%s168_s1 + $0x4] ss:$8 sm:$0xf0] %vm3_vm0, %v32_v6  }
  0x84   :  { %v56_v7 = vpop.permute.xlu0 %55  }
  0x85   :  { %74 = vst.msk [vmem:[%s168_s1 + $0x7] ss:$8 sm:$0xf] %vm3_vm0, %v56_v7  }
  0x86   :  { %75 = vst.msk [vmem:[%s168_s1 + $0x7] ss:$8 sm:$0xf0] %vm3_vm0, %v56_v7  }

// kernel: tile.23
= control target key start
LH: loop header
LB: loop body
LE: loop exit
PB: predicated region body
PF: predicated region fallthrough
CT: control target
= control target key end

     0   :  { %s22_s0 = inlined_call_operand.vmem [shape: f32[8], index: 0, kind: input, shape index: {}]   ;;  %s23_s1 = inlined_call_operand.vmem [shape: f32[4,8], index: 1, kind: output, shape index: {}]  }
   0x1   :  { %v4_v0 = vld [vmem:[%s22_s0] ss:$0 sm:$0xff] }
   0x2   :  { %5 = vst [vmem:[%s23_s1] sm:$0xf] %v4_v0 }

// kernel: tile.1
= control target key start
LH: loop header
LB: loop body
LE: loop exit
PB: predicated region body
PF: predicated region fallthrough
CT: control target
= control target key end

     0   :  { %s66_s8 = smov 125   ;;  %s67_s9 = smov 123   ;;  %vm7_vm0 = vcmask 7168   ;;  %s117_s0 = inlined_call_operand.vmem [shape: f32[4,8], index: 0, kind: input, shape index: {}]   ;;  %s118_s1 = inlined_call_operand.vmem [shape: f32[32,1], index: 1, kind: output, shape index: {}]  }
   0x1   :  { %v4_v0 = vld [vmem:[%s117_s0] sm:$0xf]  ;;  %s65_s0 = smov 127   ;;  %s68_s10 = smov 126  }
   0x2   :  { %5 = vst [vmem:[#allocation0] sm:$0xf] %v4_v0  ;;  %s69_s11 = smov 124   ;;  %s70_s12 = smov 122  }
   0x3   :  { %s71_s13 = smov 121  }
   0x9   :  { %v9_v1 = vld [vmem:[#allocation0] sm:$0xf]  }
   0xa   :  { %v21_v2 = vld [vmem:[#allocation0] sm:$0xf]   ;;  %10 = vrot.lane.b32.xlu0 %v9_v1, %s65_s0 }
   0xb   :  { %22 = vrot.lane.b32.xlu1 %v21_v2, %s66_s8  ;;  %v33_v3 = vld [vmem:[#allocation0] sm:$0xf]  }
   0xc   :  { %34 = vrot.lane.b32.xlu2 %v33_v3, %s67_s9  ;;  %v15_v4 = vld [vmem:[#allocation0] sm:$0xf]  }
   0xd   :  { %v27_v5 = vld [vmem:[#allocation0] sm:$0xf]  }
   0xe   :  { %v39_v6 = vld [vmem:[#allocation0] sm:$0xf]  }
   0xf   :  { %v45_v7 = vld [vmem:[#allocation0] sm:$0xf]  }
  0x10   :  { %v6_v8 = vld [vmem:[#allocation0] sm:$0xf]  }
  0x11   :  { %8 = vst.msk [vmem:[%s118_s1] ss:$8 sm:$0xf] %vm7_vm0, %v6_v8  }
  0x12   :  { %16 = vrot.lane.b32.xlu0 %v15_v4, %s68_s10 }
  0x13   :  { %28 = vrot.lane.b32.xlu1 %v27_v5, %s69_s11 }
  0x14   :  { %40 = vrot.lane.b32.xlu2 %v39_v6, %s70_s12 }
  0x1a   :  { %46 = vrot.lane.b32.xlu0 %v45_v7, %s71_s13 }
  0x66   :  { %v35_v9 = vpop.permute.xlu2 %34  }
  0x67   :  { %55 = vst.msk [vmem:[%s118_s1 + $0x5] ss:$8 sm:$0xf] %vm7_vm0, %v35_v9  }
  0x6e   :  { %v41_v10 = vpop.permute.xlu2 %40  }
  0x6f   :  { %56 = vst.msk [vmem:[%s118_s1 + $0x6] ss:$8 sm:$0xf] %vm7_vm0, %v41_v10  }
  0x7c   :  { %v11_v11 = vpop.permute.xlu0 %10  }
  0x7d   :  { %v23_v12 = vpop.permute.xlu1 %22   ;;  %51 = vst.msk [vmem:[%s118_s1 + $0x1] ss:$8 sm:$0xf] %vm7_vm0, %v11_v11  }
  0x7e   :  { %53 = vst.msk [vmem:[%s118_s1 + $0x3] ss:$8 sm:$0xf] %vm7_vm0, %v23_v12  }
  0x84   :  { %v17_v13 = vpop.permute.xlu0 %16  }
  0x85   :  { %v29_v14 = vpop.permute.xlu1 %28   ;;  %52 = vst.msk [vmem:[%s118_s1 + $0x2] ss:$8 sm:$0xf] %vm7_vm0, %v17_v13  }
  0x86   :  { %54 = vst.msk [vmem:[%s118_s1 + $0x4] ss:$8 sm:$0xf] %vm7_vm0, %v29_v14  }
  0x8c   :  { %v47_v15 = vpop.permute.xlu0 %46  }
  0x8d   :  { %57 = vst.msk [vmem:[%s118_s1 + $0x7] ss:$8 sm:$0xf] %vm7_vm0, %v47_v15  }

// kernel: evaluator_forward.4
= control target key start
LH: loop header
LB: loop body
LE: loop exit
PB: predicated region body
PF: predicated region fallthrough
CT: control target
= control target key end

     0   :  { %s2065_s15 = smov 0   ;;  %s2067_s16 = smov 0   ;;  %s2422_s0 = inlined_call_operand.vmem [shape: bf16[2,2,72,256], index: 0, kind: input, shape index: {}]   ;;  %s2423_s1 = inlined_call_operand.vmem [shape: f32[64,1], index: 1, kind: input, shape index: {}]   ;;  %s2424_s2 = inlined_call_operand.vmem [shape: bf16[4,256,128], index: 2, kind: input, shape index: {}]   ;;  %s2425_s3 = inlined_call_operand.vmem [shape: f32[1,128], index: 3, kind: input, shape index: {}]   ;;  %s2426_s4 = inlined_call_operand.vmem [shape: bf16[2,64,128], index: 4, kind: output, shape index: {}]  }
   0x1   :  { %s2069_s17 = smov 0  }
   0x2 LB: > { %s26_s1 = sadd.s32 1, %s2034_s16  ;;  %p1368_p0 = scmp.ge.s32.totalorder %s2038_s17, 1  ;;  %s2038_s17 = sphi %s2069_s17, %s14_s17   ;;  %s2034_s16 = sphi %s2067_s16, %s2428_s16   ;;  %s2030_s15 = sphi %s2065_s15, %s2427_s15  }
   0x3   : > { %p28_p1 = scmp.ge.s32.totalorder %s26_s1, 2  ;;  %p193_p2 = scmp.lt.s32.totalorder %s2038_s17, 3 }
   0x5   : > { %s2430_s1 = smov (%p28_p1, %s26_s1), 0  ;;  %p194_p3 = pnand %p1368_p0, %p193_p2 }
   0x6   : > { %p229_p4 = scmp.lt.s32.totalorder (!%p194_p3), %s2030_s15, 1 }
   0x7   : > { %197 = sbr.rel (%p194_p3) target bundleno = 311 (0x137), region = 36 }
   0xc   : > { %v1910_v0 = vld [vmem:[%s2424_s2 + $0xb8] sm:$0xff]  ;;  %v1909_v4 = vld [vmem:[%s2424_s2 + $0xb0] sm:$0xff]  ;;  %v1908_v8 = vld [vmem:[%s2424_s2 + $0xa8] sm:$0xff]  ;;  %s2432_s15 = smov (!%p229_p4, %s2030_s15), 1 }
   0xd   : > { %v1918_v1 = vld [vmem:[%s2424_s2 + $0xf8] sm:$0xff]  ;;  %467 = vmatpush.bf16.msra.mxu0 %v1910_v0  ;;  %v1917_v5 = vld [vmem:[%s2424_s2 + $0xf0] sm:$0xff]  ;;  %v1916_v9 = vld [vmem:[%s2424_s2 + $0xe8] sm:$0xff]  ;;  %s1990_s13 = smul.u32 144, %s2432_s15 }
   0xe   : > { %v1886_v2 = vld [vmem:[%s2424_s2 + $0x38] sm:$0xff]  ;;  %496 = vmatpush.bf16.msra.mxu1 %v1918_v1  ;;  %v1885_v6 = vld [vmem:[%s2424_s2 + $0x30] sm:$0xff]  ;;  %v1884_v10 = vld [vmem:[%s2424_s2 + $0x28] sm:$0xff] }
   0xf   : > { %v1894_v3 = vld [vmem:[%s2424_s2 + $0x78] sm:$0xff]  ;;  %661 = vmatpush.bf16.msra.mxu2 %v1886_v2  ;;  %v1893_v7 = vld [vmem:[%s2424_s2 + $0x70] sm:$0xff]  ;;  %v1892_v11 = vld [vmem:[%s2424_s2 + $0x68] sm:$0xff]  ;;  %s2171_s27 = scalar_lea.vmem %s2422_s0, %s1990_s13  ;;  %s1870_s13 = sshll.u32 %s2432_s15, 5 }
  0x10   : > { %690 = vmatpush.bf16.msra.mxu3 %v1894_v3  ;;  %v1907_v12 = vld [vmem:[%s2424_s2 + $0xa0] sm:$0xff]  ;;  %v1906_v16 = vld [vmem:[%s2424_s2 + $0x98] sm:$0xff]  ;;  %v1905_v20 = vld [vmem:[%s2424_s2 + $0x90] sm:$0xff]  ;;  %s2388_s19 = scalar_lea.vmem %s2426_s4, %s1870_s13 }
  0x11   : > { %468 = vmatpush.bf16.msra.mxu0 %v1909_v4  ;;  %v1915_v13 = vld [vmem:[%s2424_s2 + $0xe0] sm:$0xff]  ;;  %v1914_v17 = vld [vmem:[%s2424_s2 + $0xd8] sm:$0xff]  ;;  %v1913_v21 = vld [vmem:[%s2424_s2 + $0xd0] sm:$0xff] }
  0x12   : > { %497 = vmatpush.bf16.msra.mxu1 %v1917_v5  ;;  %v1883_v14 = vld [vmem:[%s2424_s2 + $0x20] sm:$0xff]  ;;  %v1882_v18 = vld [vmem:[%s2424_s2 + $0x18] sm:$0xff]  ;;  %v1881_v22 = vld [vmem:[%s2424_s2 + $0x10] sm:$0xff] }
  0x13   : > { %662 = vmatpush.bf16.msra.mxu2 %v1885_v6  ;;  %v1891_v15 = vld [vmem:[%s2424_s2 + $0x60] sm:$0xff]  ;;  %v1890_v19 = vld [vmem:[%s2424_s2 + $0x58] sm:$0xff]  ;;  %v1889_v23 = vld [vmem:[%s2424_s2 + $0x50] sm:$0xff] }
  0x14   : > { %691 = vmatpush.bf16.msra.mxu3 %v1893_v7  ;;  %v1904_v24 = vld [vmem:[%s2424_s2 + $0x88] sm:$0xff]  ;;  %v1903_v28 = vld [vmem:[%s2424_s2 + $0x80] sm:$0xff]  ;;  %v1896_v33 = vld [vmem:[%s2171_s27 + $0x4c] sm:$0xf0] }
  0x15   : > { %469 = vmatpush.bf16.msra.mxu0 %v1908_v8  ;;  %v1912_v25 = vld [vmem:[%s2424_s2 + $0xc8] sm:$0xff]  ;;  %v1911_v29 = vld [vmem:[%s2424_s2 + $0xc0] sm:$0xff]  ;;  %v1416_v35 = vld [vmem:[%s2171_s27 + $0x50] sm:$0xf0] }
  0x16   : > { %498 = vmatpush.bf16.msra.mxu1 %v1916_v9  ;;  %v1880_v26 = vld [vmem:[%s2424_s2 + $0x8] sm:$0xff]  ;;  %v1879_v30 = vld [vmem:[%s2424_s2] sm:$0xff]  ;;  %v1958_v40 = vld [vmem:[%s2424_s2 + $0x1b8] sm:$0xff] }
  0x17   : > { %663 = vmatpush.bf16.msra.mxu2 %v1884_v10  ;;  %v1888_v27 = vld [vmem:[%s2424_s2 + $0x48] sm:$0xff]  ;;  %v1887_v31 = vld [vmem:[%s2424_s2 + $0x40] sm:$0xff]  ;;  %v1966_v41 = vld [vmem:[%s2424_s2 + $0x1f8] sm:$0xff] }
  0x18   : > { %692 = vmatpush.bf16.msra.mxu3 %v1892_v11  ;;  %v1414_v32 = vld [vmem:[%s2171_s27 + $0x48] sm:$0xf]  ;;  %v1895_v34 = vld [vmem:[%s2171_s27 + $0x4c] sm:$0xf]  ;;  %v1510_v36 = vld [vmem:[%s2171_s27] sm:$0xf] }
  0x19   : > { %470 = vmatpush.bf16.msra.mxu0 %v1907_v12  ;;  %v1872_v37 = vld [vmem:[%s2171_s27 + $0x4] sm:$0xf0]  ;;  %v1871_v38 = vld [vmem:[%s2171_s27 + $0x4] sm:$0xf]  ;;  %v1512_v39 = vld [vmem:[%s2171_s27 + $0x8] sm:$0xf0]  ;;  %v1415_v42 = vor.u32 %v1896_v33, %v1414_v32  ;;  %v1419_v43 = vor.u32 %v1895_v34, %v1416_v35 }
  0x1a   : > { %499 = vmatpush.bf16.msra.mxu1 %v1915_v13  ;;  %v1511_v44 = vor.u32 %v1872_v37, %v1510_v36  ;;  %v1515_v45 = vor.u32 %v1871_v38, %v1512_v39  ;;  %v1934_v46 = vld [vmem:[%s2424_s2 + $0x138] sm:$0xff]  ;;  %v1957_v48 = vld [vmem:[%s2424_s2 + $0x1b0] sm:$0xff]  ;;  %v1956_v52 = vld [vmem:[%s2424_s2 + $0x1a8] sm:$0xff] }
  0x1b   : > { %664 = vmatpush.bf16.msra.mxu2 %v1883_v14  ;;  %v1942_v47 = vld [vmem:[%s2424_s2 + $0x178] sm:$0xff]  ;;  %v1965_v49 = vld [vmem:[%s2424_s2 + $0x1f0] sm:$0xff]  ;;  %v1964_v53 = vld [vmem:[%s2424_s2 + $0x1e8] sm:$0xff] }
  0x1c   : > { %693 = vmatpush.bf16.msra.mxu3 %v1891_v15  ;;  %v1933_v50 = vld [vmem:[%s2424_s2 + $0x130] sm:$0xff]  ;;  %v1932_v54 = vld [vmem:[%s2424_s2 + $0x128] sm:$0xff]  ;;  %v1422_v56 = vld [vmem:[%s2171_s27 + $0x58] sm:$0xf] }
  0x1d   : > { %471 = vmatpush.bf16.msra.mxu0 %v1906_v16  ;;  %v1941_v51 = vld [vmem:[%s2424_s2 + $0x170] sm:$0xff]  ;;  %v1940_v55 = vld [vmem:[%s2424_s2 + $0x168] sm:$0xff]  ;;  %v1955_v57 = vld [vmem:[%s2424_s2 + $0x1a0] sm:$0xff] }
  0x1e   : > { %500 = vmatpush.bf16.msra.mxu1 %v1914_v17  ;;  %v1963_v58 = vld [vmem:[%s2424_s2 + $0x1e0] sm:$0xff]  ;;  %v1897_v60 = vld [vmem:[%s2171_s27 + $0x5c] sm:$0xf]  ;;  %v1518_v62 = vld [vmem:[%s2171_s27 + $0x10] sm:$0xf] }
  0x1f   : > { %665 = vmatpush.bf16.msra.mxu2 %v1882_v18  ;;  %v1898_v59 = vld [vmem:[%s2171_s27 + $0x5c] sm:$0xf0]  ;;  %v1424_v61 = vld [vmem:[%s2171_s27 + $0x60] sm:$0xf0]  ;;  %v1874_v63 = vld [vmem:[%s2171_s27 + $0x14] sm:$0xf0] }
  0x20   : > { %694 = vmatpush.bf16.msra.mxu3 %v1890_v19  ;;  %v1873_v0 = vld [vmem:[%s2171_s27 + $0x14] sm:$0xf]  ;;  %v1520_v1 = vld [vmem:[%s2171_s27 + $0x18] sm:$0xf0]  ;;  %v1931_v2 = vld [vmem:[%s2424_s2 + $0x120] sm:$0xff]  ;;  %v1423_v6 = vor.u32 %v1898_v59, %v1422_v56  ;;  %v1427_v7 = vor.u32 %v1897_v60, %v1424_v61  ;;  %v1519_v8 = vor.u32 %v1874_v63, %v1518_v62 }
  0x21   : > { %472 = vmatpush.bf16.msra.mxu0 %v1905_v20  ;;  %v1939_v3 = vld [vmem:[%s2424_s2 + $0x160] sm:$0xff]  ;;  %v1954_v4 = vld [vmem:[%s2424_s2 + $0x198] sm:$0xff]  ;;  %v1523_v9 = vor.u32 %v1873_v0, %v1520_v1  ;;  %v1953_v12 = vld [vmem:[%s2424_s2 + $0x190] sm:$0xff] }
  0x22   : > { %501 = vmatpush.bf16.msra.mxu1 %v1913_v21  ;;  %v1962_v5 = vld [vmem:[%s2424_s2 + $0x1d8] sm:$0xff]  ;;  %v1961_v13 = vld [vmem:[%s2424_s2 + $0x1d0] sm:$0xff]  ;;  %v1952_v16 = vld [vmem:[%s2424_s2 + $0x188] sm:$0xff] }
  0x23   : > { %666 = vmatpush.bf16.msra.mxu2 %v1881_v22  ;;  %v1930_v10 = vld [vmem:[%s2424_s2 + $0x118] sm:$0xff]  ;;  %v1929_v14 = vld [vmem:[%s2424_s2 + $0x110] sm:$0xff]  ;;  %v1960_v17 = vld [vmem:[%s2424_s2 + $0x1c8] sm:$0xff] }
  0x24   : > { %695 = vmatpush.bf16.msra.mxu3 %v1889_v23  ;;  %v1938_v11 = vld [vmem:[%s2424_s2 + $0x158] sm:$0xff]  ;;  %v1937_v15 = vld [vmem:[%s2424_s2 + $0x150] sm:$0xff]  ;;  %v1928_v18 = vld [vmem:[%s2424_s2 + $0x108] sm:$0xff] }
  0x25   : > { %473 = vmatpush.bf16.msra.mxu0 %v1904_v24  ;;  %v1936_v19 = vld [vmem:[%s2424_s2 + $0x148] sm:$0xff]  ;;  %v1951_v21 = vld [vmem:[%s2424_s2 + $0x180] sm:$0xff]  ;;  %v1900_v23 = vld [vmem:[%s2171_s27 + $0x6c] sm:$0xf0] }
  0x26   : > { %502 = vmatpush.bf16.msra.mxu1 %v1912_v25  ;;  %v1430_v20 = vld [vmem:[%s2171_s27 + $0x68] sm:$0xf]  ;;  %v1959_v22 = vld [vmem:[%s2424_s2 + $0x1c0] sm:$0xff]  ;;  %v1899_v24 = vld [vmem:[%s2171_s27 + $0x6c] sm:$0xf] }
  0x27   : > { %667 = vmatpush.bf16.msra.mxu2 %v1880_v26  ;;  %v1432_v25 = vld [vmem:[%s2171_s27 + $0x70] sm:$0xf0]  ;;  %v1526_v26 = vld [vmem:[%s2171_s27 + $0x20] sm:$0xf]  ;;  %v1431_v32 = vor.u32 %v1900_v23, %v1430_v20  ;;  %v1438_v36 = vld [vmem:[%s2171_s27 + $0x78] sm:$0xf] }
  0x28   : > { %696 = vmatpush.bf16.msra.mxu3 %v1888_v27  ;;  %v1876_v27 = vld [vmem:[%s2171_s27 + $0x24] sm:$0xf0]  ;;  %v1435_v33 = vor.u32 %v1899_v24, %v1432_v25  ;;  %v1902_v37 = vld [vmem:[%s2171_s27 + $0x7c] sm:$0xf0]  ;;  %v1901_v38 = vld [vmem:[%s2171_s27 + $0x7c] sm:$0xf] }
  0x29   : > { %474 = vmatpush.bf16.msra.mxu0 %v1903_v28  ;;  %v1875_v28 = vld [vmem:[%s2171_s27 + $0x24] sm:$0xf]  ;;  %v1527_v34 = vor.u32 %v1876_v27, %v1526_v26  ;;  %v1646_v60 = vld [vmem:[%s2171_s27 + $0x18] sm:$0xf]  ;;  %v1922_v61 = vld [vmem:[%s2171_s27 + $0x1c] sm:$0xf0] }
  0x2a   : > { %503 = vmatpush.bf16.msra.mxu1 %v1911_v29  ;;  %v1528_v29 = vld [vmem:[%s2171_s27 + $0x28] sm:$0xf0]  ;;  %v1440_v39 = vld [vmem:[%s2171_s27 + $0x80] sm:$0xf0]  ;;  %v1921_v62 = vld [vmem:[%s2171_s27 + $0x1c] sm:$0xf] }
  0x2b   : > { %668 = vmatpush.bf16.msra.mxu2 %v1879_v30  ;;  %v1927_v30 = vld [vmem:[%s2424_s2 + $0x100] sm:$0xff]  ;;  %v1531_v35 = vor.u32 %v1875_v28, %v1528_v29  ;;  %v1946_v1 = vld [vmem:[%s2171_s27 + $0x64] sm:$0xf0]  ;;  %v1662_v20 = vld [vmem:[%s2171_s27 + $0x38] sm:$0xf] }
  0x2c   : > { %697 = vmatpush.bf16.msra.mxu3 %v1887_v31  ;;  %475 = vmatmul.bf16.vlgmr.msra.gmra.mxu0 %v1415_v42  ;;  %v1935_v31 = vld [vmem:[%s2424_s2 + $0x140] sm:$0xff]  ;;  %v1877_v42 = vld [vmem:[%s2171_s27 + $0x34] sm:$0xf]  ;;  %v1950_v25 = vld [vmem:[%s2171_s27 + $0x84] sm:$0xf0] }
  0x2d   : > { %504 = vmatmul.bf16.vlgmr.msra.gmra.mxu1 %v1419_v43  ;;  %896 = vmatpush.bf16.msrb.mxu0 %v1934_v46  ;;  %v1536_v43 = vld [vmem:[%s2171_s27 + $0x38] sm:$0xf0]  ;;  %v1648_v63 = vld [vmem:[%s2171_s27 + $0x20] sm:$0xf0]  ;;  %v1782_v0 = vld [vmem:[%s2171_s27 + $0x60] sm:$0xf] }
  0x2e   : > { %669 = vmatmul.bf16.vlgmr.msra.gmra.mxu2 %v1511_v44  ;;  %925 = vmatpush.bf16.msrb.mxu1 %v1942_v47  ;;  %v1439_v44 = vor.u32 %v1902_v37, %v1438_v36  ;;  %v1539_v47 = vor.u32 %v1877_v42, %v1536_v43  ;;  %v1664_v23 = vld [vmem:[%s2171_s27 + $0x40] sm:$0xf0]  ;;  %v1798_v24 = vld [vmem:[%s2171_s27 + $0x80] sm:$0xf]  ;;  %v1800_v27 = vld [vmem:[%s2171_s27 + $0x88] sm:$0xf0] }
  0x2f   : > { %1139 = vmatpush.bf16.msrb.mxu2 %v1958_v40  ;;  %698 = vmatmul.bf16.vlgmr.msra.gmra.mxu3 %v1515_v45  ;;  %v1534_v40 = vld [vmem:[%s2171_s27 + $0x30] sm:$0xf]  ;;  %v1443_v45 = vor.u32 %v1901_v38, %v1440_v39  ;;  %v1949_v26 = vld [vmem:[%s2171_s27 + $0x84] sm:$0xf] }
  0x30   : > { %1168 = vmatpush.bf16.msrb.mxu3 %v1966_v41  ;;  %v1878_v41 = vld [vmem:[%s2171_s27 + $0x34] sm:$0xf0] }
  0x31   : > { %897 = vmatpush.bf16.msrb.mxu0 %v1933_v50  ;;  %v1535_v46 = vor.u32 %v1878_v41, %v1534_v40  ;;  %v1919_v50 = vld [vmem:[%s2171_s27 + $0xc] sm:$0xf] }
  0x32   : > { %926 = vmatpush.bf16.msrb.mxu1 %v1941_v51  ;;  %v1640_v51 = vld [vmem:[%s2171_s27 + $0x10] sm:$0xf0] }
  0x33   : > { %1140 = vmatpush.bf16.msrb.mxu2 %v1957_v48  ;;  %v1638_v48 = vld [vmem:[%s2171_s27 + $0x8] sm:$0xf] }
  0x34   : > { %1169 = vmatpush.bf16.msrb.mxu3 %v1965_v49  ;;  %v1920_v49 = vld [vmem:[%s2171_s27 + $0xc] sm:$0xf0] }
  0x35   : > { %898 = vmatpush.bf16.msrb.mxu0 %v1932_v54  ;;  %v1943_v54 = vld [vmem:[%s2171_s27 + $0x54] sm:$0xf]  ;;  %v1639_v56 = vor.u32 %v1920_v49, %v1638_v48 }
  0x36   : > { %927 = vmatpush.bf16.msrb.mxu1 %v1940_v55  ;;  %v1776_v55 = vld [vmem:[%s2171_s27 + $0x58] sm:$0xf0] }
  0x37   : > { %1141 = vmatpush.bf16.msrb.mxu2 %v1956_v52  ;;  %v1774_v52 = vld [vmem:[%s2171_s27 + $0x50] sm:$0xf]  ;;  %v1779_v59 = vor.u32 %v1943_v54, %v1776_v55 }
  0x38   : > { %1170 = vmatpush.bf16.msrb.mxu3 %v1964_v53  ;;  %v1944_v53 = vld [vmem:[%s2171_s27 + $0x54] sm:$0xf0] }
  0x39   : > { %899 = vmatpush.bf16.msrb.mxu0 %v1931_v2  ;;  %v1945_v2 = vld [vmem:[%s2171_s27 + $0x64] sm:$0xf] }
  0x3a   : > { %928 = vmatpush.bf16.msrb.mxu1 %v1939_v3  ;;  %v1784_v3 = vld [vmem:[%s2171_s27 + $0x68] sm:$0xf0] }
  0x3b   : > { %1142 = vmatpush.bf16.msrb.mxu2 %v1955_v57  ;;  %v1643_v57 = vor.u32 %v1919_v50, %v1640_v51 }
  0x3c   : > { %1171 = vmatpush.bf16.msrb.mxu3 %v1963_v58  ;;  %480 = vmatmul.bf16.gmra.mxu0 %v1423_v6  ;;  %v1775_v58 = vor.u32 %v1944_v53, %v1774_v52  ;;  %v1783_v6 = vor.u32 %v1946_v1, %v1782_v0 }
  0x3d   : > { %509 = vmatmul.bf16.gmra.mxu1 %v1427_v7  ;;  %900 = vmatpush.bf16.msrb.mxu0 %v1930_v10  ;;  %v1787_v7 = vor.u32 %v1945_v2, %v1784_v3  ;;  %v1923_v10 = vld [vmem:[%s2171_s27 + $0x2c] sm:$0xf] }
  0x3e   : > { %674 = vmatmul.bf16.gmra.mxu2 %v1519_v8  ;;  %929 = vmatpush.bf16.msrb.mxu1 %v1938_v11  ;;  %v1654_v8 = vld [vmem:[%s2171_s27 + $0x28] sm:$0xf]  ;;  %v1656_v11 = vld [vmem:[%s2171_s27 + $0x30] sm:$0xf0] }
  0x3f   : > { %1143 = vmatpush.bf16.msrb.mxu2 %v1954_v4  ;;  %703 = vmatmul.bf16.gmra.mxu3 %v1523_v9  ;;  %v1647_v4 = vor.u32 %v1922_v61, %v1646_v60  ;;  %v1924_v9 = vld [vmem:[%s2171_s27 + $0x2c] sm:$0xf0] }
  0x40   : > { %1172 = vmatpush.bf16.msrb.mxu3 %v1962_v5  ;;  %v1651_v5 = vor.u32 %v1921_v62, %v1648_v63 }
  0x41   : > { %901 = vmatpush.bf16.msrb.mxu0 %v1929_v14  ;;  %v1947_v14 = vld [vmem:[%s2171_s27 + $0x74] sm:$0xf] }
  0x42   : > { %930 = vmatpush.bf16.msrb.mxu1 %v1937_v15  ;;  %v1792_v15 = vld [vmem:[%s2171_s27 + $0x78] sm:$0xf0] }
  0x43   : > { %1144 = vmatpush.bf16.msrb.mxu2 %v1953_v12  ;;  %v1790_v12 = vld [vmem:[%s2171_s27 + $0x70] sm:$0xf] }
  0x44   : > { %1173 = vmatpush.bf16.msrb.mxu3 %v1961_v13  ;;  %v1948_v13 = vld [vmem:[%s2171_s27 + $0x74] sm:$0xf0] }
  0x45   : > { %902 = vmatpush.bf16.msrb.mxu0 %v1928_v18  ;;  %v1791_v18 = vor.u32 %v1948_v13, %v1790_v12 }
  0x46   : > { %931 = vmatpush.bf16.msrb.mxu1 %v1936_v19  ;;  %v1795_v19 = vor.u32 %v1947_v14, %v1792_v15 }
  0x47   : > { %1145 = vmatpush.bf16.msrb.mxu2 %v1952_v16  ;;  %v1655_v16 = vor.u32 %v1924_v9, %v1654_v8 }
  0x48   : > { %1174 = vmatpush.bf16.msrb.mxu3 %v1960_v17  ;;  %v1659_v17 = vor.u32 %v1923_v10, %v1656_v11 }
  0x49   : > { %903 = vmatpush.bf16.msrb.mxu0 %v1927_v30  ;;  %v1799_v30 = vor.u32 %v1950_v25, %v1798_v24  ;;  %v2380_v24 = vld [vmem:[%s2425_s3] ss:$0 sm:$0xff] }
  0x4a   : > { %932 = vmatpush.bf16.msrb.mxu1 %v1935_v31  ;;  %v1803_v31 = vor.u32 %v1949_v26, %v1800_v27 }
  0x4b   : > { %1146 = vmatpush.bf16.msrb.mxu2 %v1951_v21  ;;  %v1926_v21 = vld [vmem:[%s2171_s27 + $0x3c] sm:$0xf0] }
  0x4c   : > { %1175 = vmatpush.bf16.msrb.mxu3 %v1959_v22  ;;  %485 = vmatmul.bf16.gmra.mxu0 %v1431_v32  ;;  %v1925_v22 = vld [vmem:[%s2171_s27 + $0x3c] sm:$0xf]  ;;  %v1663_v28 = vor.u32 %v1926_v21, %v1662_v20 }
  0x4d   : > { %514 = vmatmul.bf16.gmra.mxu1 %v1435_v33  ;;  %v1667_v29 = vor.u32 %v1925_v22, %v1664_v23 }
  0x4e   : > { %679 = vmatmul.bf16.gmra.mxu2 %v1527_v34 }
  0x4f   : > { %708 = vmatmul.bf16.gmra.mxu3 %v1531_v35 }
  0x5c   : > { %490 = vmatmul.bf16.gmra.mxu0 %v1439_v44 }
  0x5d   : > { %519 = vmatmul.bf16.gmra.mxu1 %v1443_v45 }
  0x5e   : > { %684 = vmatmul.bf16.gmra.mxu2 %v1535_v46 }
  0x5f   : > { %713 = vmatmul.bf16.gmra.mxu3 %v1539_v47 }
  0x6c   : > { %904 = vmatmul.bf16.vlgmr.msrb.gmra.mxu0 %v1639_v56 }
  0x6d   : > { %933 = vmatmul.bf16.vlgmr.msrb.gmra.mxu1 %v1643_v57 }
  0x6e   : > { %1147 = vmatmul.bf16.vlgmr.msrb.gmra.mxu2 %v1775_v58 }
  0x6f   : > { %1176 = vmatmul.bf16.vlgmr.msrb.gmra.mxu3 %v1779_v59 }
  0x7c   : > { %909 = vmatmul.bf16.gmra.mxu0 %v1647_v4 }
  0x7d   : > { %938 = vmatmul.bf16.gmra.mxu1 %v1651_v5 }
  0x7e   : > { %1152 = vmatmul.bf16.gmra.mxu2 %v1783_v6 }
  0x7f   : > { %1181 = vmatmul.bf16.gmra.mxu3 %v1787_v7 }
  0x8c   : > { %914 = vmatmul.bf16.gmra.mxu0 %v1655_v16 }
  0x8d   : > { %943 = vmatmul.bf16.gmra.mxu1 %v1659_v17 }
  0x8e   : > { %1157 = vmatmul.bf16.gmra.mxu2 %v1791_v18 }
  0x8f   : > { %1186 = vmatmul.bf16.gmra.mxu3 %v1795_v19 }
  0x9c   : > { %919 = vmatmul.bf16.gmra.mxu0 %v1663_v28 }
  0x9d   : > { %948 = vmatmul.bf16.gmra.mxu1 %v1667_v29 }
  0x9e   : > { %1162 = vmatmul.bf16.gmra.mxu2 %v1799_v30 }
  0x9f   : > { %1191 = vmatmul.bf16.gmra.mxu3 %v1803_v31 }
  0xa9   : > { %v476_v32 = vpop.f32.mrf.mxu0 }
  0xaa   : > { %v505_v33 = vpop.f32.mrf.mxu1 }
  0xab   : > { %v506_v34 = vadd.f32 %v505_v33, %v476_v32 }
  0xb1   : > { %v670_v35 = vpop.f32.mrf.mxu2  ;;  %v478_v38 = vpop.f32.mrf.mxu0 }
  0xb2   : > { %v699_v36 = vpop.f32.mrf.mxu3  ;;  %v671_v37 = vadd.f32 %v670_v35, %v506_v34  ;;  %v507_v39 = vpop.f32.mrf.mxu1 }
  0xb3   : > { %v508_v17 = vadd.f32 %v507_v39, %v478_v38 }
  0xb4   : > { %v700_v40 = vadd.f32 %v699_v36, %v671_v37 }
  0xb9   : > { %v672_v41 = vpop.f32.mrf.mxu2  ;;  %v481_v43 = vpop.f32.mrf.mxu0 }
  0xba   : > { %v701_v42 = vpop.f32.mrf.mxu3  ;;  %v510_v44 = vpop.f32.mrf.mxu1  ;;  %v673_v21 = vadd.f32 %v672_v41, %v508_v17 }
  0xbb   : > { %v511_v45 = vadd.f32 %v510_v44, %v481_v43 }
  0xbc   : > { %v702_v26 = vadd.f32 %v701_v42, %v673_v21 }
  0xc1   : > { %v675_v46 = vpop.f32.mrf.mxu2  ;;  %v483_v49 = vpop.f32.mrf.mxu0 }
  0xc2   : > { %v704_v47 = vpop.f32.mrf.mxu3  ;;  %v676_v48 = vadd.f32 %v675_v46, %v511_v45  ;;  %v512_v50 = vpop.f32.mrf.mxu1 }
  0xc3   : > { %v513_v41 = vadd.f32 %v512_v50, %v483_v49 }
  0xc4   : > { %v2351_v51 = vadd.f32 %v704_v47, %v676_v48 }
  0xc9   : > { %v2353_v52 = vpop.f32.mrf.mxu2  ;;  %v486_v54 = vpop.f32.mrf.mxu0 }
  0xca   : > { %v2355_v53 = vpop.f32.mrf.mxu3  ;;  %v515_v55 = vpop.f32.mrf.mxu1  ;;  %v678_v48 = vadd.f32 %v2353_v52, %v513_v41 }
  0xcb   : > { %v516_v56 = vadd.f32 %v515_v55, %v486_v54 }
  0xcc   : > { %v707_v49 = vadd.f32 %v2355_v53, %v678_v48 }
  0xd1   : > { %v680_v57 = vpop.f32.mrf.mxu2  ;;  %v2357_v60 = vpop.f32.mrf.mxu0 }
  0xd2   : > { %v709_v58 = vpop.f32.mrf.mxu3  ;;  %v681_v59 = vadd.f32 %v680_v57, %v516_v56  ;;  %v2359_v61 = vpop.f32.mrf.mxu1 }
  0xd3   : > { %v518_v53 = vadd.f32 %v2359_v61, %v2357_v60 }
  0xd4   : > { %v2361_v62 = vadd.f32 %v709_v58, %v681_v59 }
  0xd9   : > { %v2363_v63 = vpop.f32.mrf.mxu2  ;;  %v491_v1 = vpop.f32.mrf.mxu0 }
  0xda   : > { %v2365_v0 = vpop.f32.mrf.mxu3  ;;  %v520_v2 = vpop.f32.mrf.mxu1 }
  0xdb   : > { %v521_v3 = vadd.f32 %v520_v2, %v491_v1 }
  0xe1   : > { %v685_v4 = vpop.f32.mrf.mxu2  ;;  %v2367_v7 = vpop.f32.mrf.mxu0 }
  0xe2   : > { %v714_v5 = vpop.f32.mrf.mxu3  ;;  %v686_v6 = vadd.f32 %v685_v4, %v521_v3  ;;  %v2369_v8 = vpop.f32.mrf.mxu1 }
  0xe4   : > { %v2371_v9 = vadd.f32 %v714_v5, %v686_v6 }
  0xe9   : > { %v2373_v10 = vpop.f32.mrf.mxu2  ;;  %v905_v12 = vpop.f32.mrf.mxu0 }
  0xea   : > { %v2375_v11 = vpop.f32.mrf.mxu3  ;;  %v934_v13 = vpop.f32.mrf.mxu1 }
  0xeb   : > { %v935_v14 = vadd.f32 %v934_v13, %v905_v12 }
  0xed   : > { %v954_v22 = vadd.f32 %v935_v14, %v700_v40 }
  0xf1   : > { %v1148_v15 = vpop.f32.mrf.mxu2  ;;  %v907_v19 = vpop.f32.mrf.mxu0 }
  0xf2   : > { %v1177_v16 = vpop.f32.mrf.mxu3  ;;  %v936_v20 = vpop.f32.mrf.mxu1 }
  0xf3   : > { %v1178_v18 = vadd.f32 %v1177_v16, %v1148_v15  ;;  %v937_v25 = vadd.f32 %v936_v20, %v907_v19  ;;  %v683_v20 = vadd.f32 %v2363_v63, %v518_v53 }
  0xf5   : > { %v1197_v23 = vadd.f32 %v1178_v18, %v954_v22  ;;  %v955_v30 = vadd.f32 %v937_v25, %v702_v26  ;;  %v712_v25 = vadd.f32 %v2365_v0, %v683_v20  ;;  %v523_v0 = vadd.f32 %v2369_v8, %v2367_v7 }
  0xf7   : > { %v1209_v29 = vadd.f32 %v2380_v24, %v1197_v23 }
  0xf9   : > { %v1150_v27 = vpop.f32.mrf.mxu2  ;;  %v910_v32 = vpop.f32.mrf.mxu0  ;;  %v1225_v35 = vmul.f32 0.2, %v1209_v29  ;;  %vm1217_vm0 = vcmp.ge.f32.partialorder %v1209_v29, 0.0 }
  0xfa   : > { %v1179_v28 = vpop.f32.mrf.mxu3  ;;  %v939_v33 = vpop.f32.mrf.mxu1 }
  0xfb   : > { %v1180_v31 = vadd.f32 %v1179_v28, %v1150_v27  ;;  %v940_v38 = vadd.f32 %v939_v33, %v910_v32  ;;  %v1233_v42 = vsel %vm1217_vm0, %v1209_v29, %v1225_v35 }
  0xfd   : > { %v1198_v34 = vadd.f32 %v1180_v31, %v955_v30  ;;  %v956_v54 = vadd.f32 %v940_v38, %v2351_v51 }
  0xff   : > { %v1210_v36 = vadd.f32 %v2380_v24, %v1198_v34 }
 0x101   : > { %vm1218_vm1 = vcmp.ge.f32.partialorder %v1210_v36, 0.0  ;;  %v1226_v37 = vmul.f32 0.2, %v1210_v36  ;;  %v1153_v39 = vpop.f32.mrf.mxu2  ;;  %v912_v45 = vpop.f32.mrf.mxu0 }
 0x102   : > { %v1182_v40 = vpop.f32.mrf.mxu3  ;;  %v941_v46 = vpop.f32.mrf.mxu1 }
 0x103   : > { %v1234_v43 = vsel %vm1218_vm1, %v1210_v36, %v1226_v37  ;;  %v1183_v44 = vadd.f32 %v1182_v40, %v1153_v39  ;;  %v942_v56 = vadd.f32 %v941_v46, %v912_v45 }
 0x104   : > { %v1970_v47 = vpack.c.bf16 %v1234_v43, %v1233_v42  ;;  %v688_v42 = vadd.f32 %v2373_v10, %v523_v0 }
 0x105   : > { %v1199_v55 = vadd.f32 %v1183_v44, %v956_v54  ;;  %v957_v59 = vadd.f32 %v942_v56, %v707_v49 }
 0x106   : > { %1971 = vst [vmem:[%s2388_s19] sm:$0xff] %v1970_v47   ;;  %v717_v46 = vadd.f32 %v2375_v11, %v688_v42 }
 0x107   : > { %v1211_v58 = vadd.f32 %v2380_v24, %v1199_v55 }
 0x109   : > { %v1155_v50 = vpop.f32.mrf.mxu2  ;;  %v915_v2 = vpop.f32.mrf.mxu0  ;;  %v1227_v5 = vmul.f32 0.2, %v1211_v58  ;;  %vm1219_vm2 = vcmp.ge.f32.partialorder %v1211_v58, 0.0 }
 0x10a   : > { %v1184_v57 = vpop.f32.mrf.mxu3  ;;  %v944_v3 = vpop.f32.mrf.mxu1 }
 0x10b   : > { %v1185_v1 = vadd.f32 %v1184_v57, %v1155_v50  ;;  %v945_v52 = vadd.f32 %v944_v3, %v915_v2  ;;  %v1235_v14 = vsel %vm1219_vm2, %v1211_v58, %v1227_v5 }
 0x10d   : > { %v1200_v4 = vadd.f32 %v1185_v1, %v957_v59  ;;  %v958_v21 = vadd.f32 %v945_v52, %v2361_v62 }
 0x10f   : > { %v1212_v6 = vadd.f32 %v2380_v24, %v1200_v4 }
 0x111   : > { %vm1220_vm3 = vcmp.ge.f32.partialorder %v1212_v6, 0.0  ;;  %v1228_v51 = vmul.f32 0.2, %v1212_v6  ;;  %v1158_v12 = vpop.f32.mrf.mxu2  ;;  %v917_v17 = vpop.f32.mrf.mxu0 }
 0x112   : > { %v1187_v13 = vpop.f32.mrf.mxu3  ;;  %v946_v18 = vpop.f32.mrf.mxu1 }
 0x113   : > { %v1236_v15 = vsel %vm1220_vm3, %v1212_v6, %v1228_v51  ;;  %v1188_v16 = vadd.f32 %v1187_v13, %v1158_v12  ;;  %v947_v23 = vadd.f32 %v946_v18, %v917_v17 }
 0x114   : > { %v1975_v19 = vpack.c.bf16 %v1236_v15, %v1235_v14 }
 0x115   : > { %v1201_v22 = vadd.f32 %v1188_v16, %v958_v21  ;;  %v959_v60 = vadd.f32 %v947_v23, %v712_v25 }
 0x116   : > { %1987 = vst [vmem:[%s2388_s19 + $0x8] sm:$0xff] %v1975_v19  }
 0x117   : > { %v1213_v28 = vadd.f32 %v2380_v24, %v1201_v22 }
 0x119   : > { %v1160_v26 = vpop.f32.mrf.mxu2  ;;  %v920_v29 = vpop.f32.mrf.mxu0  ;;  %v1229_v32 = vmul.f32 0.2, %v1213_v28  ;;  %vm1221_vm4 = vcmp.ge.f32.partialorder %v1213_v28, 0.0 }
 0x11a   : > { %v1189_v27 = vpop.f32.mrf.mxu3  ;;  %v949_v30 = vpop.f32.mrf.mxu1 }
 0x11b   : > { %v1190_v61 = vadd.f32 %v1189_v27, %v1160_v26  ;;  %v950_v63 = vadd.f32 %v949_v30, %v920_v29  ;;  %v1237_v36 = vsel %vm1221_vm4, %v1213_v28, %v1229_v32 }
 0x11d   : > { %v1202_v31 = vadd.f32 %v1190_v61, %v959_v60  ;;  %v960_v43 = vadd.f32 %v950_v63, %v2371_v9 }
 0x11f   : > { %v1214_v33 = vadd.f32 %v2380_v24, %v1202_v31 }
 0x121   : > { %vm1222_vm5 = vcmp.ge.f32.partialorder %v1214_v33, 0.0  ;;  %v1230_v62 = vmul.f32 0.2, %v1214_v33  ;;  %v1163_v34 = vpop.f32.mrf.mxu2  ;;  %v922_v40 = vpop.f32.mrf.mxu0 }
 0x122   : > { %v1192_v35 = vpop.f32.mrf.mxu3  ;;  %v951_v41 = vpop.f32.mrf.mxu1 }
 0x123   : > { %v1238_v37 = vsel %vm1222_vm5, %v1214_v33, %v1230_v62  ;;  %v1193_v38 = vadd.f32 %v1192_v35, %v1163_v34  ;;  %v952_v45 = vadd.f32 %v951_v41, %v922_v40 }
 0x124   : > { %v1980_v39 = vpack.c.bf16 %v1238_v37, %v1237_v36 }
 0x125   : > { %v1203_v44 = vadd.f32 %v1193_v38, %v960_v43  ;;  %v961_v8 = vadd.f32 %v952_v45, %v717_v46 }
 0x126   : > { %1988 = vst [vmem:[%s2388_s19 + $0x10] sm:$0xff] %v1980_v39  }
 0x127   : > { %v1215_v7 = vadd.f32 %v2380_v24, %v1203_v44 }
 0x129   : > { %v1165_v47 = vpop.f32.mrf.mxu2  ;;  %v1231_v56 = vmul.f32 0.2, %v1215_v7  ;;  %vm1223_vm6 = vcmp.ge.f32.partialorder %v1215_v7, 0.0 }
 0x12a   : > { %v1194_v48 = vpop.f32.mrf.mxu3 }
 0x12b   : > { %v1195_v54 = vadd.f32 %v1194_v48, %v1165_v47  ;;  %v1239_v9 = vsel %vm1223_vm6, %v1215_v7, %v1231_v56 }
 0x12d   : > { %v1204_v55 = vadd.f32 %v1195_v54, %v961_v8 }
 0x12f   : > { %v1216_v49 = vadd.f32 %v2380_v24, %v1204_v55 }
 0x131   : > { %vm1224_vm7 = vcmp.ge.f32.partialorder %v1216_v49, 0.0  ;;  %v1232_v10 = vmul.f32 0.2, %v1216_v49 }
 0x133   : > { %v1240_v50 = vsel %vm1224_vm7, %v1216_v49, %v1232_v10 }
 0x134   : > { %v1985_v57 = vpack.c.bf16 %v1240_v50, %v1239_v9 }
 0x136   : > { %1989 = vst [vmem:[%s2388_s19 + $0x18] sm:$0xff] %v1985_v57  }
 0x137 PF: > { %s14_s17 = sadd.s32 1, %s2038_s17   ;;  %s2427_s15 = smov %s2034_s16 }
 0x138   : > { %p11_p5 = scmp.ge.s32.totalorder %s14_s17, 4   ;;  %s2428_s16 = smov %s2430_s1 }
 0x13a   :  { %13 = sbr.rel (!%p11_p5) target bundleno = 2 (0x2), region = 76 }

// kernel: tile.28
= control target key start
LH: loop header
LB: loop body
LE: loop exit
PB: predicated region body
PF: predicated region fallthrough
CT: control target
= control target key end

     0   :  { %s22_s0 = inlined_call_operand.vmem [shape: f32[8], index: 0, kind: input, shape index: {}]   ;;  %s23_s1 = inlined_call_operand.vmem [shape: f32[2,8], index: 1, kind: output, shape index: {}]  }
   0x1   :  { %v4_v0 = vld [vmem:[%s22_s0] ss:$0 sm:$0xff] }
   0x2   :  { %5 = vst [vmem:[%s23_s1] sm:$0x3] %v4_v0 }

// kernel: tile.2
= control target key start
LH: loop header
LB: loop body
LE: loop exit
PB: predicated region body
PF: predicated region fallthrough
CT: control target
= control target key end

     0   :  { %s66_s8 = smov 125   ;;  %s67_s9 = smov 123   ;;  %vm7_vm0 = vcmask 7168   ;;  %s117_s0 = inlined_call_operand.vmem [shape: f32[2,8], index: 0, kind: input, shape index: {}]   ;;  %s118_s1 = inlined_call_operand.vmem [shape: f32[16,1], index: 1, kind: output, shape index: {}]  }
   0x1   :  { %v4_v0 = vld [vmem:[%s117_s0] sm:$0x3]  ;;  %s65_s0 = smov 127   ;;  %s68_s10 = smov 126  }
   0x2   :  { %5 = vst [vmem:[#allocation0] sm:$0x3] %v4_v0  ;;  %s69_s11 = smov 124   ;;  %s70_s12 = smov 122  }
   0x3   :  { %s71_s13 = smov 121  }
   0x9   :  { %v9_v1 = vld [vmem:[#allocation0] sm:$0x3]  }
   0xa   :  { %v21_v2 = vld [vmem:[#allocation0] sm:$0x3]   ;;  %10 = vrot.lane.b32.xlu0 %v9_v1, %s65_s0 }
   0xb   :  { %22 = vrot.lane.b32.xlu1 %v21_v2, %s66_s8  ;;  %v33_v3 = vld [vmem:[#allocation0] sm:$0x3]  }
   0xc   :  { %34 = vrot.lane.b32.xlu2 %v33_v3, %s67_s9  ;;  %v15_v4 = vld [vmem:[#allocation0] sm:$0x3]  }
   0xd   :  { %v27_v5 = vld [vmem:[#allocation0] sm:$0x3]  }
   0xe   :  { %v39_v6 = vld [vmem:[#allocation0] sm:$0x3]  }
   0xf   :  { %v45_v7 = vld [vmem:[#allocation0] sm:$0x3]  }
  0x10   :  { %v6_v8 = vld [vmem:[#allocation0] sm:$0x3]  }
  0x11   :  { %8 = vst.msk [vmem:[%s118_s1] ss:$8 sm:$0x3] %vm7_vm0, %v6_v8  }
  0x12   :  { %16 = vrot.lane.b32.xlu0 %v15_v4, %s68_s10 }
  0x13   :  { %28 = vrot.lane.b32.xlu1 %v27_v5, %s69_s11 }
  0x14   :  { %40 = vrot.lane.b32.xlu2 %v39_v6, %s70_s12 }
  0x1a   :  { %46 = vrot.lane.b32.xlu0 %v45_v7, %s71_s13 }
  0x66   :  { %v35_v9 = vpop.permute.xlu2 %34  }
  0x67   :  { %55 = vst.msk [vmem:[%s118_s1 + $0x5] ss:$8 sm:$0x3] %vm7_vm0, %v35_v9  }
  0x6e   :  { %v41_v10 = vpop.permute.xlu2 %40  }
  0x6f   :  { %56 = vst.msk [vmem:[%s118_s1 + $0x6] ss:$8 sm:$0x3] %vm7_vm0, %v41_v10  }
  0x7c   :  { %v11_v11 = vpop.permute.xlu0 %10  }
  0x7d   :  { %v23_v12 = vpop.permute.xlu1 %22   ;;  %51 = vst.msk [vmem:[%s118_s1 + $0x1] ss:$8 sm:$0x3] %vm7_vm0, %v11_v11  }
  0x7e   :  { %53 = vst.msk [vmem:[%s118_s1 + $0x3] ss:$8 sm:$0x3] %vm7_vm0, %v23_v12  }
  0x84   :  { %v17_v13 = vpop.permute.xlu0 %16  }
  0x85   :  { %v29_v14 = vpop.permute.xlu1 %28   ;;  %52 = vst.msk [vmem:[%s118_s1 + $0x2] ss:$8 sm:$0x3] %vm7_vm0, %v17_v13  }
  0x86   :  { %54 = vst.msk [vmem:[%s118_s1 + $0x4] ss:$8 sm:$0x3] %vm7_vm0, %v29_v14  }
  0x8c   :  { %v47_v15 = vpop.permute.xlu0 %46  }
  0x8d   :  { %57 = vst.msk [vmem:[%s118_s1 + $0x7] ss:$8 sm:$0x3] %vm7_vm0, %v47_v15  }

// kernel: evaluator_forward.7
= control target key start
LH: loop header
LB: loop body
LE: loop exit
PB: predicated region body
PF: predicated region fallthrough
CT: control target
= control target key end

     0   :  { %s180_s0 = inlined_call_operand.vmem [shape: f32[2,128], index: 0, kind: input, shape index: {}]   ;;  %s181_s1 = inlined_call_operand.vmem [shape: f32[128,16], index: 1, kind: input, shape index: {}]   ;;  %s182_s2 = inlined_call_operand.vmem [shape: f32[1,16], index: 2, kind: input, shape index: {}]   ;;  %s183_s3 = inlined_call_operand.hbm [shape: f32[2,16], index: 3, kind: output, shape index: {}]  }
   0x1   :  { %v31_v0 = vld [vmem:[%s181_s1 + $0x78] sm:$0xff]  ;;  %v30_v1 = vld [vmem:[%s181_s1 + $0x70] sm:$0xff]  ;;  %v29_v2 = vld [vmem:[%s181_s1 + $0x68] sm:$0xff] }
   0x2   :  { %36 = vmatpush.msra.mxu0 %v31_v0  ;;  %v28_v3 = vld [vmem:[%s181_s1 + $0x60] sm:$0xff]  ;;  %v27_v4 = vld [vmem:[%s181_s1 + $0x58] sm:$0xff] }
   0x4   :  { %37 = vmatpush.msra.mxu0 %v30_v1 }
   0x6   :  { %38 = vmatpush.msra.mxu0 %v29_v2 }
   0x7   :  { %8 = vsyncpa [#allocation3], 0  ;;  %v26_v5 = vld [vmem:[%s181_s1 + $0x50] sm:$0xff]  ;;  %v25_v6 = vld [vmem:[%s181_s1 + $0x48] sm:$0xff]  ;;  %s102_s21 = smov [#allocation2]   ;;  %s65_s25 = sshll.u32 %s183_s3, 4  ;;  %s66_s25 = int_to_ptr.hbm [resolvable:$true] %s65_s25 }
   0x8   :  { %39 = vmatpush.msra.mxu0 %v28_v3  ;;  %v24_v7 = vld [vmem:[%s181_s1 + $0x40] sm:$0xff]  ;;  %v23_v8 = vld [vmem:[%s181_s1 + $0x38] sm:$0xff]  ;;  %v22_v9 = vld [vmem:[%s181_s1 + $0x30] sm:$0xff]  ;;  %s63_s22 = sshll.u32 %s102_s21, 4  ;;  %vm56_vm0 = vcmask 123904   ;;  %s64_s22 = int_to_ptr.vmem [resolvable:$true] %s63_s22 }
   0x9   :  { %v21_v10 = vld [vmem:[%s181_s1 + $0x28] sm:$0xff]  ;;  %v20_v11 = vld [vmem:[%s181_s1 + $0x20] sm:$0xff]  ;;  %v19_v12 = vld [vmem:[%s181_s1 + $0x18] sm:$0xff] }
   0xa   :  { %40 = vmatpush.msra.mxu0 %v27_v4  ;;  %v18_v13 = vld [vmem:[%s181_s1 + $0x10] sm:$0xff]  ;;  %v17_v14 = vld [vmem:[%s181_s1 + $0x8] sm:$0xff]  ;;  %v16_v15 = vld [vmem:[%s181_s1] sm:$0xff] }
   0xb   :  { %v15_v16 = vld [vmem:[%s180_s0] sm:$0x3] }
   0xc   :  { %41 = vmatpush.msra.mxu0 %v26_v5  ;;  %v75_v17 = vld [vmem:[%s182_s2] ss:$0 sm:$0xff] }
   0xe   :  { %42 = vmatpush.msra.mxu0 %v25_v6 }
  0x10   :  { %43 = vmatpush.msra.mxu0 %v24_v7 }
  0x12   :  { %44 = vmatpush.msra.mxu0 %v23_v8 }
  0x14   :  { %45 = vmatpush.msra.mxu0 %v22_v9 }
  0x16   :  { %46 = vmatpush.msra.mxu0 %v21_v10 }
  0x18   :  { %47 = vmatpush.msra.mxu0 %v20_v11 }
  0x1a   :  { %48 = vmatpush.msra.mxu0 %v19_v12 }
  0x1c   :  { %49 = vmatpush.msra.mxu0 %v18_v13 }
  0x1e   :  { %50 = vmatpush.msra.mxu0 %v17_v14 }
  0x20   :  { %51 = vmatpush.msra.mxu0 %v16_v15 }
  0x21   :  { %52 = vmatmul.f32.vlgmr.msra.gmra.mxu0 %v15_v16 }
  0x9e   :  { %v53_v18 = vpop.f32.mrf.mxu0 }
  0x9f   :  { %v54_v19 = vadd.f32 %v75_v17, %v53_v18 }
  0xa1   :  { %57 = vst.msk [vmem:[#allocation2] sm:$0x3] %vm56_vm0, %v54_v19 }
  0xa2   :  { %68 = dma.vmem_to_hbm [thread:$0]  %s64_s22, 32, %s66_s25, [#allocation3]  }
  0xa3   :  { %100 = dma.done.wait [#allocation3], 32  }
  0xa4   :  { %101 = vsyncadd [#allocation3], 4294967264 }
  0xa5   :  { %73 = vsyncpa [#allocation3], 1 }

// kernel: evaluator_forward.5
= control target key start
LH: loop header
LB: loop body
LE: loop exit
PB: predicated region body
PF: predicated region fallthrough
CT: control target
= control target key end

     0   :  { %s3101_s15 = smov 0   ;;  %s3103_s16 = smov 0   ;;  %s3626_s0 = inlined_call_operand.vmem [shape: bf16[2,2,40,512], index: 0, kind: input, shape index: {}]   ;;  %s3627_s1 = inlined_call_operand.vmem [shape: f32[32,1], index: 1, kind: input, shape index: {}]   ;;  %s3628_s2 = inlined_call_operand.vmem [shape: bf16[4,512,128], index: 2, kind: input, shape index: {}]   ;;  %s3629_s3 = inlined_call_operand.vmem [shape: f32[1,128], index: 3, kind: input, shape index: {}]   ;;  %s3630_s4 = inlined_call_operand.vmem [shape: bf16[2,32,128], index: 4, kind: output, shape index: {}]  }
   0x1   :  { %s3105_s17 = smov 0  }
   0x2 LB: > { %s26_s18 = sadd.s32 1, %s3069_s16  ;;  %p1994_p0 = scmp.ge.s32.totalorder %s3073_s17, 1  ;;  %s3073_s17 = sphi %s3105_s17, %s14_s17   ;;  %s3069_s16 = sphi %s3103_s16, %s3632_s16   ;;  %s3065_s15 = sphi %s3101_s15, %s3631_s15  }
   0x3   : > { %p28_p1 = scmp.ge.s32.totalorder %s26_s18, 2  ;;  %p193_p2 = scmp.lt.s32.totalorder %s3073_s17, 3 }
   0x5   : > { %s3634_s18 = smov (%p28_p1, %s26_s18), 0  ;;  %p194_p3 = pnand %p1994_p0, %p193_p2 }
   0x6   : > { %p229_p4 = scmp.lt.s32.totalorder (!%p194_p3), %s3065_s15, 1 }
   0x7   : > { %197 = sbr.rel (%p194_p3) target bundleno = 360 (0x168), region = 36 }
   0xc   : > { %v2904_v0 = vld [vmem:[%s3628_s2 + $0x138] sm:$0xff]  ;;  %v2903_v4 = vld [vmem:[%s3628_s2 + $0x130] sm:$0xff]  ;;  %v2902_v8 = vld [vmem:[%s3628_s2 + $0x128] sm:$0xff]  ;;  %s3636_s15 = smov (!%p229_p4, %s3065_s15), 1 }
   0xd   : > { %v2912_v1 = vld [vmem:[%s3628_s2 + $0x178] sm:$0xff]  ;;  %627 = vmatpush.bf16.msra.mxu0 %v2904_v0  ;;  %v2911_v5 = vld [vmem:[%s3628_s2 + $0x170] sm:$0xff]  ;;  %v2910_v9 = vld [vmem:[%s3628_s2 + $0x168] sm:$0xff]  ;;  %s3020_s19 = smul.u32 160, %s3636_s15  ;;  %s2848_s8 = sshll.u32 %s3636_s15, 4 }
   0xe   : > { %v2920_v2 = vld [vmem:[%s3628_s2 + $0x1b8] sm:$0xff]  ;;  %646 = vmatpush.bf16.msra.mxu1 %v2912_v1  ;;  %v2919_v6 = vld [vmem:[%s3628_s2 + $0x1b0] sm:$0xff]  ;;  %v2918_v10 = vld [vmem:[%s3628_s2 + $0x1a8] sm:$0xff]  ;;  %s248_s11 = scalar_lea.vmem %s3630_s4, %s2848_s8 }
   0xf   : > { %v2928_v3 = vld [vmem:[%s3628_s2 + $0x1f8] sm:$0xff]  ;;  %665 = vmatpush.bf16.msra.mxu2 %v2920_v2  ;;  %v2927_v7 = vld [vmem:[%s3628_s2 + $0x1f0] sm:$0xff]  ;;  %v2926_v11 = vld [vmem:[%s3628_s2 + $0x1e8] sm:$0xff]  ;;  %s3207_s30 = scalar_lea.vmem %s3626_s0, %s3020_s19 }
  0x10   : > { %684 = vmatpush.bf16.msra.mxu3 %v2928_v3  ;;  %v2901_v12 = vld [vmem:[%s3628_s2 + $0x120] sm:$0xff]  ;;  %v2900_v16 = vld [vmem:[%s3628_s2 + $0x118] sm:$0xff]  ;;  %v2899_v20 = vld [vmem:[%s3628_s2 + $0x110] sm:$0xff] }
  0x11   : > { %628 = vmatpush.bf16.msra.mxu0 %v2903_v4  ;;  %v2909_v13 = vld [vmem:[%s3628_s2 + $0x160] sm:$0xff]  ;;  %v2908_v17 = vld [vmem:[%s3628_s2 + $0x158] sm:$0xff]  ;;  %v2907_v21 = vld [vmem:[%s3628_s2 + $0x150] sm:$0xff] }
  0x12   : > { %647 = vmatpush.bf16.msra.mxu1 %v2911_v5  ;;  %v2917_v14 = vld [vmem:[%s3628_s2 + $0x1a0] sm:$0xff]  ;;  %v2916_v18 = vld [vmem:[%s3628_s2 + $0x198] sm:$0xff]  ;;  %v2915_v22 = vld [vmem:[%s3628_s2 + $0x190] sm:$0xff] }
  0x13   : > { %666 = vmatpush.bf16.msra.mxu2 %v2919_v6  ;;  %v2925_v15 = vld [vmem:[%s3628_s2 + $0x1e0] sm:$0xff]  ;;  %v2924_v19 = vld [vmem:[%s3628_s2 + $0x1d8] sm:$0xff]  ;;  %v2923_v23 = vld [vmem:[%s3628_s2 + $0x1d0] sm:$0xff] }
  0x14   : > { %685 = vmatpush.bf16.msra.mxu3 %v2927_v7  ;;  %v2898_v24 = vld [vmem:[%s3628_s2 + $0x108] sm:$0xff]  ;;  %v2897_v28 = vld [vmem:[%s3628_s2 + $0x100] sm:$0xff]  ;;  %v2072_v32 = vld [vmem:[%s3207_s30 + $0x50] sm:$0xf] }
  0x15   : > { %629 = vmatpush.bf16.msra.mxu0 %v2902_v8  ;;  %v2906_v25 = vld [vmem:[%s3628_s2 + $0x148] sm:$0xff]  ;;  %v2905_v29 = vld [vmem:[%s3628_s2 + $0x140] sm:$0xff]  ;;  %v2889_v34 = vld [vmem:[%s3207_s30 + $0x54] sm:$0xf] }
  0x16   : > { %648 = vmatpush.bf16.msra.mxu1 %v2910_v9  ;;  %v2914_v26 = vld [vmem:[%s3628_s2 + $0x188] sm:$0xff]  ;;  %v2913_v30 = vld [vmem:[%s3628_s2 + $0x180] sm:$0xff]  ;;  %v2080_v36 = vld [vmem:[%s3207_s30 + $0x58] sm:$0xf] }
  0x17   : > { %667 = vmatpush.bf16.msra.mxu2 %v2918_v10  ;;  %v2922_v27 = vld [vmem:[%s3628_s2 + $0x1c8] sm:$0xff]  ;;  %v2921_v31 = vld [vmem:[%s3628_s2 + $0x1c0] sm:$0xff]  ;;  %v2890_v38 = vld [vmem:[%s3207_s30 + $0x5c] sm:$0xf] }
  0x18   : > { %686 = vmatpush.bf16.msra.mxu3 %v2926_v11  ;;  %v2891_v33 = vld [vmem:[%s3207_s30 + $0x5c] sm:$0xf0]  ;;  %v2074_v35 = vld [vmem:[%s3207_s30 + $0x60] sm:$0xf0]  ;;  %v2892_v37 = vld [vmem:[%s3207_s30 + $0x64] sm:$0xf0] }
  0x19   : > { %630 = vmatpush.bf16.msra.mxu0 %v2901_v12  ;;  %v2082_v39 = vld [vmem:[%s3207_s30 + $0x68] sm:$0xf0]  ;;  %v2880_v40 = vld [vmem:[%s3628_s2 + $0xb8] sm:$0xff]  ;;  %v2073_v42 = vor.u32 %v2891_v33, %v2072_v32  ;;  %v2077_v43 = vor.u32 %v2889_v34, %v2074_v35  ;;  %v2081_v44 = vor.u32 %v2892_v37, %v2080_v36  ;;  %v2879_v48 = vld [vmem:[%s3628_s2 + $0xb0] sm:$0xff] }
  0x1a   : > { %649 = vmatpush.bf16.msra.mxu1 %v2909_v13  ;;  %v2864_v41 = vld [vmem:[%s3628_s2 + $0x38] sm:$0xff]  ;;  %v2085_v45 = vor.u32 %v2890_v38, %v2082_v39  ;;  %v2863_v49 = vld [vmem:[%s3628_s2 + $0x30] sm:$0xff]  ;;  %v2878_v52 = vld [vmem:[%s3628_s2 + $0xa8] sm:$0xff] }
  0x1b   : > { %668 = vmatpush.bf16.msra.mxu2 %v2917_v14  ;;  %v2872_v46 = vld [vmem:[%s3628_s2 + $0x78] sm:$0xff]  ;;  %v2871_v50 = vld [vmem:[%s3628_s2 + $0x70] sm:$0xff]  ;;  %v2862_v53 = vld [vmem:[%s3628_s2 + $0x28] sm:$0xff] }
  0x1c   : > { %687 = vmatpush.bf16.msra.mxu3 %v2925_v15  ;;  %v2888_v47 = vld [vmem:[%s3628_s2 + $0xf8] sm:$0xff]  ;;  %v2887_v51 = vld [vmem:[%s3628_s2 + $0xf0] sm:$0xff]  ;;  %v2870_v54 = vld [vmem:[%s3628_s2 + $0x68] sm:$0xff] }
  0x1d   : > { %631 = vmatpush.bf16.msra.mxu0 %v2900_v16  ;;  %v2886_v55 = vld [vmem:[%s3628_s2 + $0xe8] sm:$0xff]  ;;  %v2877_v56 = vld [vmem:[%s3628_s2 + $0xa0] sm:$0xff]  ;;  %v2088_v60 = vld [vmem:[%s3207_s30 + $0x70] sm:$0xf] }
  0x1e   : > { %650 = vmatpush.bf16.msra.mxu1 %v2908_v17  ;;  %v2861_v57 = vld [vmem:[%s3628_s2 + $0x20] sm:$0xff]  ;;  %v2893_v62 = vld [vmem:[%s3207_s30 + $0x74] sm:$0xf]  ;;  %v2096_v0 = vld [vmem:[%s3207_s30 + $0x78] sm:$0xf] }
  0x1f   : > { %669 = vmatpush.bf16.msra.mxu2 %v2916_v18  ;;  %v2869_v58 = vld [vmem:[%s3628_s2 + $0x60] sm:$0xff]  ;;  %v2896_v1 = vld [vmem:[%s3207_s30 + $0x84] sm:$0xf0]  ;;  %v2894_v2 = vld [vmem:[%s3207_s30 + $0x7c] sm:$0xf] }
  0x20   : > { %688 = vmatpush.bf16.msra.mxu3 %v2924_v19  ;;  %v2885_v59 = vld [vmem:[%s3628_s2 + $0xe0] sm:$0xff]  ;;  %v2098_v3 = vld [vmem:[%s3207_s30 + $0x88] sm:$0xf0]  ;;  %v2876_v4 = vld [vmem:[%s3628_s2 + $0x98] sm:$0xff]  ;;  %v2097_v8 = vor.u32 %v2896_v1, %v2096_v0 }
  0x21   : > { %632 = vmatpush.bf16.msra.mxu0 %v2899_v20  ;;  %v2895_v61 = vld [vmem:[%s3207_s30 + $0x7c] sm:$0xf0]  ;;  %v2090_v63 = vld [vmem:[%s3207_s30 + $0x80] sm:$0xf0]  ;;  %v2860_v5 = vld [vmem:[%s3628_s2 + $0x18] sm:$0xff]  ;;  %v2101_v9 = vor.u32 %v2894_v2, %v2098_v3 }
  0x22   : > { %651 = vmatpush.bf16.msra.mxu1 %v2907_v21  ;;  %v2089_v6 = vor.u32 %v2895_v61, %v2088_v60  ;;  %v2093_v7 = vor.u32 %v2893_v62, %v2090_v63  ;;  %v2868_v10 = vld [vmem:[%s3628_s2 + $0x58] sm:$0xff]  ;;  %v2875_v12 = vld [vmem:[%s3628_s2 + $0x90] sm:$0xff]  ;;  %v2874_v16 = vld [vmem:[%s3628_s2 + $0x88] sm:$0xff] }
  0x23   : > { %670 = vmatpush.bf16.msra.mxu2 %v2915_v22  ;;  %v2884_v11 = vld [vmem:[%s3628_s2 + $0xd8] sm:$0xff]  ;;  %v2859_v13 = vld [vmem:[%s3628_s2 + $0x10] sm:$0xff]  ;;  %v2858_v17 = vld [vmem:[%s3628_s2 + $0x8] sm:$0xff] }
  0x24   : > { %689 = vmatpush.bf16.msra.mxu3 %v2923_v23  ;;  %v2867_v14 = vld [vmem:[%s3628_s2 + $0x50] sm:$0xff]  ;;  %v2866_v18 = vld [vmem:[%s3628_s2 + $0x48] sm:$0xff]  ;;  %v2873_v20 = vld [vmem:[%s3628_s2 + $0x80] sm:$0xff] }
  0x25   : > { %633 = vmatpush.bf16.msra.mxu0 %v2898_v24  ;;  %v2883_v15 = vld [vmem:[%s3628_s2 + $0xd0] sm:$0xff]  ;;  %v2882_v19 = vld [vmem:[%s3628_s2 + $0xc8] sm:$0xff]  ;;  %v2857_v21 = vld [vmem:[%s3628_s2] sm:$0xff] }
  0x26   : > { %652 = vmatpush.bf16.msra.mxu1 %v2906_v25  ;;  %v2865_v22 = vld [vmem:[%s3628_s2 + $0x40] sm:$0xff]  ;;  %v2960_v25 = vld [vmem:[%s3628_s2 + $0x2b8] sm:$0xff]  ;;  %v2850_v32 = vld [vmem:[%s3207_s30 + $0xc] sm:$0xf] }
  0x27   : > { %671 = vmatpush.bf16.msra.mxu2 %v2914_v26  ;;  %v2881_v23 = vld [vmem:[%s3628_s2 + $0xc0] sm:$0xff]  ;;  %v2944_v26 = vld [vmem:[%s3628_s2 + $0x238] sm:$0xff]  ;;  %v2959_v37 = vld [vmem:[%s3628_s2 + $0x2b0] sm:$0xff] }
  0x28   : > { %690 = vmatpush.bf16.msra.mxu3 %v2922_v27  ;;  %v2232_v24 = vld [vmem:[%s3207_s30] sm:$0xf]  ;;  %v2851_v27 = vld [vmem:[%s3207_s30 + $0xc] sm:$0xf0]  ;;  %v2242_v33 = vld [vmem:[%s3207_s30 + $0x18] sm:$0xf0] }
  0x29   : > { %634 = vmatpush.bf16.msra.mxu0 %v2897_v28  ;;  %v2849_v28 = vld [vmem:[%s3207_s30 + $0x4] sm:$0xf]  ;;  %v2952_v34 = vld [vmem:[%s3628_s2 + $0x278] sm:$0xff]  ;;  %v2233_v36 = vor.u32 %v2851_v27, %v2232_v24  ;;  %v2955_v1 = vld [vmem:[%s3628_s2 + $0x290] sm:$0xff] }
  0x2a   : > { %653 = vmatpush.bf16.msra.mxu1 %v2905_v29  ;;  %v2234_v29 = vld [vmem:[%s3207_s30 + $0x10] sm:$0xf0]  ;;  %v2968_v35 = vld [vmem:[%s3628_s2 + $0x2f8] sm:$0xff]  ;;  %v2458_v24 = vld [vmem:[%s3207_s30 + $0x20] sm:$0xf0] }
  0x2b   : > { %672 = vmatpush.bf16.msra.mxu2 %v2913_v30  ;;  %v2240_v30 = vld [vmem:[%s3207_s30 + $0x8] sm:$0xf]  ;;  %v2237_v38 = vor.u32 %v2849_v28, %v2234_v29  ;;  %v2940_v60 = vld [vmem:[%s3628_s2 + $0x218] sm:$0xff]  ;;  %v2466_v28 = vld [vmem:[%s3207_s30 + $0x28] sm:$0xf0] }
  0x2c   : > { %691 = vmatpush.bf16.msra.mxu3 %v2921_v31  ;;  %635 = vmatmul.bf16.vlgmr.msra.gmra.mxu0 %v2073_v42  ;;  %v2852_v31 = vld [vmem:[%s3207_s30 + $0x14] sm:$0xf0]  ;;  %v2951_v42 = vld [vmem:[%s3628_s2 + $0x270] sm:$0xff]  ;;  %v2258_v61 = vld [vmem:[%s3207_s30 + $0x38] sm:$0xf0] }
  0x2d   : > { %935 = vmatpush.bf16.msrb.mxu0 %v2864_v41  ;;  %654 = vmatmul.bf16.vlgmr.msra.gmra.mxu1 %v2077_v43  ;;  %v2241_v39 = vor.u32 %v2852_v31, %v2240_v30  ;;  %v2943_v41 = vld [vmem:[%s3628_s2 + $0x230] sm:$0xff]  ;;  %v2948_v62 = vld [vmem:[%s3628_s2 + $0x258] sm:$0xff] }
  0x2e   : > { %673 = vmatmul.bf16.vlgmr.msra.gmra.mxu2 %v2081_v44  ;;  %954 = vmatpush.bf16.msrb.mxu1 %v2872_v46  ;;  %v2967_v43 = vld [vmem:[%s3628_s2 + $0x2f0] sm:$0xff]  ;;  %v2958_v44 = vld [vmem:[%s3628_s2 + $0x2a8] sm:$0xff]  ;;  %v2964_v63 = vld [vmem:[%s3628_s2 + $0x2d8] sm:$0xff] }
  0x2f   : > { %973 = vmatpush.bf16.msrb.mxu2 %v2880_v40  ;;  %692 = vmatmul.bf16.vlgmr.msra.gmra.mxu3 %v2085_v45  ;;  %v2245_v40 = vor.u32 %v2850_v32, %v2242_v33  ;;  %v2942_v45 = vld [vmem:[%s3628_s2 + $0x228] sm:$0xff]  ;;  %v2930_v27 = vld [vmem:[%s3207_s30 + $0x1c] sm:$0xf]  ;;  %v2991_v30 = vld [vmem:[%s3628_s2 + $0x370] sm:$0xff] }
  0x30   : > { %992 = vmatpush.bf16.msrb.mxu3 %v2888_v47  ;;  %v2950_v46 = vld [vmem:[%s3628_s2 + $0x268] sm:$0xff]  ;;  %v2469_v33 = vor.u32 %v2930_v27, %v2466_v28  ;;  %v2973_v27 = vld [vmem:[%s3207_s30 + $0x84] sm:$0xf]  ;;  %v2706_v28 = vld [vmem:[%s3207_s30 + $0x90] sm:$0xf0] }
  0x31   : > { %936 = vmatpush.bf16.msrb.mxu0 %v2863_v49  ;;  %v2966_v47 = vld [vmem:[%s3628_s2 + $0x2e8] sm:$0xff]  ;;  %v2941_v49 = vld [vmem:[%s3628_s2 + $0x220] sm:$0xff] }
  0x32   : > { %955 = vmatpush.bf16.msrb.mxu1 %v2871_v50  ;;  %v2949_v50 = vld [vmem:[%s3628_s2 + $0x260] sm:$0xff] }
  0x33   : > { %974 = vmatpush.bf16.msrb.mxu2 %v2879_v48  ;;  %v2957_v48 = vld [vmem:[%s3628_s2 + $0x2a0] sm:$0xff] }
  0x34   : > { %993 = vmatpush.bf16.msrb.mxu3 %v2887_v51  ;;  %v2965_v51 = vld [vmem:[%s3628_s2 + $0x2e0] sm:$0xff] }
  0x35   : > { %937 = vmatpush.bf16.msrb.mxu0 %v2862_v53  ;;  %v2855_v53 = vld [vmem:[%s3207_s30 + $0x2c] sm:$0xf0] }
  0x36   : > { %956 = vmatpush.bf16.msrb.mxu1 %v2870_v54  ;;  %v2956_v54 = vld [vmem:[%s3628_s2 + $0x298] sm:$0xff] }
  0x37   : > { %975 = vmatpush.bf16.msrb.mxu2 %v2878_v52  ;;  %v2248_v52 = vld [vmem:[%s3207_s30 + $0x20] sm:$0xf] }
  0x38   : > { %994 = vmatpush.bf16.msrb.mxu3 %v2886_v55  ;;  %v2853_v55 = vld [vmem:[%s3207_s30 + $0x24] sm:$0xf]  ;;  %v2249_v0 = vor.u32 %v2855_v53, %v2248_v52  ;;  %v2934_v52 = vld [vmem:[%s3207_s30 + $0x3c] sm:$0xf] }
  0x39   : > { %938 = vmatpush.bf16.msrb.mxu0 %v2861_v57  ;;  %v2256_v57 = vld [vmem:[%s3207_s30 + $0x28] sm:$0xf]  ;;  %v2980_v53 = vld [vmem:[%s3628_s2 + $0x318] sm:$0xff] }
  0x3a   : > { %957 = vmatpush.bf16.msrb.mxu1 %v2869_v58  ;;  %v2856_v58 = vld [vmem:[%s3207_s30 + $0x34] sm:$0xf0] }
  0x3b   : > { %976 = vmatpush.bf16.msrb.mxu2 %v2877_v56  ;;  %v2250_v56 = vld [vmem:[%s3207_s30 + $0x30] sm:$0xf0]  ;;  %v2257_v3 = vor.u32 %v2856_v58, %v2256_v57 }
  0x3c   : > { %995 = vmatpush.bf16.msrb.mxu3 %v2885_v59  ;;  %640 = vmatmul.bf16.gmra.mxu0 %v2089_v6  ;;  %v2854_v59 = vld [vmem:[%s3207_s30 + $0x2c] sm:$0xf]  ;;  %v2253_v2 = vor.u32 %v2853_v55, %v2250_v56  ;;  %v2947_v6 = vld [vmem:[%s3628_s2 + $0x250] sm:$0xff]  ;;  %v3004_v55 = vld [vmem:[%s3628_s2 + $0x3d8] sm:$0xff] }
  0x3d   : > { %939 = vmatpush.bf16.msrb.mxu0 %v2860_v5  ;;  %659 = vmatmul.bf16.gmra.mxu1 %v2093_v7  ;;  %v2939_v5 = vld [vmem:[%s3628_s2 + $0x210] sm:$0xff] }
  0x3e   : > { %678 = vmatmul.bf16.gmra.mxu2 %v2097_v8  ;;  %958 = vmatpush.bf16.msrb.mxu1 %v2868_v10  ;;  %v2963_v7 = vld [vmem:[%s3628_s2 + $0x2d0] sm:$0xff]  ;;  %v2954_v8 = vld [vmem:[%s3628_s2 + $0x288] sm:$0xff] }
  0x3f   : > { %977 = vmatpush.bf16.msrb.mxu2 %v2876_v4  ;;  %697 = vmatmul.bf16.gmra.mxu3 %v2101_v9  ;;  %v2261_v4 = vor.u32 %v2854_v59, %v2258_v61  ;;  %v2938_v9 = vld [vmem:[%s3628_s2 + $0x208] sm:$0xff]  ;;  %v2995_v56 = vld [vmem:[%s3628_s2 + $0x390] sm:$0xff] }
  0x40   : > { %996 = vmatpush.bf16.msrb.mxu3 %v2884_v11  ;;  %v2946_v10 = vld [vmem:[%s3628_s2 + $0x248] sm:$0xff]  ;;  %v2987_v58 = vld [vmem:[%s3628_s2 + $0x350] sm:$0xff] }
  0x41   : > { %940 = vmatpush.bf16.msrb.mxu0 %v2859_v13  ;;  %v2962_v11 = vld [vmem:[%s3628_s2 + $0x2c8] sm:$0xff]  ;;  %v3000_v13 = vld [vmem:[%s3628_s2 + $0x3b8] sm:$0xff] }
  0x42   : > { %959 = vmatpush.bf16.msrb.mxu1 %v2867_v14  ;;  %v2937_v14 = vld [vmem:[%s3628_s2 + $0x200] sm:$0xff] }
  0x43   : > { %978 = vmatpush.bf16.msrb.mxu2 %v2875_v12  ;;  %v2953_v12 = vld [vmem:[%s3628_s2 + $0x280] sm:$0xff] }
  0x44   : > { %997 = vmatpush.bf16.msrb.mxu3 %v2883_v15  ;;  %v2945_v15 = vld [vmem:[%s3628_s2 + $0x240] sm:$0xff] }
  0x45   : > { %941 = vmatpush.bf16.msrb.mxu0 %v2858_v17  ;;  %v2456_v17 = vld [vmem:[%s3207_s30 + $0x10] sm:$0xf] }
  0x46   : > { %960 = vmatpush.bf16.msrb.mxu1 %v2866_v18  ;;  %v2931_v18 = vld [vmem:[%s3207_s30 + $0x1c] sm:$0xf0] }
  0x47   : > { %979 = vmatpush.bf16.msrb.mxu2 %v2874_v16  ;;  %v2961_v16 = vld [vmem:[%s3628_s2 + $0x2c0] sm:$0xff]  ;;  %v2457_v29 = vor.u32 %v2931_v18, %v2456_v17  ;;  %v2698_v17 = vld [vmem:[%s3207_s30 + $0x78] sm:$0xf0] }
  0x48   : > { %998 = vmatpush.bf16.msrb.mxu3 %v2882_v19  ;;  %v2984_v19 = vld [vmem:[%s3628_s2 + $0x338] sm:$0xff] }
  0x49   : > { %942 = vmatpush.bf16.msrb.mxu0 %v2857_v21  ;;  %v2929_v21 = vld [vmem:[%s3207_s30 + $0x14] sm:$0xf] }
  0x4a   : > { %961 = vmatpush.bf16.msrb.mxu1 %v2865_v22  ;;  %v3008_v22 = vld [vmem:[%s3628_s2 + $0x3f8] sm:$0xff]  ;;  %v2461_v31 = vor.u32 %v2929_v21, %v2458_v24 }
  0x4b   : > { %980 = vmatpush.bf16.msrb.mxu2 %v2873_v20  ;;  %v2992_v20 = vld [vmem:[%s3628_s2 + $0x378] sm:$0xff] }
  0x4c   : > { %999 = vmatpush.bf16.msrb.mxu3 %v2881_v23  ;;  %943 = vmatmul.bf16.vlgmr.msrb.gmra.mxu0 %v2233_v36  ;;  %v2999_v23 = vld [vmem:[%s3628_s2 + $0x3b0] sm:$0xff]  ;;  %v2998_v36 = vld [vmem:[%s3628_s2 + $0x3a8] sm:$0xff]  ;;  %v1792_v24 = vld [vmem:[%s3627_s1 + $0x18] sm:$0xff] }
  0x4d   : > { %1316 = vmatpush.bf16.msra.mxu0 %v2944_v26  ;;  %962 = vmatmul.bf16.vlgmr.msrb.gmra.mxu1 %v2237_v38  ;;  %v2932_v26 = vld [vmem:[%s3207_s30 + $0x24] sm:$0xf0] }
  0x4e   : > { %1335 = vmatpush.bf16.msra.mxu1 %v2952_v34  ;;  %981 = vmatmul.bf16.vlgmr.msrb.gmra.mxu2 %v2241_v39  ;;  %v2983_v34 = vld [vmem:[%s3628_s2 + $0x330] sm:$0xff]  ;;  %v2982_v38 = vld [vmem:[%s3628_s2 + $0x328] sm:$0xff] }
  0x4f   : > { %1354 = vmatpush.bf16.msra.mxu2 %v2960_v25  ;;  %1000 = vmatmul.bf16.vlgmr.msrb.gmra.mxu3 %v2245_v40  ;;  %v2464_v25 = vld [vmem:[%s3207_s30 + $0x18] sm:$0xf]  ;;  %v3006_v39 = vld [vmem:[%s3628_s2 + $0x3e8] sm:$0xff]  ;;  %v2997_v40 = vld [vmem:[%s3628_s2 + $0x3a0] sm:$0xff] }
  0x50   : > { %1373 = vmatpush.bf16.msra.mxu3 %v2968_v35  ;;  %v2465_v32 = vor.u32 %v2932_v26, %v2464_v25  ;;  %v3007_v35 = vld [vmem:[%s3628_s2 + $0x3f0] sm:$0xff]  ;;  %v2704_v25 = vld [vmem:[%s3207_s30 + $0x80] sm:$0xf] }
  0x51   : > { %1317 = vmatpush.bf16.msra.mxu0 %v2943_v41  ;;  %v2989_v41 = vld [vmem:[%s3628_s2 + $0x360] sm:$0xff]  ;;  %v2975_v26 = vld [vmem:[%s3207_s30 + $0x8c] sm:$0xf0] }
  0x52   : > { %1336 = vmatpush.bf16.msra.mxu1 %v2951_v42  ;;  %v2981_v42 = vld [vmem:[%s3628_s2 + $0x320] sm:$0xff] }
  0x53   : > { %1355 = vmatpush.bf16.msra.mxu2 %v2959_v37  ;;  %v2990_v37 = vld [vmem:[%s3628_s2 + $0x368] sm:$0xff] }
  0x54   : > { %1374 = vmatpush.bf16.msra.mxu3 %v2967_v43  ;;  %v3005_v43 = vld [vmem:[%s3628_s2 + $0x3e0] sm:$0xff] }
  0x55   : > { %1318 = vmatpush.bf16.msra.mxu0 %v2942_v45  ;;  %v2472_v45 = vld [vmem:[%s3207_s30 + $0x30] sm:$0xf] }
  0x56   : > { %1337 = vmatpush.bf16.msra.mxu1 %v2950_v46  ;;  %v2935_v46 = vld [vmem:[%s3207_s30 + $0x3c] sm:$0xf0] }
  0x57   : > { %1356 = vmatpush.bf16.msra.mxu2 %v2958_v44  ;;  %v2996_v44 = vld [vmem:[%s3628_s2 + $0x398] sm:$0xff]  ;;  %v2473_v57 = vor.u32 %v2935_v46, %v2472_v45 }
  0x58   : > { %1375 = vmatpush.bf16.msra.mxu3 %v2966_v47  ;;  %v2988_v47 = vld [vmem:[%s3628_s2 + $0x358] sm:$0xff] }
  0x59   : > { %1319 = vmatpush.bf16.msra.mxu0 %v2941_v49  ;;  %v2474_v49 = vld [vmem:[%s3207_s30 + $0x40] sm:$0xf0] }
  0x5a   : > { %1338 = vmatpush.bf16.msra.mxu1 %v2949_v50  ;;  %v2480_v50 = vld [vmem:[%s3207_s30 + $0x38] sm:$0xf] }
  0x5b   : > { %1357 = vmatpush.bf16.msra.mxu2 %v2957_v48  ;;  %v2933_v48 = vld [vmem:[%s3207_s30 + $0x34] sm:$0xf] }
  0x5c   : > { %1376 = vmatpush.bf16.msra.mxu3 %v2965_v51  ;;  %948 = vmatmul.bf16.gmra.mxu0 %v2249_v0  ;;  %v2936_v51 = vld [vmem:[%s3207_s30 + $0x44] sm:$0xf0]  ;;  %v2477_v59 = vor.u32 %v2933_v48, %v2474_v49 }
  0x5d   : > { %1320 = vmatpush.bf16.msra.mxu0 %v2940_v60  ;;  %967 = vmatmul.bf16.gmra.mxu1 %v2253_v2  ;;  %v2481_v60 = vor.u32 %v2936_v51, %v2480_v50  ;;  %v2994_v0 = vld [vmem:[%s3628_s2 + $0x388] sm:$0xff] }
  0x5e   : > { %1339 = vmatpush.bf16.msra.mxu1 %v2948_v62  ;;  %986 = vmatmul.bf16.gmra.mxu2 %v2257_v3  ;;  %v2979_v62 = vld [vmem:[%s3628_s2 + $0x310] sm:$0xff]  ;;  %v2978_v2 = vld [vmem:[%s3628_s2 + $0x308] sm:$0xff]  ;;  %v1789_v3 = vld [vmem:[%s3627_s1] sm:$0xff] }
  0x5f   : > { %1358 = vmatpush.bf16.msra.mxu2 %v2956_v54  ;;  %1005 = vmatmul.bf16.gmra.mxu3 %v2261_v4  ;;  %v2482_v54 = vld [vmem:[%s3207_s30 + $0x48] sm:$0xf0] }
  0x60   : > { %1377 = vmatpush.bf16.msra.mxu3 %v2964_v63  ;;  %v2485_v61 = vor.u32 %v2934_v52, %v2482_v54  ;;  %v3003_v63 = vld [vmem:[%s3628_s2 + $0x3d0] sm:$0xff]  ;;  %v3002_v4 = vld [vmem:[%s3628_s2 + $0x3c8] sm:$0xff] }
  0x61   : > { %1321 = vmatpush.bf16.msra.mxu0 %v2939_v5  ;;  %v2993_v5 = vld [vmem:[%s3628_s2 + $0x380] sm:$0xff] }
  0x62   : > { %1340 = vmatpush.bf16.msra.mxu1 %v2947_v6  ;;  %v2985_v6 = vld [vmem:[%s3628_s2 + $0x340] sm:$0xff] }
  0x63   : > { %1359 = vmatpush.bf16.msra.mxu2 %v2955_v1  ;;  %v2986_v1 = vld [vmem:[%s3628_s2 + $0x348] sm:$0xff] }
  0x64   : > { %1378 = vmatpush.bf16.msra.mxu3 %v2963_v7  ;;  %v3075_v7 = vmov 0  }
  0x65   : > { %1322 = vmatpush.bf16.msra.mxu0 %v2938_v9  ;;  %3046 = vset.pattern.permute.xlu0 %v3075_v7  ;;  %v3001_v9 = vld [vmem:[%s3628_s2 + $0x3c0] sm:$0xff] }
  0x66   : > { %1341 = vmatpush.bf16.msra.mxu1 %v2946_v10  ;;  %1795 = vperm.xlu0 %3046, %v1789_v3   ;;  %v2688_v10 = vld [vmem:[%s3207_s30 + $0x60] sm:$0xf] }
  0x67   : > { %1360 = vmatpush.bf16.msra.mxu2 %v2954_v8  ;;  %3047 = vset.pattern.permute.xlu1 %v3075_v7  ;;  %v2977_v8 = vld [vmem:[%s3628_s2 + $0x300] sm:$0xff] }
  0x68   : > { %1379 = vmatpush.bf16.msra.mxu3 %v2962_v11  ;;  %v2971_v11 = vld [vmem:[%s3207_s30 + $0x6c] sm:$0xf0] }
  0x69   : > { %1323 = vmatpush.bf16.msra.mxu0 %v2937_v14  ;;  %v2696_v14 = vld [vmem:[%s3207_s30 + $0x68] sm:$0xf]  ;;  %v2689_v18 = vor.u32 %v2971_v11, %v2688_v10 }
  0x6a   : > { %1342 = vmatpush.bf16.msra.mxu1 %v2945_v15  ;;  %v2972_v15 = vld [vmem:[%s3207_s30 + $0x74] sm:$0xf0] }
  0x6b   : > { %1361 = vmatpush.bf16.msra.mxu2 %v2953_v12  ;;  %v2969_v12 = vld [vmem:[%s3207_s30 + $0x64] sm:$0xf] }
  0x6c   : > { %1380 = vmatpush.bf16.msra.mxu3 %v2961_v16  ;;  %1324 = vmatmul.bf16.vlgmr.msra.gmra.mxu0 %v2457_v29  ;;  %v2970_v16 = vld [vmem:[%s3207_s30 + $0x6c] sm:$0xf]  ;;  %v2712_v29 = vld [vmem:[%s3207_s30 + $0x88] sm:$0xf] }
  0x6d   : > { %1701 = vmatpush.bf16.msrb.mxu0 %v2984_v19  ;;  %1343 = vmatmul.bf16.vlgmr.msra.gmra.mxu1 %v2461_v31  ;;  %v2701_v21 = vor.u32 %v2970_v16, %v2698_v17  ;;  %v2974_v31 = vld [vmem:[%s3207_s30 + $0x8c] sm:$0xf] }
  0x6e   : > { %1720 = vmatpush.bf16.msrb.mxu1 %v2992_v20  ;;  %1362 = vmatmul.bf16.vlgmr.msra.gmra.mxu2 %v2465_v32  ;;  %v2697_v20 = vor.u32 %v2972_v15, %v2696_v14  ;;  %v2714_v32 = vld [vmem:[%s3207_s30 + $0x98] sm:$0xf0] }
  0x6f   : > { %1739 = vmatpush.bf16.msrb.mxu2 %v3000_v13  ;;  %1381 = vmatmul.bf16.vlgmr.msra.gmra.mxu3 %v2469_v33  ;;  %v2690_v13 = vld [vmem:[%s3207_s30 + $0x70] sm:$0xf0]  ;;  %v2705_v33 = vor.u32 %v2975_v26, %v2704_v25 }
  0x70   : > { %1758 = vmatpush.bf16.msrb.mxu3 %v3008_v22  ;;  %v2693_v19 = vor.u32 %v2969_v12, %v2690_v13  ;;  %v1791_v22 = vld [vmem:[%s3627_s1 + $0x10] sm:$0xff] }
  0x71   : > { %1702 = vmatpush.bf16.msrb.mxu0 %v2983_v34  ;;  %1805 = vperm.xlu1 %3047, %v1791_v22   ;;  %v2709_v34 = vor.u32 %v2973_v27, %v2706_v28 }
  0x72   : > { %1721 = vmatpush.bf16.msrb.mxu1 %v2991_v30  ;;  %v2976_v30 = vld [vmem:[%s3207_s30 + $0x94] sm:$0xf0] }
  0x73   : > { %1740 = vmatpush.bf16.msrb.mxu2 %v2999_v23  ;;  %v1790_v23 = vld [vmem:[%s3627_s1 + $0x8] sm:$0xff] }
  0x74   : > { %1759 = vmatpush.bf16.msrb.mxu3 %v3007_v35  ;;  %1800 = vperm.xlu0 %3046, %v1790_v23   ;;  %v2713_v35 = vor.u32 %v2976_v30, %v2712_v29 }
  0x75   : > { %1703 = vmatpush.bf16.msrb.mxu0 %v2982_v38 }
  0x76   : > { %1722 = vmatpush.bf16.msrb.mxu1 %v2990_v37 }
  0x77   : > { %1741 = vmatpush.bf16.msrb.mxu2 %v2998_v36  ;;  %v2717_v36 = vor.u32 %v2974_v31, %v2714_v32 }
  0x78   : > { %1760 = vmatpush.bf16.msrb.mxu3 %v3006_v39 }
  0x79   : > { %1704 = vmatpush.bf16.msrb.mxu0 %v2981_v42  ;;  %1810 = vperm.xlu1 %3047, %v1792_v24  }
  0x7a   : > { %1723 = vmatpush.bf16.msrb.mxu1 %v2989_v41 }
  0x7b   : > { %1742 = vmatpush.bf16.msrb.mxu2 %v2997_v40 }
  0x7c   : > { %1761 = vmatpush.bf16.msrb.mxu3 %v3005_v43  ;;  %1329 = vmatmul.bf16.gmra.mxu0 %v2473_v57 }
  0x7d   : > { %1705 = vmatpush.bf16.msrb.mxu0 %v2980_v53  ;;  %1348 = vmatmul.bf16.gmra.mxu1 %v2477_v59 }
  0x7e   : > { %1724 = vmatpush.bf16.msrb.mxu1 %v2988_v47  ;;  %1367 = vmatmul.bf16.gmra.mxu2 %v2481_v60 }
  0x7f   : > { %1743 = vmatpush.bf16.msrb.mxu2 %v2996_v44  ;;  %1386 = vmatmul.bf16.gmra.mxu3 %v2485_v61 }
  0x80   : > { %1762 = vmatpush.bf16.msrb.mxu3 %v3004_v55 }
  0x81   : > { %1706 = vmatpush.bf16.msrb.mxu0 %v2979_v62 }
  0x82   : > { %1725 = vmatpush.bf16.msrb.mxu1 %v2987_v58 }
  0x83   : > { %1744 = vmatpush.bf16.msrb.mxu2 %v2995_v56 }
  0x84   : > { %1763 = vmatpush.bf16.msrb.mxu3 %v3003_v63 }
  0x85   : > { %1707 = vmatpush.bf16.msrb.mxu0 %v2978_v2 }
  0x86   : > { %1726 = vmatpush.bf16.msrb.mxu1 %v2986_v1 }
  0x87   : > { %1745 = vmatpush.bf16.msrb.mxu2 %v2994_v0 }
  0x88   : > { %1764 = vmatpush.bf16.msrb.mxu3 %v3002_v4 }
  0x89   : > { %1708 = vmatpush.bf16.msrb.mxu0 %v2977_v8 }
  0x8a   : > { %1727 = vmatpush.bf16.msrb.mxu1 %v2985_v6 }
  0x8b   : > { %1746 = vmatpush.bf16.msrb.mxu2 %v2993_v5 }
  0x8c   : > { %1765 = vmatpush.bf16.msrb.mxu3 %v3001_v9  ;;  %1709 = vmatmul.bf16.vlgmr.msrb.gmra.mxu0 %v2689_v18 }
  0x8d   : > { %1728 = vmatmul.bf16.vlgmr.msrb.gmra.mxu1 %v2693_v19 }
  0x8e   : > { %1747 = vmatmul.bf16.vlgmr.msrb.gmra.mxu2 %v2697_v20 }
  0x8f   : > { %1766 = vmatmul.bf16.vlgmr.msrb.gmra.mxu3 %v2701_v21 }
  0x9c   : > { %1714 = vmatmul.bf16.gmra.mxu0 %v2705_v33 }
  0x9d   : > { %1733 = vmatmul.bf16.gmra.mxu1 %v2709_v34 }
  0x9e   : > { %1752 = vmatmul.bf16.gmra.mxu2 %v2713_v35 }
  0x9f   : > { %1771 = vmatmul.bf16.gmra.mxu3 %v2717_v36 }
  0xa9   : > { %v636_v37 = vpop.f32.mrf.mxu0 }
  0xaa   : > { %v655_v38 = vpop.f32.mrf.mxu1 }
  0xab   : > { %v656_v39 = vadd.f32 %v655_v38, %v636_v37 }
  0xb1   : > { %v674_v40 = vpop.f32.mrf.mxu2  ;;  %v638_v43 = vpop.f32.mrf.mxu0 }
  0xb2   : > { %v693_v41 = vpop.f32.mrf.mxu3  ;;  %v675_v42 = vadd.f32 %v674_v40, %v656_v39  ;;  %v657_v44 = vpop.f32.mrf.mxu1 }
  0xb3   : > { %v658_v45 = vadd.f32 %v657_v44, %v638_v43 }
  0xb4   : > { %v694_v46 = vadd.f32 %v693_v41, %v675_v42 }
  0xb9   : > { %v676_v47 = vpop.f32.mrf.mxu2  ;;  %v641_v50 = vpop.f32.mrf.mxu0 }
  0xba   : > { %v695_v48 = vpop.f32.mrf.mxu3  ;;  %v677_v49 = vadd.f32 %v676_v47, %v658_v45  ;;  %v660_v51 = vpop.f32.mrf.mxu1 }
  0xbb   : > { %v661_v52 = vadd.f32 %v660_v51, %v641_v50 }
  0xbc   : > { %v696_v53 = vadd.f32 %v695_v48, %v677_v49 }
  0xc1   : > { %v679_v54 = vpop.f32.mrf.mxu2  ;;  %v643_v57 = vpop.f32.mrf.mxu0 }
  0xc2   : > { %v698_v55 = vpop.f32.mrf.mxu3  ;;  %v680_v56 = vadd.f32 %v679_v54, %v661_v52  ;;  %v662_v58 = vpop.f32.mrf.mxu1 }
  0xc3   : > { %v663_v59 = vadd.f32 %v662_v58, %v643_v57 }
  0xc4   : > { %v699_v60 = vadd.f32 %v698_v55, %v680_v56 }
  0xc9   : > { %v681_v61 = vpop.f32.mrf.mxu2  ;;  %v944_v0 = vpop.f32.mrf.mxu0 }
  0xca   : > { %v700_v62 = vpop.f32.mrf.mxu3  ;;  %v682_v63 = vadd.f32 %v681_v61, %v663_v59  ;;  %v945_v1 = vadd.f32 %v944_v0, %v694_v46  ;;  %v963_v2 = vpop.f32.mrf.mxu1  ;;  %v3048_v0 = vld [vmem:[%s3629_s3] ss:$0 sm:$0xff] }
  0xcc   : > { %v3591_v3 = vadd.f32 %v700_v62, %v682_v63  ;;  %v964_v4 = vadd.f32 %v963_v2, %v945_v1 }
  0xd1   : > { %v982_v5 = vpop.f32.mrf.mxu2  ;;  %v946_v8 = vpop.f32.mrf.mxu0 }
  0xd2   : > { %v983_v6 = vadd.f32 %v982_v5, %v964_v4  ;;  %v1001_v7 = vpop.f32.mrf.mxu3  ;;  %v947_v9 = vadd.f32 %v946_v8, %v696_v53  ;;  %v965_v10 = vpop.f32.mrf.mxu1 }
  0xd4   : > { %v1002_v11 = vadd.f32 %v1001_v7, %v983_v6  ;;  %v966_v12 = vadd.f32 %v965_v10, %v947_v9 }
  0xd8   : > { %v1796_v59 = vpop.permute.xlu0 %1795 }
  0xd9   : > { %v984_v13 = vpop.f32.mrf.mxu2  ;;  %v949_v16 = vpop.f32.mrf.mxu0 }
  0xda   : > { %v985_v14 = vadd.f32 %v984_v13, %v966_v12  ;;  %v1003_v15 = vpop.f32.mrf.mxu3  ;;  %v950_v17 = vadd.f32 %v949_v16, %v699_v60  ;;  %v968_v18 = vpop.f32.mrf.mxu1 }
  0xdc   : > { %v1004_v19 = vadd.f32 %v1003_v15, %v985_v14  ;;  %v969_v20 = vadd.f32 %v968_v18, %v950_v17 }
  0xe1   : > { %v987_v21 = vpop.f32.mrf.mxu2  ;;  %v951_v24 = vpop.f32.mrf.mxu0 }
  0xe2   : > { %v988_v22 = vadd.f32 %v987_v21, %v969_v20  ;;  %v1006_v23 = vpop.f32.mrf.mxu3  ;;  %v970_v25 = vpop.f32.mrf.mxu1  ;;  %v952_v14 = vadd.f32 %v951_v24, %v3591_v3 }
  0xe4   : > { %v1007_v26 = vadd.f32 %v1006_v23, %v988_v22 }
  0xe6   : > { %v1801_v16 = vpop.permute.xlu0 %1800 }
  0xe9   : > { %v3593_v27 = vpop.f32.mrf.mxu2  ;;  %v1325_v29 = vpop.f32.mrf.mxu0 }
  0xea   : > { %v3595_v28 = vpop.f32.mrf.mxu3  ;;  %v1344_v30 = vpop.f32.mrf.mxu1 }
  0xeb   : > { %v1345_v44 = vadd.f32 %v1344_v30, %v1325_v29 }
  0xf1   : > { %v1363_v31 = vpop.f32.mrf.mxu2  ;;  %v1327_v33 = vpop.f32.mrf.mxu0 }
  0xf2   : > { %v1382_v32 = vpop.f32.mrf.mxu3  ;;  %v1346_v34 = vpop.f32.mrf.mxu1  ;;  %v1364_v48 = vadd.f32 %v1363_v31, %v1345_v44 }
  0xf3   : > { %v1347_v52 = vadd.f32 %v1346_v34, %v1327_v33 }
  0xf4   : > { %v1383_v51 = vadd.f32 %v1382_v32, %v1364_v48 }
  0xf6   : > { %v1392_v60 = vadd.f32 %v1383_v51, %v1002_v11 }
  0xf9   : > { %v1365_v35 = vpop.f32.mrf.mxu2  ;;  %v1330_v37 = vpop.f32.mrf.mxu0 }
  0xfa   : > { %v1384_v36 = vpop.f32.mrf.mxu3  ;;  %v1349_v38 = vpop.f32.mrf.mxu1  ;;  %v1366_v57 = vadd.f32 %v1365_v35, %v1347_v52 }
  0xfb   : > { %v1350_v61 = vadd.f32 %v1349_v38, %v1330_v37 }
  0xfc   : > { %v1385_v62 = vadd.f32 %v1384_v36, %v1366_v57 }
  0xfe   : > { %v1393_v9 = vadd.f32 %v1385_v62, %v1004_v19  ;;  %v971_v19 = vadd.f32 %v970_v25, %v952_v14 }
 0x100   : > { %v990_v36 = vadd.f32 %v3593_v27, %v971_v19 }
 0x101   : > { %v1368_v39 = vpop.f32.mrf.mxu2  ;;  %v1332_v41 = vpop.f32.mrf.mxu0 }
 0x102   : > { %v1387_v40 = vpop.f32.mrf.mxu3  ;;  %v1351_v42 = vpop.f32.mrf.mxu1  ;;  %v1369_v6 = vadd.f32 %v1368_v39, %v1350_v61  ;;  %v1009_v25 = vadd.f32 %v3595_v28, %v990_v36 }
 0x103   : > { %v1352_v20 = vadd.f32 %v1351_v42, %v1332_v41  ;;  %v1806_v39 = vpop.permute.xlu1 %1805 }
 0x104   : > { %v1388_v15 = vadd.f32 %v1387_v40, %v1369_v6 }
 0x106   : > { %v1394_v30 = vadd.f32 %v1388_v15, %v1007_v26 }
 0x109   : > { %v1370_v43 = vpop.f32.mrf.mxu2  ;;  %v1710_v46 = vpop.f32.mrf.mxu0 }
 0x10a   : > { %v1389_v45 = vpop.f32.mrf.mxu3  ;;  %v1729_v47 = vpop.f32.mrf.mxu1  ;;  %v1371_v31 = vadd.f32 %v1370_v43, %v1352_v20 }
 0x10b   : > { %v1730_v49 = vadd.f32 %v1729_v47, %v1710_v46  ;;  %v1811_v27 = vpop.permute.xlu1 %1810 }
 0x10c   : > { %v1390_v40 = vadd.f32 %v1389_v45, %v1371_v31 }
 0x10e   : > { %v1395_v47 = vadd.f32 %v1390_v40, %v1009_v25 }
 0x111   : > { %v1748_v50 = vpop.f32.mrf.mxu2  ;;  %v1712_v55 = vpop.f32.mrf.mxu0 }
 0x112   : > { %v1749_v53 = vadd.f32 %v1748_v50, %v1730_v49  ;;  %v1767_v54 = vpop.f32.mrf.mxu3  ;;  %v1731_v56 = vpop.f32.mrf.mxu1 }
 0x113   : > { %v1732_v1 = vadd.f32 %v1731_v56, %v1712_v55 }
 0x114   : > { %v1768_v58 = vadd.f32 %v1767_v54, %v1749_v53 }
 0x116   : > { %v1777_v63 = vadd.f32 %v1768_v58, %v1392_v60 }
 0x118   : > { %v3600_v10 = vadd.f32 %v3048_v0, %v1777_v63 }
 0x119   : > { %v1750_v2 = vpop.f32.mrf.mxu2  ;;  %v1715_v7 = vpop.f32.mrf.mxu0 }
 0x11a   : > { %v1751_v4 = vadd.f32 %v1750_v2, %v1732_v1  ;;  %v1769_v5 = vpop.f32.mrf.mxu3  ;;  %v1734_v8 = vpop.f32.mrf.mxu1  ;;  %v1813_v17 = vmul.f32 %v1796_v59, %v3600_v10 }
 0x11b   : > { %v1735_v11 = vadd.f32 %v1734_v8, %v1715_v7 }
 0x11c   : > { %v1770_v12 = vadd.f32 %v1769_v5, %v1751_v4  ;;  %v1827_v32 = vmul.f32 %v1813_v17, %v3600_v10 }
 0x11e   : > { %v1778_v13 = vadd.f32 %v1770_v12, %v1393_v9 }
 0x120   : > { %v3604_v18 = vadd.f32 %v3048_v0, %v1778_v13 }
 0x121   : > { %v1753_v21 = vpop.f32.mrf.mxu2  ;;  %v1717_v34 = vpop.f32.mrf.mxu0 }
 0x122   : > { %v1814_v22 = vmul.f32 %v1801_v16, %v3604_v18  ;;  %v1754_v23 = vadd.f32 %v1753_v21, %v1735_v11  ;;  %v1772_v29 = vpop.f32.mrf.mxu3  ;;  %v1736_v35 = vpop.f32.mrf.mxu1 }
 0x123   : > { %v1737_v42 = vadd.f32 %v1736_v35, %v1717_v34 }
 0x124   : > { %v1817_v33 = vadd.f32 %v1814_v22, %v1813_v17  ;;  %v1828_v3 = vmul.f32 %v1814_v22, %v3604_v18  ;;  %v1773_v24 = vadd.f32 %v1772_v29, %v1754_v23 }
 0x126   : > { %v1831_v37 = vadd.f32 %v1828_v3, %v1827_v32  ;;  %v1779_v38 = vadd.f32 %v1773_v24, %v1394_v30 }
 0x128   : > { %v1787_v41 = vadd.f32 %v3048_v0, %v1779_v38 }
 0x129   : > { %v1755_v44 = vpop.f32.mrf.mxu2 }
 0x12a   : > { %v1815_v26 = vmul.f32 %v1806_v39, %v1787_v41  ;;  %v1756_v43 = vadd.f32 %v1755_v44, %v1737_v42  ;;  %v1774_v46 = vpop.f32.mrf.mxu3 }
 0x12c   : > { %v1818_v48 = vadd.f32 %v1817_v33, %v1815_v26  ;;  %v1829_v49 = vmul.f32 %v1815_v26, %v1787_v41  ;;  %v1775_v50 = vadd.f32 %v1774_v46, %v1756_v43 }
 0x12e   : > { %v1832_v51 = vadd.f32 %v1831_v37, %v1829_v49  ;;  %v1780_v52 = vadd.f32 %v1775_v50, %v1395_v47 }
 0x130   : > { %v1788_v53 = vadd.f32 %v3048_v0, %v1780_v52 }
 0x132   : > { %v1816_v54 = vmul.f32 %v1811_v27, %v1788_v53 }
 0x134   : > { %v1819_v55 = vadd.f32 %v1818_v48, %v1816_v54  ;;  %v1830_v56 = vmul.f32 %v1816_v54, %v1788_v53 }
 0x136   : > { %v1820_v45 = vrot.slane %v1819_v55, 4  ;;  %v1833_v57 = vadd.f32 %v1832_v51, %v1830_v56 }
 0x138   : > { %v1821_v58 = vadd.f32 %v1820_v45, %v1819_v55  ;;  %v1834_v59 = vrot.slane %v1833_v57, 4 }
 0x13a   : > { %v1822_v60 = vrot.slane %v1821_v58, 2  ;;  %v1835_v28 = vadd.f32 %v1834_v59, %v1833_v57 }
 0x13c   : > { %v1823_v61 = vadd.f32 %v1822_v60, %v1821_v58  ;;  %v1836_v62 = vrot.slane %v1835_v28, 2 }
 0x13e   : > { %v1824_v63 = vrot.slane %v1823_v61, 1  ;;  %v1837_v1 = vadd.f32 %v1836_v62, %v1835_v28 }
 0x140   : > { %v1825_v2 = vadd.f32 %v1824_v63, %v1823_v61  ;;  %v1838_v4 = vrot.slane %v1837_v1, 1 }
 0x142   : > { %v1826_v5 = vmul.f32 0.0625, %v1825_v2  ;;  %v1839_v6 = vadd.f32 %v1838_v4, %v1837_v1 }
 0x144   : > { %v1840_v7 = vmul.f32 0.0625, %v1839_v6  ;;  %v1841_v0 = vmul.f32 %v1826_v5, %v1826_v5  ;;  %v1844_v8 = vsub.f32 %v3600_v10, %v1826_v5  ;;  %v1845_v9 = vsub.f32 %v3604_v18, %v1826_v5 }
 0x145   : > { %v1846_v12 = vsub.f32 %v1787_v41, %v1826_v5  ;;  %v1847_v13 = vsub.f32 %v1788_v53, %v1826_v5 }
 0x146   : > { %v1842_v11 = vsub.f32 %v1840_v7, %v1841_v0 }
 0x148   : > { %v1843_v14 = vmax.f32 %v1842_v11, 0.0 }
 0x14a   : > { %v1848_v15 = vadd.f32 1e-05, %v1843_v14 }
 0x14c   : > { %3049 = vrsqrt.f32 %v1848_v15  ;;  %vm1855_vm1 = vweird.f32 %v1848_v15 }
 0x152   : > { %v3050_v16 = vpop.eup %3049 }
 0x153   : > { %v1850_v17 = vmul.f32 %v3050_v16, %v1848_v15  ;;  %vm1856_vm0 = vweird.f32 %v3050_v16 }
 0x154   : > { %vm1857_vm2 = vmor %vm1855_vm1, %vm1856_vm0 }
 0x155   : > { %v1851_v20 = vmul.f32 %v3050_v16, %v1850_v17 }
 0x157   : > { %v1852_v21 = vmul.f32 0.5, %v1851_v20 }
 0x159   : > { %v1853_v22 = vsub.f32 1.5, %v1852_v21 }
 0x15b   : > { %v1854_v23 = vmul.f32 %v3050_v16, %v1853_v22 }
 0x15d   : > { %v1858_v29 = vsel %vm1857_vm2, %v3050_v16, %v1854_v23 }
 0x15e   : > { %v1859_v10 = vmul.f32 %v1858_v29, %v1844_v8  ;;  %v1860_v19 = vmul.f32 %v1858_v29, %v1845_v9  ;;  %v1861_v18 = vmul.f32 %v1858_v29, %v1846_v12  ;;  %v1862_v30 = vmul.f32 %v1858_v29, %v1847_v13 }
 0x160   : > { %vm1863_vm3 = vcmp.ge.f32.partialorder %v1859_v10, 0.0  ;;  %vm1864_vm4 = vcmp.ge.f32.partialorder %v1860_v19, 0.0  ;;  %vm1865_vm5 = vcmp.ge.f32.partialorder %v1861_v18, 0.0  ;;  %vm1866_vm6 = vcmp.ge.f32.partialorder %v1862_v30, 0.0 }
 0x161   : > { %v1867_v31 = vmul.f32 0.2, %v1859_v10  ;;  %v1868_v32 = vmul.f32 0.2, %v1860_v19  ;;  %v1869_v33 = vmul.f32 0.2, %v1861_v18 }
 0x162   : > { %v1870_v3 = vmul.f32 0.2, %v1862_v30 }
 0x163   : > { %v1871_v24 = vsel %vm1863_vm3, %v1859_v10, %v1867_v31  ;;  %v1872_v34 = vsel %vm1864_vm4, %v1860_v19, %v1868_v32  ;;  %v1873_v35 = vsel %vm1865_vm5, %v1861_v18, %v1869_v33 }
 0x164   : > { %v1874_v36 = vsel %vm1866_vm6, %v1862_v30, %v1870_v3  ;;  %v3012_v37 = vpack.c.bf16 %v1872_v34, %v1871_v24 }
 0x165   : > { %v3017_v38 = vpack.c.bf16 %v1874_v36, %v1873_v35 }
 0x166   : > { %3013 = vst [vmem:[%s248_s11] sm:$0xff] %v3012_v37  }
 0x167   : > { %3019 = vst [vmem:[%s248_s11 + $0x8] sm:$0xff] %v3017_v38  }
 0x168 PF: > { %s14_s17 = sadd.s32 1, %s3073_s17   ;;  %s3631_s15 = smov %s3069_s16 }
 0x169   : > { %p11_p5 = scmp.ge.s32.totalorder %s14_s17, 4   ;;  %s3632_s16 = smov %s3634_s18 }
 0x16b   :  { %13 = sbr.rel (!%p11_p5) target bundleno = 2 (0x2), region = 76 }

// kernel: evaluator_forward.6
= control target key start
LH: loop header
LB: loop body
LE: loop exit
PB: predicated region body
PF: predicated region fallthrough
CT: control target
= control target key end

     0   :  { %s2773_s15 = smov 0   ;;  %s2775_s16 = smov 0   ;;  %s3241_s0 = inlined_call_operand.vmem [shape: bf16[2,2,24,512], index: 0, kind: input, shape index: {}]   ;;  %s3242_s1 = inlined_call_operand.vmem [shape: f32[16,1], index: 1, kind: input, shape index: {}]   ;;  %s3243_s2 = inlined_call_operand.vmem [shape: bf16[4,512,128], index: 2, kind: input, shape index: {}]   ;;  %s3244_s3 = inlined_call_operand.vmem [shape: f32[1,128], index: 3, kind: input, shape index: {}]   ;;  %s3245_s4 = inlined_call_operand.vmem [shape: f32[2,1,128], index: 4, kind: output, shape index: {}]  }
   0x1   :  { %s2777_s17 = smov 0  }
   0x2 LB: > { %s26_s18 = sadd.s32 1, %s2741_s16  ;;  %p1769_p0 = scmp.ge.s32.totalorder %s2745_s17, 1  ;;  %s2745_s17 = sphi %s2777_s17, %s14_s17   ;;  %s2741_s16 = sphi %s2775_s16, %s3247_s16   ;;  %s2737_s15 = sphi %s2773_s15, %s3246_s15  }
   0x3   : > { %p28_p1 = scmp.ge.s32.totalorder %s26_s18, 2  ;;  %p193_p2 = scmp.lt.s32.totalorder %s2745_s17, 3 }
   0x5   : > { %s3249_s18 = smov (%p28_p1, %s26_s18), 0  ;;  %p194_p3 = pnand %p1769_p0, %p193_p2 }
   0x6   : > { %p227_p4 = scmp.lt.s32.totalorder (!%p194_p3), %s2737_s15, 1 }
   0x7   : > { %197 = sbr.rel (%p194_p3) target bundleno = 358 (0x166), region = 36 }
   0xc   : > { %v2596_v0 = vld [vmem:[%s3243_s2 + $0x138] sm:$0xff]  ;;  %v2595_v4 = vld [vmem:[%s3243_s2 + $0x130] sm:$0xff]  ;;  %v2594_v8 = vld [vmem:[%s3243_s2 + $0x128] sm:$0xff]  ;;  %s3251_s15 = smov (!%p227_p4, %s2737_s15), 1 }
   0xd   : > { %v2604_v1 = vld [vmem:[%s3243_s2 + $0x178] sm:$0xff]  ;;  %595 = vmatpush.bf16.msra.mxu0 %v2596_v0  ;;  %v2603_v5 = vld [vmem:[%s3243_s2 + $0x170] sm:$0xff]  ;;  %v2602_v9 = vld [vmem:[%s3243_s2 + $0x168] sm:$0xff]  ;;  %s2693_s23 = smul.u32 96, %s3251_s15  ;;  %s244_s5 = scalar_lea.vmem %s3245_s4, %s3251_s15 }
   0xe   : > { %v2612_v2 = vld [vmem:[%s3243_s2 + $0x1b8] sm:$0xff]  ;;  %609 = vmatpush.bf16.msra.mxu1 %v2604_v1  ;;  %v2611_v6 = vld [vmem:[%s3243_s2 + $0x1b0] sm:$0xff]  ;;  %v2610_v10 = vld [vmem:[%s3243_s2 + $0x1a8] sm:$0xff] }
   0xf   : > { %v2620_v3 = vld [vmem:[%s3243_s2 + $0x1f8] sm:$0xff]  ;;  %623 = vmatpush.bf16.msra.mxu2 %v2612_v2  ;;  %v2619_v7 = vld [vmem:[%s3243_s2 + $0x1f0] sm:$0xff]  ;;  %v2618_v11 = vld [vmem:[%s3243_s2 + $0x1e8] sm:$0xff]  ;;  %s2885_s8 = scalar_lea.vmem %s3241_s0, %s2693_s23 }
  0x10   : > { %637 = vmatpush.bf16.msra.mxu3 %v2620_v3  ;;  %v2593_v12 = vld [vmem:[%s3243_s2 + $0x120] sm:$0xff]  ;;  %v2592_v16 = vld [vmem:[%s3243_s2 + $0x118] sm:$0xff]  ;;  %v2591_v20 = vld [vmem:[%s3243_s2 + $0x110] sm:$0xff] }
  0x11   : > { %596 = vmatpush.bf16.msra.mxu0 %v2595_v4  ;;  %v2601_v13 = vld [vmem:[%s3243_s2 + $0x160] sm:$0xff]  ;;  %v2600_v17 = vld [vmem:[%s3243_s2 + $0x158] sm:$0xff]  ;;  %v2599_v21 = vld [vmem:[%s3243_s2 + $0x150] sm:$0xff] }
  0x12   : > { %610 = vmatpush.bf16.msra.mxu1 %v2603_v5  ;;  %v2609_v14 = vld [vmem:[%s3243_s2 + $0x1a0] sm:$0xff]  ;;  %v2608_v18 = vld [vmem:[%s3243_s2 + $0x198] sm:$0xff]  ;;  %v2607_v22 = vld [vmem:[%s3243_s2 + $0x190] sm:$0xff] }
  0x13   : > { %624 = vmatpush.bf16.msra.mxu2 %v2611_v6  ;;  %v2617_v15 = vld [vmem:[%s3243_s2 + $0x1e0] sm:$0xff]  ;;  %v2616_v19 = vld [vmem:[%s3243_s2 + $0x1d8] sm:$0xff]  ;;  %v2615_v23 = vld [vmem:[%s3243_s2 + $0x1d0] sm:$0xff] }
  0x14   : > { %638 = vmatpush.bf16.msra.mxu3 %v2619_v7  ;;  %v2590_v24 = vld [vmem:[%s3243_s2 + $0x108] sm:$0xff]  ;;  %v2589_v28 = vld [vmem:[%s3243_s2 + $0x100] sm:$0xff]  ;;  %v2560_v32 = vld [vmem:[%s3243_s2 + $0x38] sm:$0xff] }
  0x15   : > { %597 = vmatpush.bf16.msra.mxu0 %v2594_v8  ;;  %v2598_v25 = vld [vmem:[%s3243_s2 + $0x148] sm:$0xff]  ;;  %v2597_v29 = vld [vmem:[%s3243_s2 + $0x140] sm:$0xff]  ;;  %v2568_v33 = vld [vmem:[%s3243_s2 + $0x78] sm:$0xff] }
  0x16   : > { %611 = vmatpush.bf16.msra.mxu1 %v2602_v9  ;;  %v2606_v26 = vld [vmem:[%s3243_s2 + $0x188] sm:$0xff]  ;;  %v2605_v30 = vld [vmem:[%s3243_s2 + $0x180] sm:$0xff]  ;;  %v1841_v34 = vld [vmem:[%s2885_s8 + $0x30] sm:$0xf] }
  0x17   : > { %625 = vmatpush.bf16.msra.mxu2 %v2610_v10  ;;  %v2614_v27 = vld [vmem:[%s3243_s2 + $0x1c8] sm:$0xff]  ;;  %v2613_v31 = vld [vmem:[%s3243_s2 + $0x1c0] sm:$0xff]  ;;  %v1849_v36 = vld [vmem:[%s2885_s8 + $0x38] sm:$0xf] }
  0x18   : > { %639 = vmatpush.bf16.msra.mxu3 %v2618_v11  ;;  %v2587_v35 = vld [vmem:[%s2885_s8 + $0x3c] sm:$0xf0]  ;;  %v2588_v37 = vld [vmem:[%s2885_s8 + $0x44] sm:$0xf0]  ;;  %v2585_v38 = vld [vmem:[%s2885_s8 + $0x34] sm:$0xf] }
  0x19   : > { %598 = vmatpush.bf16.msra.mxu0 %v2593_v12  ;;  %v1843_v39 = vld [vmem:[%s2885_s8 + $0x40] sm:$0xf0]  ;;  %v2586_v40 = vld [vmem:[%s2885_s8 + $0x3c] sm:$0xf]  ;;  %v1851_v41 = vld [vmem:[%s2885_s8 + $0x48] sm:$0xf0]  ;;  %v1842_v44 = vor.u32 %v2587_v35, %v1841_v34  ;;  %v1850_v45 = vor.u32 %v2588_v37, %v1849_v36 }
  0x1a   : > { %612 = vmatpush.bf16.msra.mxu1 %v2601_v13  ;;  %v2576_v42 = vld [vmem:[%s3243_s2 + $0xb8] sm:$0xff]  ;;  %v1846_v46 = vor.u32 %v2585_v38, %v1843_v39  ;;  %v1854_v47 = vor.u32 %v2586_v40, %v1851_v41  ;;  %v2559_v48 = vld [vmem:[%s3243_s2 + $0x30] sm:$0xff]  ;;  %v2558_v52 = vld [vmem:[%s3243_s2 + $0x28] sm:$0xff] }
  0x1b   : > { %626 = vmatpush.bf16.msra.mxu2 %v2609_v14  ;;  %v2584_v43 = vld [vmem:[%s3243_s2 + $0xf8] sm:$0xff]  ;;  %v2567_v49 = vld [vmem:[%s3243_s2 + $0x70] sm:$0xff]  ;;  %v2566_v53 = vld [vmem:[%s3243_s2 + $0x68] sm:$0xff] }
  0x1c   : > { %640 = vmatpush.bf16.msra.mxu3 %v2617_v15  ;;  %v2575_v50 = vld [vmem:[%s3243_s2 + $0xb0] sm:$0xff]  ;;  %v2574_v54 = vld [vmem:[%s3243_s2 + $0xa8] sm:$0xff]  ;;  %v2557_v56 = vld [vmem:[%s3243_s2 + $0x20] sm:$0xff] }
  0x1d   : > { %599 = vmatpush.bf16.msra.mxu0 %v2592_v16  ;;  %v2583_v51 = vld [vmem:[%s3243_s2 + $0xf0] sm:$0xff]  ;;  %v2582_v55 = vld [vmem:[%s3243_s2 + $0xe8] sm:$0xff]  ;;  %v2565_v57 = vld [vmem:[%s3243_s2 + $0x60] sm:$0xff] }
  0x1e   : > { %613 = vmatpush.bf16.msra.mxu1 %v2600_v17  ;;  %v2573_v58 = vld [vmem:[%s3243_s2 + $0xa0] sm:$0xff]  ;;  %v2556_v60 = vld [vmem:[%s3243_s2 + $0x18] sm:$0xff]  ;;  %v2555_v0 = vld [vmem:[%s3243_s2 + $0x10] sm:$0xff] }
  0x1f   : > { %627 = vmatpush.bf16.msra.mxu2 %v2608_v18  ;;  %v2581_v59 = vld [vmem:[%s3243_s2 + $0xe0] sm:$0xff]  ;;  %v2564_v61 = vld [vmem:[%s3243_s2 + $0x58] sm:$0xff]  ;;  %v2563_v1 = vld [vmem:[%s3243_s2 + $0x50] sm:$0xff] }
  0x20   : > { %641 = vmatpush.bf16.msra.mxu3 %v2616_v19  ;;  %v2572_v62 = vld [vmem:[%s3243_s2 + $0x98] sm:$0xff]  ;;  %v2571_v2 = vld [vmem:[%s3243_s2 + $0x90] sm:$0xff]  ;;  %v2554_v4 = vld [vmem:[%s3243_s2 + $0x8] sm:$0xff] }
  0x21   : > { %600 = vmatpush.bf16.msra.mxu0 %v2591_v20  ;;  %v2580_v63 = vld [vmem:[%s3243_s2 + $0xd8] sm:$0xff]  ;;  %v2579_v3 = vld [vmem:[%s3243_s2 + $0xd0] sm:$0xff]  ;;  %v2562_v5 = vld [vmem:[%s3243_s2 + $0x48] sm:$0xff] }
  0x22   : > { %614 = vmatpush.bf16.msra.mxu1 %v2599_v21  ;;  %v2570_v6 = vld [vmem:[%s3243_s2 + $0x88] sm:$0xff]  ;;  %v2553_v8 = vld [vmem:[%s3243_s2] sm:$0xff]  ;;  %v2632_v12 = vld [vmem:[%s3243_s2 + $0x238] sm:$0xff] }
  0x23   : > { %628 = vmatpush.bf16.msra.mxu2 %v2607_v22  ;;  %v2578_v7 = vld [vmem:[%s3243_s2 + $0xc8] sm:$0xff]  ;;  %v2561_v9 = vld [vmem:[%s3243_s2 + $0x40] sm:$0xff]  ;;  %v2640_v13 = vld [vmem:[%s3243_s2 + $0x278] sm:$0xff] }
  0x24   : > { %642 = vmatpush.bf16.msra.mxu3 %v2615_v23  ;;  %v2569_v10 = vld [vmem:[%s3243_s2 + $0x80] sm:$0xff]  ;;  %v2551_v15 = vld [vmem:[%s2885_s8 + $0xc] sm:$0xf0]  ;;  %v1993_v16 = vld [vmem:[%s2885_s8 + $0x8] sm:$0xf] }
  0x25   : > { %601 = vmatpush.bf16.msra.mxu0 %v2590_v24  ;;  %v2577_v11 = vld [vmem:[%s3243_s2 + $0xc0] sm:$0xff]  ;;  %v2552_v17 = vld [vmem:[%s2885_s8 + $0x14] sm:$0xf0]  ;;  %v1987_v19 = vld [vmem:[%s2885_s8 + $0x10] sm:$0xf0] }
  0x26   : > { %615 = vmatpush.bf16.msra.mxu1 %v2598_v25  ;;  %v1985_v14 = vld [vmem:[%s2885_s8] sm:$0xf]  ;;  %v2549_v18 = vld [vmem:[%s2885_s8 + $0x4] sm:$0xf]  ;;  %v2550_v20 = vld [vmem:[%s2885_s8 + $0xc] sm:$0xf]  ;;  %v1994_v25 = vor.u32 %v2552_v17, %v1993_v16 }
  0x27   : > { %629 = vmatpush.bf16.msra.mxu2 %v2606_v26  ;;  %v1995_v21 = vld [vmem:[%s2885_s8 + $0x18] sm:$0xf0]  ;;  %v1986_v24 = vor.u32 %v2551_v15, %v1985_v14  ;;  %v1990_v26 = vor.u32 %v2549_v18, %v1987_v19  ;;  %v2646_v34 = vld [vmem:[%s3243_s2 + $0x2a8] sm:$0xff]  ;;  %v2629_v36 = vld [vmem:[%s3243_s2 + $0x220] sm:$0xff]  ;;  %v2747_v17 = vmov 0  }
  0x28   : > { %643 = vmatpush.bf16.msra.mxu3 %v2614_v27  ;;  %v2648_v22 = vld [vmem:[%s3243_s2 + $0x2b8] sm:$0xff]  ;;  %v1998_v27 = vor.u32 %v2550_v20, %v1995_v21  ;;  %v2654_v35 = vld [vmem:[%s3243_s2 + $0x2e8] sm:$0xff]  ;;  %v2637_v37 = vld [vmem:[%s3243_s2 + $0x260] sm:$0xff]  ;;  %2719 = vset.pattern.permute.xlu0 %v2747_v17 }
  0x29   : > { %602 = vmatpush.bf16.msra.mxu0 %v2589_v28  ;;  %v2656_v23 = vld [vmem:[%s3243_s2 + $0x2f8] sm:$0xff]  ;;  %v2631_v28 = vld [vmem:[%s3243_s2 + $0x230] sm:$0xff]  ;;  %v2645_v38 = vld [vmem:[%s3243_s2 + $0x2a0] sm:$0xff] }
  0x2a   : > { %616 = vmatpush.bf16.msra.mxu1 %v2597_v29  ;;  %v2639_v29 = vld [vmem:[%s3243_s2 + $0x270] sm:$0xff]  ;;  %v2653_v39 = vld [vmem:[%s3243_s2 + $0x2e0] sm:$0xff]  ;;  %v2628_v40 = vld [vmem:[%s3243_s2 + $0x218] sm:$0xff] }
  0x2b   : > { %630 = vmatpush.bf16.msra.mxu2 %v2605_v30  ;;  %v2647_v30 = vld [vmem:[%s3243_s2 + $0x2b0] sm:$0xff]  ;;  %v2636_v41 = vld [vmem:[%s3243_s2 + $0x258] sm:$0xff]  ;;  %v1603_v14 = vld [vmem:[%s3242_s1] sm:$0xff] }
  0x2c   : > { %644 = vmatpush.bf16.msra.mxu3 %v2613_v31  ;;  %603 = vmatmul.bf16.vlgmr.msra.gmra.mxu0 %v1842_v44  ;;  %v2655_v31 = vld [vmem:[%s3243_s2 + $0x2f0] sm:$0xff]  ;;  %v2682_v15 = vld [vmem:[%s3243_s2 + $0x3a8] sm:$0xff]  ;;  %v2665_v18 = vld [vmem:[%s3243_s2 + $0x320] sm:$0xff] }
  0x2d   : > { %863 = vmatpush.bf16.msrb.mxu0 %v2560_v32  ;;  %617 = vmatmul.bf16.vlgmr.msra.gmra.mxu1 %v1846_v46  ;;  %v2630_v32 = vld [vmem:[%s3243_s2 + $0x228] sm:$0xff]  ;;  %v2627_v44 = vld [vmem:[%s3243_s2 + $0x210] sm:$0xff]  ;;  %v2673_v19 = vld [vmem:[%s3243_s2 + $0x360] sm:$0xff] }
  0x2e   : > { %877 = vmatpush.bf16.msrb.mxu1 %v2568_v33  ;;  %631 = vmatmul.bf16.vlgmr.msra.gmra.mxu2 %v1850_v45  ;;  %v2638_v33 = vld [vmem:[%s3243_s2 + $0x268] sm:$0xff]  ;;  %v2635_v45 = vld [vmem:[%s3243_s2 + $0x250] sm:$0xff]  ;;  %v2681_v20 = vld [vmem:[%s3243_s2 + $0x3a0] sm:$0xff] }
  0x2f   : > { %891 = vmatpush.bf16.msrb.mxu2 %v2576_v42  ;;  %645 = vmatmul.bf16.vlgmr.msra.gmra.mxu3 %v1854_v47  ;;  %v2644_v42 = vld [vmem:[%s3243_s2 + $0x298] sm:$0xff]  ;;  %v2643_v46 = vld [vmem:[%s3243_s2 + $0x290] sm:$0xff]  ;;  %v2690_v16 = vld [vmem:[%s3243_s2 + $0x3e8] sm:$0xff] }
  0x30   : > { %905 = vmatpush.bf16.msrb.mxu3 %v2584_v43  ;;  %v2652_v43 = vld [vmem:[%s3243_s2 + $0x2d8] sm:$0xff]  ;;  %v2651_v47 = vld [vmem:[%s3243_s2 + $0x2d0] sm:$0xff]  ;;  %1607 = vperm.xlu0 %2719, %v1603_v14   ;;  %v2689_v21 = vld [vmem:[%s3243_s2 + $0x3e0] sm:$0xff] }
  0x31   : > { %864 = vmatpush.bf16.msrb.mxu0 %v2559_v48  ;;  %v2626_v48 = vld [vmem:[%s3243_s2 + $0x208] sm:$0xff] }
  0x32   : > { %878 = vmatpush.bf16.msrb.mxu1 %v2567_v49  ;;  %v2634_v49 = vld [vmem:[%s3243_s2 + $0x248] sm:$0xff] }
  0x33   : > { %892 = vmatpush.bf16.msrb.mxu2 %v2575_v50  ;;  %v2642_v50 = vld [vmem:[%s3243_s2 + $0x288] sm:$0xff] }
  0x34   : > { %906 = vmatpush.bf16.msrb.mxu3 %v2583_v51  ;;  %v2650_v51 = vld [vmem:[%s3243_s2 + $0x2c8] sm:$0xff] }
  0x35   : > { %865 = vmatpush.bf16.msrb.mxu0 %v2558_v52  ;;  %v2625_v52 = vld [vmem:[%s3243_s2 + $0x200] sm:$0xff] }
  0x36   : > { %879 = vmatpush.bf16.msrb.mxu1 %v2566_v53  ;;  %v2633_v53 = vld [vmem:[%s3243_s2 + $0x240] sm:$0xff] }
  0x37   : > { %893 = vmatpush.bf16.msrb.mxu2 %v2574_v54  ;;  %v2641_v54 = vld [vmem:[%s3243_s2 + $0x280] sm:$0xff] }
  0x38   : > { %907 = vmatpush.bf16.msrb.mxu3 %v2582_v55  ;;  %v2649_v55 = vld [vmem:[%s3243_s2 + $0x2c0] sm:$0xff] }
  0x39   : > { %866 = vmatpush.bf16.msrb.mxu0 %v2557_v56  ;;  %v2668_v56 = vld [vmem:[%s3243_s2 + $0x338] sm:$0xff] }
  0x3a   : > { %880 = vmatpush.bf16.msrb.mxu1 %v2565_v57  ;;  %v2676_v57 = vld [vmem:[%s3243_s2 + $0x378] sm:$0xff] }
  0x3b   : > { %894 = vmatpush.bf16.msrb.mxu2 %v2573_v58  ;;  %v2201_v58 = vld [vmem:[%s2885_s8 + $0x18] sm:$0xf] }
  0x3c   : > { %908 = vmatpush.bf16.msrb.mxu3 %v2581_v59  ;;  %v2624_v59 = vld [vmem:[%s2885_s8 + $0x24] sm:$0xf0] }
  0x3d   : > { %867 = vmatpush.bf16.msrb.mxu0 %v2556_v60  ;;  %v2622_v60 = vld [vmem:[%s2885_s8 + $0x1c] sm:$0xf] }
  0x3e   : > { %881 = vmatpush.bf16.msrb.mxu1 %v2564_v61  ;;  %v2203_v61 = vld [vmem:[%s2885_s8 + $0x28] sm:$0xf0] }
  0x3f   : > { %895 = vmatpush.bf16.msrb.mxu2 %v2572_v62  ;;  %v2193_v62 = vld [vmem:[%s2885_s8 + $0x10] sm:$0xf] }
  0x40   : > { %909 = vmatpush.bf16.msrb.mxu3 %v2580_v63  ;;  %v2623_v63 = vld [vmem:[%s2885_s8 + $0x1c] sm:$0xf0] }
  0x41   : > { %868 = vmatpush.bf16.msrb.mxu0 %v2555_v0  ;;  %v2621_v0 = vld [vmem:[%s2885_s8 + $0x14] sm:$0xf] }
  0x42   : > { %882 = vmatpush.bf16.msrb.mxu1 %v2563_v1  ;;  %v2195_v1 = vld [vmem:[%s2885_s8 + $0x20] sm:$0xf0] }
  0x43   : > { %896 = vmatpush.bf16.msrb.mxu2 %v2571_v2  ;;  %v2684_v2 = vld [vmem:[%s3243_s2 + $0x3b8] sm:$0xff] }
  0x44   : > { %910 = vmatpush.bf16.msrb.mxu3 %v2579_v3  ;;  %v2692_v3 = vld [vmem:[%s3243_s2 + $0x3f8] sm:$0xff] }
  0x45   : > { %869 = vmatpush.bf16.msrb.mxu0 %v2554_v4  ;;  %v2202_v4 = vor.u32 %v2624_v59, %v2201_v58 }
  0x46   : > { %883 = vmatpush.bf16.msrb.mxu1 %v2562_v5  ;;  %v2206_v5 = vor.u32 %v2622_v60, %v2203_v61 }
  0x47   : > { %897 = vmatpush.bf16.msrb.mxu2 %v2570_v6  ;;  %v2194_v6 = vor.u32 %v2623_v63, %v2193_v62 }
  0x48   : > { %911 = vmatpush.bf16.msrb.mxu3 %v2578_v7  ;;  %v2198_v7 = vor.u32 %v2621_v0, %v2195_v1 }
  0x49   : > { %870 = vmatpush.bf16.msrb.mxu0 %v2553_v8  ;;  %v2667_v8 = vld [vmem:[%s3243_s2 + $0x330] sm:$0xff] }
  0x4a   : > { %884 = vmatpush.bf16.msrb.mxu1 %v2561_v9  ;;  %v2675_v9 = vld [vmem:[%s3243_s2 + $0x370] sm:$0xff] }
  0x4b   : > { %898 = vmatpush.bf16.msrb.mxu2 %v2569_v10  ;;  %v2683_v10 = vld [vmem:[%s3243_s2 + $0x3b0] sm:$0xff] }
  0x4c   : > { %912 = vmatpush.bf16.msrb.mxu3 %v2577_v11  ;;  %871 = vmatmul.bf16.vlgmr.msrb.gmra.mxu0 %v1986_v24  ;;  %v2691_v11 = vld [vmem:[%s3243_s2 + $0x3f0] sm:$0xff]  ;;  %v1604_v24 = vld [vmem:[%s3242_s1 + $0x8] sm:$0xff] }
  0x4d   : > { %1200 = vmatpush.bf16.msra.mxu0 %v2632_v12  ;;  %885 = vmatmul.bf16.vlgmr.msrb.gmra.mxu1 %v1990_v26  ;;  %v2666_v12 = vld [vmem:[%s3243_s2 + $0x328] sm:$0xff]  ;;  %v2688_v26 = vld [vmem:[%s3243_s2 + $0x3d8] sm:$0xff] }
  0x4e   : > { %1214 = vmatpush.bf16.msra.mxu1 %v2640_v13  ;;  %899 = vmatmul.bf16.vlgmr.msrb.gmra.mxu2 %v1994_v25  ;;  %v2674_v13 = vld [vmem:[%s3243_s2 + $0x368] sm:$0xff]  ;;  %v2680_v25 = vld [vmem:[%s3243_s2 + $0x398] sm:$0xff] }
  0x4f   : > { %1228 = vmatpush.bf16.msra.mxu2 %v2648_v22  ;;  %913 = vmatmul.bf16.vlgmr.msrb.gmra.mxu3 %v1998_v27  ;;  %v2664_v22 = vld [vmem:[%s3243_s2 + $0x318] sm:$0xff]  ;;  %v2663_v27 = vld [vmem:[%s3243_s2 + $0x310] sm:$0xff] }
  0x50   : > { %1242 = vmatpush.bf16.msra.mxu3 %v2656_v23  ;;  %v2672_v23 = vld [vmem:[%s3243_s2 + $0x358] sm:$0xff]  ;;  %1612 = vperm.xlu0 %2719, %v1604_v24  }
  0x51   : > { %1201 = vmatpush.bf16.msra.mxu0 %v2631_v28  ;;  %v2671_v28 = vld [vmem:[%s3243_s2 + $0x350] sm:$0xff] }
  0x52   : > { %1215 = vmatpush.bf16.msra.mxu1 %v2639_v29  ;;  %v2679_v29 = vld [vmem:[%s3243_s2 + $0x390] sm:$0xff] }
  0x53   : > { %1229 = vmatpush.bf16.msra.mxu2 %v2647_v30  ;;  %v2687_v30 = vld [vmem:[%s3243_s2 + $0x3d0] sm:$0xff] }
  0x54   : > { %1243 = vmatpush.bf16.msra.mxu3 %v2655_v31  ;;  %v2662_v31 = vld [vmem:[%s3243_s2 + $0x308] sm:$0xff] }
  0x55   : > { %1202 = vmatpush.bf16.msra.mxu0 %v2630_v32  ;;  %v2670_v32 = vld [vmem:[%s3243_s2 + $0x348] sm:$0xff] }
  0x56   : > { %1216 = vmatpush.bf16.msra.mxu1 %v2638_v33  ;;  %v2678_v33 = vld [vmem:[%s3243_s2 + $0x388] sm:$0xff] }
  0x57   : > { %1230 = vmatpush.bf16.msra.mxu2 %v2646_v34  ;;  %v2686_v34 = vld [vmem:[%s3243_s2 + $0x3c8] sm:$0xff] }
  0x58   : > { %1244 = vmatpush.bf16.msra.mxu3 %v2654_v35  ;;  %v2661_v35 = vld [vmem:[%s3243_s2 + $0x300] sm:$0xff] }
  0x59   : > { %1203 = vmatpush.bf16.msra.mxu0 %v2629_v36  ;;  %v2669_v36 = vld [vmem:[%s3243_s2 + $0x340] sm:$0xff] }
  0x5a   : > { %1217 = vmatpush.bf16.msra.mxu1 %v2637_v37  ;;  %v2677_v37 = vld [vmem:[%s3243_s2 + $0x380] sm:$0xff] }
  0x5b   : > { %1231 = vmatpush.bf16.msra.mxu2 %v2645_v38  ;;  %v2685_v38 = vld [vmem:[%s3243_s2 + $0x3c0] sm:$0xff] }
  0x5c   : > { %1245 = vmatpush.bf16.msra.mxu3 %v2653_v39  ;;  %v2405_v39 = vld [vmem:[%s2885_s8 + $0x40] sm:$0xf] }
  0x5d   : > { %1204 = vmatpush.bf16.msra.mxu0 %v2628_v40  ;;  %v2659_v40 = vld [vmem:[%s2885_s8 + $0x4c] sm:$0xf0] }
  0x5e   : > { %1218 = vmatpush.bf16.msra.mxu1 %v2636_v41  ;;  %v2657_v41 = vld [vmem:[%s2885_s8 + $0x44] sm:$0xf] }
  0x5f   : > { %1232 = vmatpush.bf16.msra.mxu2 %v2644_v42  ;;  %v2407_v42 = vld [vmem:[%s2885_s8 + $0x50] sm:$0xf0] }
  0x60   : > { %1246 = vmatpush.bf16.msra.mxu3 %v2652_v43  ;;  %v2413_v43 = vld [vmem:[%s2885_s8 + $0x48] sm:$0xf] }
  0x61   : > { %1205 = vmatpush.bf16.msra.mxu0 %v2627_v44  ;;  %v2660_v44 = vld [vmem:[%s2885_s8 + $0x54] sm:$0xf0] }
  0x62   : > { %1219 = vmatpush.bf16.msra.mxu1 %v2635_v45  ;;  %v2658_v45 = vld [vmem:[%s2885_s8 + $0x4c] sm:$0xf] }
  0x63   : > { %1233 = vmatpush.bf16.msra.mxu2 %v2643_v46  ;;  %v2415_v46 = vld [vmem:[%s2885_s8 + $0x58] sm:$0xf0] }
  0x64   : > { %1247 = vmatpush.bf16.msra.mxu3 %v2651_v47  ;;  %v2406_v47 = vor.u32 %v2659_v40, %v2405_v39 }
  0x65   : > { %1206 = vmatpush.bf16.msra.mxu0 %v2626_v48  ;;  %v2410_v48 = vor.u32 %v2657_v41, %v2407_v42  ;;  %v2720_v42 = vld [vmem:[%s3244_s3] ss:$0 sm:$0xff] }
  0x66   : > { %1220 = vmatpush.bf16.msra.mxu1 %v2634_v49  ;;  %v2414_v49 = vor.u32 %v2660_v44, %v2413_v43 }
  0x67   : > { %1234 = vmatpush.bf16.msra.mxu2 %v2642_v50  ;;  %v2418_v50 = vor.u32 %v2658_v45, %v2415_v46 }
  0x68   : > { %1248 = vmatpush.bf16.msra.mxu3 %v2650_v51 }
  0x69   : > { %1207 = vmatpush.bf16.msra.mxu0 %v2625_v52 }
  0x6a   : > { %1221 = vmatpush.bf16.msra.mxu1 %v2633_v53 }
  0x6b   : > { %1235 = vmatpush.bf16.msra.mxu2 %v2641_v54 }
  0x6c   : > { %1249 = vmatpush.bf16.msra.mxu3 %v2649_v55  ;;  %1208 = vmatmul.bf16.vlgmr.msra.gmra.mxu0 %v2194_v6 }
  0x6d   : > { %1539 = vmatpush.bf16.msrb.mxu0 %v2668_v56  ;;  %1222 = vmatmul.bf16.vlgmr.msra.gmra.mxu1 %v2198_v7 }
  0x6e   : > { %1553 = vmatpush.bf16.msrb.mxu1 %v2676_v57  ;;  %1236 = vmatmul.bf16.vlgmr.msra.gmra.mxu2 %v2202_v4 }
  0x6f   : > { %1567 = vmatpush.bf16.msrb.mxu2 %v2684_v2  ;;  %1250 = vmatmul.bf16.vlgmr.msra.gmra.mxu3 %v2206_v5 }
  0x70   : > { %1581 = vmatpush.bf16.msrb.mxu3 %v2692_v3 }
  0x71   : > { %1540 = vmatpush.bf16.msrb.mxu0 %v2667_v8 }
  0x72   : > { %1554 = vmatpush.bf16.msrb.mxu1 %v2675_v9 }
  0x73   : > { %1568 = vmatpush.bf16.msrb.mxu2 %v2683_v10 }
  0x74   : > { %1582 = vmatpush.bf16.msrb.mxu3 %v2691_v11 }
  0x75   : > { %1541 = vmatpush.bf16.msrb.mxu0 %v2666_v12 }
  0x76   : > { %1555 = vmatpush.bf16.msrb.mxu1 %v2674_v13 }
  0x77   : > { %1569 = vmatpush.bf16.msrb.mxu2 %v2682_v15 }
  0x78   : > { %1583 = vmatpush.bf16.msrb.mxu3 %v2690_v16 }
  0x79   : > { %1542 = vmatpush.bf16.msrb.mxu0 %v2665_v18 }
  0x7a   : > { %1556 = vmatpush.bf16.msrb.mxu1 %v2673_v19 }
  0x7b   : > { %1570 = vmatpush.bf16.msrb.mxu2 %v2681_v20 }
  0x7c   : > { %1584 = vmatpush.bf16.msrb.mxu3 %v2689_v21 }
  0x7d   : > { %1543 = vmatpush.bf16.msrb.mxu0 %v2664_v22 }
  0x7e   : > { %1557 = vmatpush.bf16.msrb.mxu1 %v2672_v23 }
  0x7f   : > { %1571 = vmatpush.bf16.msrb.mxu2 %v2680_v25 }
  0x80   : > { %1585 = vmatpush.bf16.msrb.mxu3 %v2688_v26 }
  0x81   : > { %1544 = vmatpush.bf16.msrb.mxu0 %v2663_v27 }
  0x82   : > { %1558 = vmatpush.bf16.msrb.mxu1 %v2671_v28 }
  0x83   : > { %1572 = vmatpush.bf16.msrb.mxu2 %v2679_v29 }
  0x84   : > { %1586 = vmatpush.bf16.msrb.mxu3 %v2687_v30 }
  0x85   : > { %1545 = vmatpush.bf16.msrb.mxu0 %v2662_v31 }
  0x86   : > { %1559 = vmatpush.bf16.msrb.mxu1 %v2670_v32 }
  0x87   : > { %1573 = vmatpush.bf16.msrb.mxu2 %v2678_v33 }
  0x88   : > { %1587 = vmatpush.bf16.msrb.mxu3 %v2686_v34 }
  0x89   : > { %1546 = vmatpush.bf16.msrb.mxu0 %v2661_v35 }
  0x8a   : > { %1560 = vmatpush.bf16.msrb.mxu1 %v2669_v36 }
  0x8b   : > { %1574 = vmatpush.bf16.msrb.mxu2 %v2677_v37 }
  0x8c   : > { %1588 = vmatpush.bf16.msrb.mxu3 %v2685_v38  ;;  %1547 = vmatmul.bf16.vlgmr.msrb.gmra.mxu0 %v2406_v47 }
  0x8d   : > { %1561 = vmatmul.bf16.vlgmr.msrb.gmra.mxu1 %v2410_v48 }
  0x8e   : > { %1575 = vmatmul.bf16.vlgmr.msrb.gmra.mxu2 %v2414_v49 }
  0x8f   : > { %1589 = vmatmul.bf16.vlgmr.msrb.gmra.mxu3 %v2418_v50 }
  0xa2   : > { %v1608_v39 = vpop.permute.xlu0 %1607 }
  0xa9   : > { %v604_v51 = vpop.f32.mrf.mxu0 }
  0xaa   : > { %v618_v52 = vpop.f32.mrf.mxu1 }
  0xab   : > { %v619_v5 = vadd.f32 %v618_v52, %v604_v51 }
  0xb1   : > { %v632_v53 = vpop.f32.mrf.mxu2  ;;  %v606_v55 = vpop.f32.mrf.mxu0 }
  0xb2   : > { %v646_v54 = vpop.f32.mrf.mxu3  ;;  %v620_v56 = vpop.f32.mrf.mxu1  ;;  %v633_v8 = vadd.f32 %v632_v53, %v619_v5 }
  0xb3   : > { %v621_v12 = vadd.f32 %v620_v56, %v606_v55 }
  0xb4   : > { %v647_v11 = vadd.f32 %v646_v54, %v633_v8 }
  0xb9   : > { %v634_v57 = vpop.f32.mrf.mxu2 }
  0xba   : > { %v648_v58 = vpop.f32.mrf.mxu3  ;;  %v635_v13 = vadd.f32 %v634_v57, %v621_v12 }
  0xbc   : > { %v649_v20 = vadd.f32 %v648_v58, %v635_v13 }
  0xc2   : > { %v1613_v54 = vpop.permute.xlu0 %1612 }
  0xc9   : > { %v872_v59 = vpop.f32.mrf.mxu0 }
  0xca   : > { %v886_v60 = vpop.f32.mrf.mxu1  ;;  %v873_v14 = vadd.f32 %v872_v59, %v647_v11 }
  0xcc   : > { %v887_v21 = vadd.f32 %v886_v60, %v873_v14 }
  0xd1   : > { %v900_v61 = vpop.f32.mrf.mxu2  ;;  %v874_v63 = vpop.f32.mrf.mxu0 }
  0xd2   : > { %v914_v62 = vpop.f32.mrf.mxu3  ;;  %v888_v0 = vpop.f32.mrf.mxu1  ;;  %v901_v24 = vadd.f32 %v900_v61, %v887_v21  ;;  %v875_v25 = vadd.f32 %v874_v63, %v649_v20 }
  0xd4   : > { %v915_v31 = vadd.f32 %v914_v62, %v901_v24  ;;  %v889_v32 = vadd.f32 %v888_v0, %v875_v25 }
  0xd9   : > { %v902_v1 = vpop.f32.mrf.mxu2 }
  0xda   : > { %v916_v2 = vpop.f32.mrf.mxu3  ;;  %v903_v37 = vadd.f32 %v902_v1, %v889_v32 }
  0xdc   : > { %v917_v45 = vadd.f32 %v916_v2, %v903_v37 }
  0xe9   : > { %v1209_v3 = vpop.f32.mrf.mxu0 }
  0xea   : > { %v1223_v4 = vpop.f32.mrf.mxu1 }
  0xeb   : > { %v1224_v17 = vadd.f32 %v1223_v4, %v1209_v3 }
  0xf1   : > { %v1237_v6 = vpop.f32.mrf.mxu2  ;;  %v1211_v9 = vpop.f32.mrf.mxu0 }
  0xf2   : > { %v1251_v7 = vpop.f32.mrf.mxu3  ;;  %v1225_v10 = vpop.f32.mrf.mxu1  ;;  %v1238_v22 = vadd.f32 %v1237_v6, %v1224_v17 }
  0xf3   : > { %v1226_v26 = vadd.f32 %v1225_v10, %v1211_v9 }
  0xf4   : > { %v1252_v29 = vadd.f32 %v1251_v7, %v1238_v22 }
  0xf6   : > { %v1256_v38 = vadd.f32 %v1252_v29, %v915_v31 }
  0xf9   : > { %v1239_v15 = vpop.f32.mrf.mxu2 }
  0xfa   : > { %v1253_v16 = vpop.f32.mrf.mxu3  ;;  %v1240_v33 = vadd.f32 %v1239_v15, %v1226_v26 }
  0xfc   : > { %v1254_v40 = vadd.f32 %v1253_v16, %v1240_v33 }
  0xfe   : > { %v1257_v48 = vadd.f32 %v1254_v40, %v917_v45 }
 0x109   : > { %v1548_v18 = vpop.f32.mrf.mxu0 }
 0x10a   : > { %v1562_v19 = vpop.f32.mrf.mxu1 }
 0x10b   : > { %v1563_v23 = vadd.f32 %v1562_v19, %v1548_v18 }
 0x111   : > { %v1576_v27 = vpop.f32.mrf.mxu2  ;;  %v1550_v35 = vpop.f32.mrf.mxu0 }
 0x112   : > { %v1590_v28 = vpop.f32.mrf.mxu3  ;;  %v1577_v30 = vadd.f32 %v1576_v27, %v1563_v23  ;;  %v1564_v36 = vpop.f32.mrf.mxu1 }
 0x113   : > { %v1565_v43 = vadd.f32 %v1564_v36, %v1550_v35 }
 0x114   : > { %v1591_v34 = vadd.f32 %v1590_v28, %v1577_v30 }
 0x116   : > { %v1595_v41 = vadd.f32 %v1591_v34, %v1256_v38 }
 0x118   : > { %v1601_v49 = vadd.f32 %v2720_v42, %v1595_v41 }
 0x119   : > { %v1578_v44 = vpop.f32.mrf.mxu2 }
 0x11a   : > { %v1579_v46 = vadd.f32 %v1578_v44, %v1565_v43  ;;  %v1592_v47 = vpop.f32.mrf.mxu3  ;;  %v1615_v52 = vmul.f32 %v1608_v39, %v1601_v49 }
 0x11c   : > { %v1593_v50 = vadd.f32 %v1592_v47, %v1579_v46  ;;  %v1625_v56 = vmul.f32 %v1615_v52, %v1601_v49 }
 0x11e   : > { %v1596_v51 = vadd.f32 %v1593_v50, %v1257_v48 }
 0x120   : > { %v1602_v53 = vadd.f32 %v2720_v42, %v1596_v51 }
 0x122   : > { %v1616_v55 = vmul.f32 %v1613_v54, %v1602_v53 }
 0x124   : > { %v1617_v57 = vadd.f32 %v1616_v55, %v1615_v52  ;;  %v1626_v58 = vmul.f32 %v1616_v55, %v1602_v53 }
 0x126   : > { %v1618_v59 = vrot.slane %v1617_v57, 4  ;;  %v1627_v60 = vadd.f32 %v1626_v58, %v1625_v56 }
 0x128   : > { %v1619_v61 = vadd.f32 %v1618_v59, %v1617_v57  ;;  %v1628_v62 = vrot.slane %v1627_v60, 4 }
 0x12a   : > { %v1620_v63 = vrot.slane %v1619_v61, 2  ;;  %v1629_v0 = vadd.f32 %v1628_v62, %v1627_v60 }
 0x12c   : > { %v1621_v1 = vadd.f32 %v1620_v63, %v1619_v61  ;;  %v1630_v2 = vrot.slane %v1629_v0, 2 }
 0x12e   : > { %v1622_v3 = vrot.slane %v1621_v1, 1  ;;  %v1631_v4 = vadd.f32 %v1630_v2, %v1629_v0 }
 0x130   : > { %v1623_v5 = vadd.f32 %v1622_v3, %v1621_v1  ;;  %v1632_v6 = vrot.slane %v1631_v4, 1 }
 0x132   : > { %v1624_v7 = vmul.f32 0.25, %v1623_v5  ;;  %v1633_v8 = vadd.f32 %v1632_v6, %v1631_v4 }
 0x134   : > { %v1634_v9 = vmul.f32 0.25, %v1633_v8  ;;  %v1635_v10 = vmul.f32 %v1624_v7, %v1624_v7  ;;  %v1638_v20 = vsub.f32 %v1601_v49, %v1624_v7  ;;  %v1639_v21 = vsub.f32 %v1602_v53, %v1624_v7 }
 0x136   : > { %v1636_v11 = vsub.f32 %v1634_v9, %v1635_v10 }
 0x138   : > { %v1637_v12 = vmax.f32 %v1636_v11, 0.0 }
 0x13a   : > { %v1640_v13 = vadd.f32 1e-05, %v1637_v12 }
 0x13c   : > { %2721 = vrsqrt.f32 %v1640_v13  ;;  %vm1647_vm1 = vweird.f32 %v1640_v13 }
 0x142   : > { %v2722_v14 = vpop.eup %2721 }
 0x143   : > { %v1642_v15 = vmul.f32 %v2722_v14, %v1640_v13  ;;  %vm1648_vm0 = vweird.f32 %v2722_v14 }
 0x144   : > { %vm1649_vm2 = vmor %vm1647_vm1, %vm1648_vm0 }
 0x145   : > { %v1643_v16 = vmul.f32 %v2722_v14, %v1642_v15 }
 0x147   : > { %v1644_v17 = vmul.f32 0.5, %v1643_v16 }
 0x149   : > { %v1645_v18 = vsub.f32 1.5, %v1644_v17 }
 0x14b   : > { %v1646_v19 = vmul.f32 %v2722_v14, %v1645_v18 }
 0x14d   : > { %v1650_v22 = vsel %vm1649_vm2, %v2722_v14, %v1646_v19 }
 0x14e   : > { %v1651_v23 = vmul.f32 %v1650_v22, %v1638_v20  ;;  %v1652_v24 = vmul.f32 %v1650_v22, %v1639_v21 }
 0x150   : > { %vm1653_vm3 = vcmp.ge.f32.partialorder %v1651_v23, 0.0  ;;  %vm1654_vm4 = vcmp.ge.f32.partialorder %v1652_v24, 0.0  ;;  %v1655_v25 = vmul.f32 0.2, %v1651_v23  ;;  %v1656_v26 = vmul.f32 0.2, %v1652_v24 }
 0x152   : > { %v1657_v27 = vsel %vm1653_vm3, %v1651_v23, %v1655_v25  ;;  %v1658_v28 = vsel %vm1654_vm4, %v1652_v24, %v1656_v26 }
 0x153   : > { %v1659_v29 = vmul.f32 %v1657_v27, %v1608_v39  ;;  %v1660_v30 = vmul.f32 %v1658_v28, %v1613_v54 }
 0x155   : > { %v1661_v31 = vadd.f32 %v1660_v30, %v1659_v29 }
 0x157   : > { %v1662_v32 = vrot.slane %v1661_v31, 4 }
 0x159   : > { %v1663_v33 = vadd.f32 %v1662_v32, %v1661_v31 }
 0x15b   : > { %v1664_v34 = vrot.slane %v1663_v33, 2 }
 0x15d   : > { %v1665_v35 = vadd.f32 %v1664_v34, %v1663_v33 }
 0x15f   : > { %v1666_v36 = vrot.slane %v1665_v35, 1 }
 0x161   : > { %v1667_v37 = vadd.f32 %v1666_v36, %v1665_v35 }
 0x163   : > { %v1668_v38 = vmul.f32 0.25, %v1667_v37 }
 0x165   : > { %1669 = vst [vmem:[%s244_s5] sm:$0x1] %v1668_v38 }
 0x166 PF: > { %s14_s17 = sadd.s32 1, %s2745_s17   ;;  %s3246_s15 = smov %s2741_s16 }
 0x167   : > { %p11_p5 = scmp.ge.s32.totalorder %s14_s17, 4   ;;  %s3247_s16 = smov %s3249_s18 }
 0x169   :  { %13 = sbr.rel (!%p11_p5) target bundleno = 2 (0x2), region = 76 }

</bundles_post_ra>
